<compile_context>
chip_gen: v6e
topology: v6e:2x2x1
jax: 0.10.0
libtpu: 0.0.40
codegen_flags: <defaults>
</compile_context>

<pallas_src>
import numpy as np

import jax
import jax.numpy as jnp
from jax import lax
from jax.experimental import pallas as pl
from jax.experimental.pallas import tpu as pltpu


# ----------------------------------------------------------------------------
# Static model geometry (Model3 with an MNIST-style 1x28x28 input; the
# Linear(64, 10) requires the final 16 x 2 x 2 feature map).
# ----------------------------------------------------------------------------
_CONV_DEFS = [  # (cin, cout, k)
    (1, 8, 3), (8, 20, 3), (20, 10, 1), (10, 8, 3), (8, 20, 3), (20, 16, 3),
]
_POOL_AFTER = (False, True, False, False, True, False)
_IN_HW = 28
_NUM_CLASSES = 10


def _layer_geometry():
    h = w = _IN_HW
    geoms = []
    for (cin, cout, k), pool in zip(_CONV_DEFS, _POOL_AFTER):
        ho, wo = h - k + 1, w - k + 1
        geoms.append(dict(cin=cin, cout=cout, k=k, h_in=h, w_in=w,
                          h_out=ho, w_out=wo, pool=pool))
        h, w = (ho // 2, wo // 2) if pool else (ho, wo)
    return geoms, (h, w)


_GEOMS, _FINAL_HW = _layer_geometry()          # final spatial = (2, 2), C = 16


# ----------------------------------------------------------------------------
# Fused forward kernel: one grid step == one image, everything stays in VMEM.
# ----------------------------------------------------------------------------
def _fused_forward_kernel(*refs):
    geoms, (fh, _) = _GEOMS, _FINAL_HW
    f32 = jnp.float32

    # Unpack refs: x, per-layer (T, scale/bias[, pool mats]), fc, out, scratch.
    it = iter(refs)
    x_ref = next(it)
    layer_refs = []
    for g in geoms:
        t_ref, sb_ref = next(it), next(it)
        pv_ref, ph_ref = (next(it), next(it)) if g['pool'] else (None, None)
        layer_refs.append((t_ref, sb_ref, pv_ref, ph_ref))
    fcw_ref = next(it)
    o_ref = next(it)
    scratch = list(it)

    def mm(a, b):
        return jnp.dot(a, b, preferred_element_type=f32)

    si = 0
    cur = None          # current activation value, layout (rows, width*channels)
    for li, (g, (t_ref, sb_ref, pv_ref, ph_ref)) in enumerate(
            zip(geoms, layer_refs)):
        ho, k = g['h_out'], g['k']
        if k == 1:
            acc = mm(cur, t_ref[0])
        else:
            if li == 0:
                rows = lambda dy, h=ho: x_ref[0, dy:dy + h, :]
            else:
                sref = scratch[si]; si += 1
                sref[...] = cur                 # stage so taps are ref slices
                rows = lambda dy, h=ho, r=sref: r[dy:dy + h, :]
            acc = mm(rows(0), t_ref[0])
            for dy in range(1, k):
                acc = acc + mm(rows(dy), t_ref[dy])
        # Fused BatchNorm (folded, tiled per pixel) + ReLU epilogue.
        a = jnp.maximum(acc * sb_ref[0:1, :] + sb_ref[1:2, :], 0.0)
        if g['pool']:
            # 2x2 max-pool = exact 0/1 row/column selection matmuls + max.
            v = jnp.maximum(mm(pv_ref[0], a), mm(pv_ref[1], a))
            a = jnp.maximum(mm(v, ph_ref[0]), mm(v, ph_ref[1]))
        cur = a

    # Linear(64, 10, bias=False) + log_softmax on the (fh, fw*C) feature map.
    sref = scratch[si]
    sref[...] = cur
    logits = mm(sref[0:1, :], fcw_ref[0])
    for y in range(1, fh):
        logits = logits + mm(sref[y:y + 1, :], fcw_ref[y])
    m = jnp.max(logits, axis=-1, keepdims=True)
    lse = m + jnp.log(jnp.sum(jnp.exp(logits - m), axis=-1, keepdims=True))
    o_ref[0] = (logits - lse).astype(o_ref.dtype)


@jax.jit
def model3_forward(x_nchw, packed):
    n = x_nchw.shape[0]
    x = x_nchw.reshape(n, _IN_HW, _IN_HW).astype(jnp.float32)   # Cin == 1

    in_specs = [pl.BlockSpec((1, _IN_HW, _IN_HW), lambda i: (i, 0, 0))]
    for arr in packed:   # weights: full-array blocks, constant index maps
        in_specs.append(pl.BlockSpec(arr.shape, lambda i, nd=arr.ndim: (0,) * nd))

    scratch_shapes = []
    for li, g in enumerate(_GEOMS):
        if li > 0 and g['k'] == 3:       # staging buffers for 3x3 conv inputs
            scratch_shapes.append(
                pltpu.VMEM((g['h_in'], g['w_in'] * g['cin']), jnp.float32))
    fh, fw = _FINAL_HW
    scratch_shapes.append(
        pltpu.VMEM((fh, fw * _GEOMS[-1]['cout']), jnp.float32))   # FC input

    out = pl.pallas_call(
        _fused_forward_kernel,
        out_shape=jax.ShapeDtypeStruct((n, 1, _NUM_CLASSES), jnp.float32),
        grid=(n,),
        in_specs=in_specs,
        out_specs=pl.BlockSpec((1, 1, _NUM_CLASSES), lambda i: (i, 0, 0)),
        scratch_shapes=scratch_shapes,
        compiler_params=pltpu.CompilerParams(
            dimension_semantics=("parallel",)),
    )(x, *packed)
    return out.reshape(n, _NUM_CLASSES)


# ----------------------------------------------------------------------------
# One-time parameter packing (pure numpy at init; no per-call glue).
# ----------------------------------------------------------------------------
def _toeplitz(w, w_in):
    """(kh,kw,cin,cout) conv weight -> (kh, w_in*cin, wo*cout) row matmuls."""
    kh, kw, cin, cout = w.shape
    wo = w_in - kw + 1
    t = np.zeros((kh, w_in * cin, wo * cout), np.float32)
    for dy in range(kh):
        for dx in range(kw):
            for x in range(wo):
                t[dy, (x + dx) * cin:(x + dx + 1) * cin,
                  x * cout:(x + 1) * cout] = w[dy, dx]
    return t


def _pool_selectors(h_in, w_in, c):
    """0/1 selection matrices for an exact 2x2 max-pool via matmuls."""
    h_out, w_out = h_in // 2, w_in // 2
    pv = np.zeros((2, h_out, h_in), np.float32)
    ph = np.zeros((2, w_in * c, w_out * c), np.float32)
    for r in range(2):
        for y in range(h_out):
            pv[r, y, 2 * y + r] = 1.0
        for x in range(w_out):
            for ch in range(c):
                ph[r, (2 * x + r) * c + ch, x * c + ch] = 1.0
    return pv, ph


def _pack_fc(fc_w, h, w, c):
    """Rearrange (C*H*W, 10) FC weight for the (H, W*C) activation layout."""
    n_cls = fc_w.shape[1]
    fcw = np.zeros((h, w * c, n_cls), np.float32)
    for y in range(h):
        for x in range(w):
            for ch in range(c):
                fcw[y, x * c + ch, :] = fc_w[ch * h * w + y * w + x, :]
    return fcw


def pack_params(params):
    convs, fc_w = params
    ops = []
    for g, (w, scale, bias) in zip(_GEOMS, convs):
        w_np = np.asarray(w, np.float32)
        s_np = np.asarray(scale, np.float32)
        b_np = np.asarray(bias, np.float32)
        ops.append(jnp.asarray(_toeplitz(w_np, g['w_in'])))
        ops.append(jnp.asarray(np.stack([np.tile(s_np, g['w_out']),
                                         np.tile(b_np, g['w_out'])])))
        if g['pool']:
            pv, ph = _pool_selectors(g['h_out'], g['w_out'], g['cout'])
            ops.append(jnp.asarray(pv))
            ops.append(jnp.asarray(ph))
    fh, fw = _FINAL_HW
    ops.append(jnp.asarray(_pack_fc(np.asarray(fc_w, np.float32),
                                    fh, fw, _GEOMS[-1]['cout'])))
    return tuple(ops)


def init_params(key):
    """Deterministic synthetic parameters (shapes from Model3.__init__)."""
    keys = jax.random.split(key, 2 * len(_CONV_DEFS) + 1)
    eps = 1e-5
    convs = []
    for idx, (cin, cout, k) in enumerate(_CONV_DEFS):
        w = 0.1 * jax.random.normal(keys[2 * idx], (k, k, cin, cout), jnp.float32)
        gamma = 1.0 + 0.1 * jax.random.normal(keys[2 * idx + 1], (cout,), jnp.float32)
        beta = 0.05 * jnp.arange(cout, dtype=jnp.float32)
        run_mean = jnp.zeros((cout,), jnp.float32)   # fresh BN running stats
        run_var = jnp.ones((cout,), jnp.float32)
        scale = gamma / jnp.sqrt(run_var + eps)      # fold eval-mode BN
        bias = beta - run_mean * scale
        convs.append((w, scale, bias))
    fc_w = 0.1 * jax.random.normal(keys[-1], (64, 10), jnp.float32)
    return convs, fc_w


def reference_forward(x_nchw, params):
    """Pure-JAX reference (no Pallas) for the correctness check."""
    convs, fc_w = params
    x = jnp.transpose(x_nchw, (0, 2, 3, 1))
    for (w, s, b), do_pool in zip(convs, _POOL_AFTER):
        x = lax.conv_general_dilated(
            x, w, (1, 1), "VALID", dimension_numbers=("NHWC", "HWIO", "NHWC"))
        x = jnp.maximum(x * s + b, 0.0)
        if do_pool:
            x = lax.reduce_window(x, -jnp.inf, lax.max,
                                  (1, 2, 2, 1), (1, 2, 2, 1), "VALID")
    n = x.shape[0]
    feat = jnp.transpose(x, (0, 3, 1, 2)).reshape(n, -1)
    return jax.nn.log_softmax(feat @ fc_w, axis=-1)


if __name__ == "__main__":
    key = jax.random.PRNGKey(0)
    k_x, k_p = jax.random.split(key)
    # Input matching the PyTorch module (MNIST-style): (N=2, C=1, H=28, W=28).
    x = jax.random.normal(k_x, (2, 1, 28, 28), jnp.float32)
    params = init_params(k_p)
    packed = pack_params(params)

    out = jax.block_until_ready(model3_forward(x, packed))
    assert out.shape == (2, 10), out.shape

    ref = jax.block_until_ready(reference_forward(x, params))
    assert np.allclose(np.asarray(out), np.asarray(ref), atol=2e-4, rtol=2e-4), (
        np.max(np.abs(np.asarray(out) - np.asarray(ref))))

    print("KERNEL_OK")
</pallas_src>

<mosaic_0001>
module attributes {stable_mosaic.version = 11 : i64} {
  func.func @_fused_forward_kernel(%arg0: i32, %arg1: memref<1x28x28xf32, #tpu.memory_space<vmem>>, %arg2: memref<3x28x208xf32, #tpu.memory_space<vmem>>, %arg3: memref<2x208xf32, #tpu.memory_space<vmem>>, %arg4: memref<3x208x480xf32, #tpu.memory_space<vmem>>, %arg5: memref<2x480xf32, #tpu.memory_space<vmem>>, %arg6: memref<2x12x24xf32, #tpu.memory_space<vmem>>, %arg7: memref<2x480x240xf32, #tpu.memory_space<vmem>>, %arg8: memref<1x240x120xf32, #tpu.memory_space<vmem>>, %arg9: memref<2x120xf32, #tpu.memory_space<vmem>>, %arg10: memref<3x120x80xf32, #tpu.memory_space<vmem>>, %arg11: memref<2x80xf32, #tpu.memory_space<vmem>>, %arg12: memref<3x80x160xf32, #tpu.memory_space<vmem>>, %arg13: memref<2x160xf32, #tpu.memory_space<vmem>>, %arg14: memref<2x4x8xf32, #tpu.memory_space<vmem>>, %arg15: memref<2x160x80xf32, #tpu.memory_space<vmem>>, %arg16: memref<3x80x32xf32, #tpu.memory_space<vmem>>, %arg17: memref<2x32xf32, #tpu.memory_space<vmem>>, %arg18: memref<2x32x10xf32, #tpu.memory_space<vmem>>, %arg19: memref<1x1x10xf32, #tpu.memory_space<vmem>>, %arg20: memref<26x208xf32, #tpu.memory_space<vmem>>, %arg21: memref<12x120xf32, #tpu.memory_space<vmem>>, %arg22: memref<10x80xf32, #tpu.memory_space<vmem>>, %arg23: memref<4x80xf32, #tpu.memory_space<vmem>>, %arg24: memref<2x32xf32, #tpu.memory_space<vmem>>) attributes {dimension_semantics = [#tpu.dimension_semantics<parallel>], iteration_bounds = array<i64: 2>, scalar_prefetch = 0 : i64, scratch_operands = 5 : i64, tpu.core_type = #tpu.core_type<tc>, window_params = [{transform_indices = @transform_0, window_bounds = array<i64: 1, 28, 28>}, {pipeline_mode = #tpu.pipeline_mode<synchronous>, transform_indices = @transform_1, window_bounds = array<i64: 3, 28, 208>}, {pipeline_mode = #tpu.pipeline_mode<synchronous>, transform_indices = @transform_2, window_bounds = array<i64: 2, 208>}, {pipeline_mode = #tpu.pipeline_mode<synchronous>, transform_indices = @transform_3, window_bounds = array<i64: 3, 208, 480>}, {pipeline_mode = #tpu.pipeline_mode<synchronous>, transform_indices = @transform_4, window_bounds = array<i64: 2, 480>}, {pipeline_mode = #tpu.pipeline_mode<synchronous>, transform_indices = @transform_5, window_bounds = array<i64: 2, 12, 24>}, {pipeline_mode = #tpu.pipeline_mode<synchronous>, transform_indices = @transform_6, window_bounds = array<i64: 2, 480, 240>}, {pipeline_mode = #tpu.pipeline_mode<synchronous>, transform_indices = @transform_7, window_bounds = array<i64: 1, 240, 120>}, {pipeline_mode = #tpu.pipeline_mode<synchronous>, transform_indices = @transform_8, window_bounds = array<i64: 2, 120>}, {pipeline_mode = #tpu.pipeline_mode<synchronous>, transform_indices = @transform_9, window_bounds = array<i64: 3, 120, 80>}, {pipeline_mode = #tpu.pipeline_mode<synchronous>, transform_indices = @transform_10, window_bounds = array<i64: 2, 80>}, {pipeline_mode = #tpu.pipeline_mode<synchronous>, transform_indices = @transform_11, window_bounds = array<i64: 3, 80, 160>}, {pipeline_mode = #tpu.pipeline_mode<synchronous>, transform_indices = @transform_12, window_bounds = array<i64: 2, 160>}, {pipeline_mode = #tpu.pipeline_mode<synchronous>, transform_indices = @transform_13, window_bounds = array<i64: 2, 4, 8>}, {pipeline_mode = #tpu.pipeline_mode<synchronous>, transform_indices = @transform_14, window_bounds = array<i64: 2, 160, 80>}, {pipeline_mode = #tpu.pipeline_mode<synchronous>, transform_indices = @transform_15, window_bounds = array<i64: 3, 80, 32>}, {pipeline_mode = #tpu.pipeline_mode<synchronous>, transform_indices = @transform_16, window_bounds = array<i64: 2, 32>}, {pipeline_mode = #tpu.pipeline_mode<synchronous>, transform_indices = @transform_17, window_bounds = array<i64: 2, 32, 10>}, {transform_indices = @transform_18, window_bounds = array<i64: 1, 1, 10>}]} {
    %c0 = arith.constant 0 : index
    %c0_0 = arith.constant 0 : index
    %c0_1 = arith.constant 0 : index
    %0 = vector.load %arg1[%c0, %c0_0, %c0_1] : memref<1x28x28xf32, #tpu.memory_space<vmem>>, vector<1x26x28xf32>
    %1 = vector.shape_cast %0 : vector<1x26x28xf32> to vector<26x28xf32>
    %c0_2 = arith.constant 0 : index
    %c0_3 = arith.constant 0 : index
    %c0_4 = arith.constant 0 : index
    %2 = vector.load %arg2[%c0_2, %c0_3, %c0_4] : memref<3x28x208xf32, #tpu.memory_space<vmem>>, vector<1x28x208xf32>
    %3 = vector.shape_cast %2 : vector<1x28x208xf32> to vector<28x208xf32>
    %cst = arith.constant dense<0.000000e+00> : vector<26x208xf32>
    %4 = tpu.matmul %1, %3, %cst {dimension_numbers = #tpu.dot_dimension_numbers<[1], [0], [0], [1], [0, 0, 1, 1], [], []>} : vector<26x28xf32>, vector<28x208xf32>, vector<26x208xf32> -> vector<26x208xf32>
    %c0_5 = arith.constant 0 : index
    %c1 = arith.constant 1 : index
    %c0_6 = arith.constant 0 : index
    %5 = vector.load %arg1[%c0_5, %c1, %c0_6] : memref<1x28x28xf32, #tpu.memory_space<vmem>>, vector<1x26x28xf32>
    %6 = vector.shape_cast %5 : vector<1x26x28xf32> to vector<26x28xf32>
    %c1_7 = arith.constant 1 : index
    %c0_8 = arith.constant 0 : index
    %c0_9 = arith.constant 0 : index
    %7 = vector.load %arg2[%c1_7, %c0_8, %c0_9] : memref<3x28x208xf32, #tpu.memory_space<vmem>>, vector<1x28x208xf32>
    %8 = vector.shape_cast %7 : vector<1x28x208xf32> to vector<28x208xf32>
    %cst_10 = arith.constant dense<0.000000e+00> : vector<26x208xf32>
    %9 = tpu.matmul %6, %8, %cst_10 {dimension_numbers = #tpu.dot_dimension_numbers<[1], [0], [0], [1], [0, 0, 1, 1], [], []>} : vector<26x28xf32>, vector<28x208xf32>, vector<26x208xf32> -> vector<26x208xf32>
    %10 = arith.addf %4, %9 : vector<26x208xf32>
    %c0_11 = arith.constant 0 : index
    %c2 = arith.constant 2 : index
    %c0_12 = arith.constant 0 : index
    %11 = vector.load %arg1[%c0_11, %c2, %c0_12] : memref<1x28x28xf32, #tpu.memory_space<vmem>>, vector<1x26x28xf32>
    %12 = vector.shape_cast %11 : vector<1x26x28xf32> to vector<26x28xf32>
    %c2_13 = arith.constant 2 : index
    %c0_14 = arith.constant 0 : index
    %c0_15 = arith.constant 0 : index
    %13 = vector.load %arg2[%c2_13, %c0_14, %c0_15] : memref<3x28x208xf32, #tpu.memory_space<vmem>>, vector<1x28x208xf32>
    %14 = vector.shape_cast %13 : vector<1x28x208xf32> to vector<28x208xf32>
    %cst_16 = arith.constant dense<0.000000e+00> : vector<26x208xf32>
    %15 = tpu.matmul %12, %14, %cst_16 {dimension_numbers = #tpu.dot_dimension_numbers<[1], [0], [0], [1], [0, 0, 1, 1], [], []>} : vector<26x28xf32>, vector<28x208xf32>, vector<26x208xf32> -> vector<26x208xf32>
    %16 = arith.addf %10, %15 : vector<26x208xf32>
    %c0_17 = arith.constant 0 : index
    %c0_18 = arith.constant 0 : index
    %17 = vector.load %arg3[%c0_17, %c0_18] : memref<2x208xf32, #tpu.memory_space<vmem>>, vector<1x208xf32>
    %18 = vector.broadcast %17 : vector<1x208xf32> to vector<26x208xf32>
    %19 = arith.mulf %16, %18 : vector<26x208xf32>
    %c1_19 = arith.constant 1 : index
    %c0_20 = arith.constant 0 : index
    %20 = vector.load %arg3[%c1_19, %c0_20] : memref<2x208xf32, #tpu.memory_space<vmem>>, vector<1x208xf32>
    %21 = vector.broadcast %20 : vector<1x208xf32> to vector<26x208xf32>
    %22 = arith.addf %19, %21 : vector<26x208xf32>
    %cst_21 = arith.constant 0.000000e+00 : f32
    %23 = vector.broadcast %cst_21 : f32 to vector<26x208xf32>
    %24 = arith.maximumf %22, %23 : vector<26x208xf32>
    %c0_22 = arith.constant 0 : index
    %c0_23 = arith.constant 0 : index
    %25 = vector.load %arg20[%c0_22, %c0_23] : memref<26x208xf32, #tpu.memory_space<vmem>>, vector<26x208xf32>
    tpu.vector_store %arg20[%c0_22, %c0_23], %24 {strides = array<i32>} : memref<26x208xf32, #tpu.memory_space<vmem>>, vector<26x208xf32>,
    %c0_24 = arith.constant 0 : index
    %c0_25 = arith.constant 0 : index
    %26 = vector.load %arg20[%c0_24, %c0_25] : memref<26x208xf32, #tpu.memory_space<vmem>>, vector<24x208xf32>
    %c0_26 = arith.constant 0 : index
    %c0_27 = arith.constant 0 : index
    %c0_28 = arith.constant 0 : index
    %27 = vector.load %arg4[%c0_26, %c0_27, %c0_28] : memref<3x208x480xf32, #tpu.memory_space<vmem>>, vector<1x208x480xf32>
    %28 = vector.shape_cast %27 : vector<1x208x480xf32> to vector<208x480xf32>
    %cst_29 = arith.constant dense<0.000000e+00> : vector<24x480xf32>
    %29 = tpu.matmul %26, %28, %cst_29 {dimension_numbers = #tpu.dot_dimension_numbers<[1], [0], [0], [1], [0, 0, 1, 1], [], []>} : vector<24x208xf32>, vector<208x480xf32>, vector<24x480xf32> -> vector<24x480xf32>
    %c1_30 = arith.constant 1 : index
    %c0_31 = arith.constant 0 : index
    %30 = vector.load %arg20[%c1_30, %c0_31] : memref<26x208xf32, #tpu.memory_space<vmem>>, vector<24x208xf32>
    %c1_32 = arith.constant 1 : index
    %c0_33 = arith.constant 0 : index
    %c0_34 = arith.constant 0 : index
    %31 = vector.load %arg4[%c1_32, %c0_33, %c0_34] : memref<3x208x480xf32, #tpu.memory_space<vmem>>, vector<1x208x480xf32>
    %32 = vector.shape_cast %31 : vector<1x208x480xf32> to vector<208x480xf32>
    %cst_35 = arith.constant dense<0.000000e+00> : vector<24x480xf32>
    %33 = tpu.matmul %30, %32, %cst_35 {dimension_numbers = #tpu.dot_dimension_numbers<[1], [0], [0], [1], [0, 0, 1, 1], [], []>} : vector<24x208xf32>, vector<208x480xf32>, vector<24x480xf32> -> vector<24x480xf32>
    %34 = arith.addf %29, %33 : vector<24x480xf32>
    %c2_36 = arith.constant 2 : index
    %c0_37 = arith.constant 0 : index
    %35 = vector.load %arg20[%c2_36, %c0_37] : memref<26x208xf32, #tpu.memory_space<vmem>>, vector<24x208xf32>
    %c2_38 = arith.constant 2 : index
    %c0_39 = arith.constant 0 : index
    %c0_40 = arith.constant 0 : index
    %36 = vector.load %arg4[%c2_38, %c0_39, %c0_40] : memref<3x208x480xf32, #tpu.memory_space<vmem>>, vector<1x208x480xf32>
    %37 = vector.shape_cast %36 : vector<1x208x480xf32> to vector<208x480xf32>
    %cst_41 = arith.constant dense<0.000000e+00> : vector<24x480xf32>
    %38 = tpu.matmul %35, %37, %cst_41 {dimension_numbers = #tpu.dot_dimension_numbers<[1], [0], [0], [1], [0, 0, 1, 1], [], []>} : vector<24x208xf32>, vector<208x480xf32>, vector<24x480xf32> -> vector<24x480xf32>
    %39 = arith.addf %34, %38 : vector<24x480xf32>
    %c0_42 = arith.constant 0 : index
    %c0_43 = arith.constant 0 : index
    %40 = vector.load %arg5[%c0_42, %c0_43] : memref<2x480xf32, #tpu.memory_space<vmem>>, vector<1x480xf32>
    %41 = vector.broadcast %40 : vector<1x480xf32> to vector<24x480xf32>
    %42 = arith.mulf %39, %41 : vector<24x480xf32>
    %c1_44 = arith.constant 1 : index
    %c0_45 = arith.constant 0 : index
    %43 = vector.load %arg5[%c1_44, %c0_45] : memref<2x480xf32, #tpu.memory_space<vmem>>, vector<1x480xf32>
    %44 = vector.broadcast %43 : vector<1x480xf32> to vector<24x480xf32>
    %45 = arith.addf %42, %44 : vector<24x480xf32>
    %cst_46 = arith.constant 0.000000e+00 : f32
    %46 = vector.broadcast %cst_46 : f32 to vector<24x480xf32>
    %47 = arith.maximumf %45, %46 : vector<24x480xf32>
    %c0_47 = arith.constant 0 : index
    %c0_48 = arith.constant 0 : index
    %c0_49 = arith.constant 0 : index
    %48 = vector.load %arg6[%c0_47, %c0_48, %c0_49] : memref<2x12x24xf32, #tpu.memory_space<vmem>>, vector<1x12x24xf32>
    %49 = vector.shape_cast %48 : vector<1x12x24xf32> to vector<12x24xf32>
    %cst_50 = arith.constant dense<0.000000e+00> : vector<12x480xf32>
    %50 = tpu.matmul %49, %47, %cst_50 {dimension_numbers = #tpu.dot_dimension_numbers<[1], [0], [0], [1], [0, 0, 1, 1], [], []>} : vector<12x24xf32>, vector<24x480xf32>, vector<12x480xf32> -> vector<12x480xf32>
    %c1_51 = arith.constant 1 : index
    %c0_52 = arith.constant 0 : index
    %c0_53 = arith.constant 0 : index
    %51 = vector.load %arg6[%c1_51, %c0_52, %c0_53] : memref<2x12x24xf32, #tpu.memory_space<vmem>>, vector<1x12x24xf32>
    %52 = vector.shape_cast %51 : vector<1x12x24xf32> to vector<12x24xf32>
    %cst_54 = arith.constant dense<0.000000e+00> : vector<12x480xf32>
    %53 = tpu.matmul %52, %47, %cst_54 {dimension_numbers = #tpu.dot_dimension_numbers<[1], [0], [0], [1], [0, 0, 1, 1], [], []>} : vector<12x24xf32>, vector<24x480xf32>, vector<12x480xf32> -> vector<12x480xf32>
    %54 = arith.maximumf %50, %53 : vector<12x480xf32>
    %c0_55 = arith.constant 0 : index
    %c0_56 = arith.constant 0 : index
    %c0_57 = arith.constant 0 : index
    %55 = vector.load %arg7[%c0_55, %c0_56, %c0_57] : memref<2x480x240xf32, #tpu.memory_space<vmem>>, vector<1x480x240xf32>
    %56 = vector.shape_cast %55 : vector<1x480x240xf32> to vector<480x240xf32>
    %cst_58 = arith.constant dense<0.000000e+00> : vector<12x240xf32>
    %57 = tpu.matmul %54, %56, %cst_58 {dimension_numbers = #tpu.dot_dimension_numbers<[1], [0], [0], [1], [0, 0, 1, 1], [], []>} : vector<12x480xf32>, vector<480x240xf32>, vector<12x240xf32> -> vector<12x240xf32>
    %c1_59 = arith.constant 1 : index
    %c0_60 = arith.constant 0 : index
    %c0_61 = arith.constant 0 : index
    %58 = vector.load %arg7[%c1_59, %c0_60, %c0_61] : memref<2x480x240xf32, #tpu.memory_space<vmem>>, vector<1x480x240xf32>
    %59 = vector.shape_cast %58 : vector<1x480x240xf32> to vector<480x240xf32>
    %cst_62 = arith.constant dense<0.000000e+00> : vector<12x240xf32>
    %60 = tpu.matmul %54, %59, %cst_62 {dimension_numbers = #tpu.dot_dimension_numbers<[1], [0], [0], [1], [0, 0, 1, 1], [], []>} : vector<12x480xf32>, vector<480x240xf32>, vector<12x240xf32> -> vector<12x240xf32>
    %61 = arith.maximumf %57, %60 : vector<12x240xf32>
    %c0_63 = arith.constant 0 : index
    %c0_64 = arith.constant 0 : index
    %c0_65 = arith.constant 0 : index
    %62 = vector.load %arg8[%c0_63, %c0_64, %c0_65] : memref<1x240x120xf32, #tpu.memory_space<vmem>>, vector<1x240x120xf32>
    %63 = vector.shape_cast %62 : vector<1x240x120xf32> to vector<240x120xf32>
    %cst_66 = arith.constant dense<0.000000e+00> : vector<12x120xf32>
    %64 = tpu.matmul %61, %63, %cst_66 {dimension_numbers = #tpu.dot_dimension_numbers<[1], [0], [0], [1], [0, 0, 1, 1], [], []>} : vector<12x240xf32>, vector<240x120xf32>, vector<12x120xf32> -> vector<12x120xf32>
    %c0_67 = arith.constant 0 : index
    %c0_68 = arith.constant 0 : index
    %65 = vector.load %arg9[%c0_67, %c0_68] : memref<2x120xf32, #tpu.memory_space<vmem>>, vector<1x120xf32>
    %66 = vector.broadcast %65 : vector<1x120xf32> to vector<12x120xf32>
    %67 = arith.mulf %64, %66 : vector<12x120xf32>
    %c1_69 = arith.constant 1 : index
    %c0_70 = arith.constant 0 : index
    %68 = vector.load %arg9[%c1_69, %c0_70] : memref<2x120xf32, #tpu.memory_space<vmem>>, vector<1x120xf32>
    %69 = vector.broadcast %68 : vector<1x120xf32> to vector<12x120xf32>
    %70 = arith.addf %67, %69 : vector<12x120xf32>
    %cst_71 = arith.constant 0.000000e+00 : f32
    %71 = vector.broadcast %cst_71 : f32 to vector<12x120xf32>
    %72 = arith.maximumf %70, %71 : vector<12x120xf32>
    %c0_72 = arith.constant 0 : index
    %c0_73 = arith.constant 0 : index
    %73 = vector.load %arg21[%c0_72, %c0_73] : memref<12x120xf32, #tpu.memory_space<vmem>>, vector<12x120xf32>
    tpu.vector_store %arg21[%c0_72, %c0_73], %72 {strides = array<i32>} : memref<12x120xf32, #tpu.memory_space<vmem>>, vector<12x120xf32>,
    %c0_74 = arith.constant 0 : index
    %c0_75 = arith.constant 0 : index
    %74 = vector.load %arg21[%c0_74, %c0_75] : memref<12x120xf32, #tpu.memory_space<vmem>>, vector<10x120xf32>
    %c0_76 = arith.constant 0 : index
    %c0_77 = arith.constant 0 : index
    %c0_78 = arith.constant 0 : index
    %75 = vector.load %arg10[%c0_76, %c0_77, %c0_78] : memref<3x120x80xf32, #tpu.memory_space<vmem>>, vector<1x120x80xf32>
    %76 = vector.shape_cast %75 : vector<1x120x80xf32> to vector<120x80xf32>
    %cst_79 = arith.constant dense<0.000000e+00> : vector<10x80xf32>
    %77 = tpu.matmul %74, %76, %cst_79 {dimension_numbers = #tpu.dot_dimension_numbers<[1], [0], [0], [1], [0, 0, 1, 1], [], []>} : vector<10x120xf32>, vector<120x80xf32>, vector<10x80xf32> -> vector<10x80xf32>
    %c1_80 = arith.constant 1 : index
    %c0_81 = arith.constant 0 : index
    %78 = vector.load %arg21[%c1_80, %c0_81] : memref<12x120xf32, #tpu.memory_space<vmem>>, vector<10x120xf32>
    %c1_82 = arith.constant 1 : index
    %c0_83 = arith.constant 0 : index
    %c0_84 = arith.constant 0 : index
    %79 = vector.load %arg10[%c1_82, %c0_83, %c0_84] : memref<3x120x80xf32, #tpu.memory_space<vmem>>, vector<1x120x80xf32>
    %80 = vector.shape_cast %79 : vector<1x120x80xf32> to vector<120x80xf32>
    %cst_85 = arith.constant dense<0.000000e+00> : vector<10x80xf32>
    %81 = tpu.matmul %78, %80, %cst_85 {dimension_numbers = #tpu.dot_dimension_numbers<[1], [0], [0], [1], [0, 0, 1, 1], [], []>} : vector<10x120xf32>, vector<120x80xf32>, vector<10x80xf32> -> vector<10x80xf32>
    %82 = arith.addf %77, %81 : vector<10x80xf32>
    %c2_86 = arith.constant 2 : index
    %c0_87 = arith.constant 0 : index
    %83 = vector.load %arg21[%c2_86, %c0_87] : memref<12x120xf32, #tpu.memory_space<vmem>>, vector<10x120xf32>
    %c2_88 = arith.constant 2 : index
    %c0_89 = arith.constant 0 : index
    %c0_90 = arith.constant 0 : index
    %84 = vector.load %arg10[%c2_88, %c0_89, %c0_90] : memref<3x120x80xf32, #tpu.memory_space<vmem>>, vector<1x120x80xf32>
    %85 = vector.shape_cast %84 : vector<1x120x80xf32> to vector<120x80xf32>
    %cst_91 = arith.constant dense<0.000000e+00> : vector<10x80xf32>
    %86 = tpu.matmul %83, %85, %cst_91 {dimension_numbers = #tpu.dot_dimension_numbers<[1], [0], [0], [1], [0, 0, 1, 1], [], []>} : vector<10x120xf32>, vector<120x80xf32>, vector<10x80xf32> -> vector<10x80xf32>
    %87 = arith.addf %82, %86 : vector<10x80xf32>
    %c0_92 = arith.constant 0 : index
    %c0_93 = arith.constant 0 : index
    %88 = vector.load %arg11[%c0_92, %c0_93] : memref<2x80xf32, #tpu.memory_space<vmem>>, vector<1x80xf32>
    %89 = vector.broadcast %88 : vector<1x80xf32> to vector<10x80xf32>
    %90 = arith.mulf %87, %89 : vector<10x80xf32>
    %c1_94 = arith.constant 1 : index
    %c0_95 = arith.constant 0 : index
    %91 = vector.load %arg11[%c1_94, %c0_95] : memref<2x80xf32, #tpu.memory_space<vmem>>, vector<1x80xf32>
    %92 = vector.broadcast %91 : vector<1x80xf32> to vector<10x80xf32>
    %93 = arith.addf %90, %92 : vector<10x80xf32>
    %cst_96 = arith.constant 0.000000e+00 : f32
    %94 = vector.broadcast %cst_96 : f32 to vector<10x80xf32>
    %95 = arith.maximumf %93, %94 : vector<10x80xf32>
    %c0_97 = arith.constant 0 : index
    %c0_98 = arith.constant 0 : index
    %96 = vector.load %arg22[%c0_97, %c0_98] : memref<10x80xf32, #tpu.memory_space<vmem>>, vector<10x80xf32>
    tpu.vector_store %arg22[%c0_97, %c0_98], %95 {strides = array<i32>} : memref<10x80xf32, #tpu.memory_space<vmem>>, vector<10x80xf32>,
    %c0_99 = arith.constant 0 : index
    %c0_100 = arith.constant 0 : index
    %97 = vector.load %arg22[%c0_99, %c0_100] : memref<10x80xf32, #tpu.memory_space<vmem>>, vector<8x80xf32>
    %c0_101 = arith.constant 0 : index
    %c0_102 = arith.constant 0 : index
    %c0_103 = arith.constant 0 : index
    %98 = vector.load %arg12[%c0_101, %c0_102, %c0_103] : memref<3x80x160xf32, #tpu.memory_space<vmem>>, vector<1x80x160xf32>
    %99 = vector.shape_cast %98 : vector<1x80x160xf32> to vector<80x160xf32>
    %cst_104 = arith.constant dense<0.000000e+00> : vector<8x160xf32>
    %100 = tpu.matmul %97, %99, %cst_104 {dimension_numbers = #tpu.dot_dimension_numbers<[1], [0], [0], [1], [0, 0, 1, 1], [], []>} : vector<8x80xf32>, vector<80x160xf32>, vector<8x160xf32> -> vector<8x160xf32>
    %c1_105 = arith.constant 1 : index
    %c0_106 = arith.constant 0 : index
    %101 = vector.load %arg22[%c1_105, %c0_106] : memref<10x80xf32, #tpu.memory_space<vmem>>, vector<8x80xf32>
    %c1_107 = arith.constant 1 : index
    %c0_108 = arith.constant 0 : index
    %c0_109 = arith.constant 0 : index
    %102 = vector.load %arg12[%c1_107, %c0_108, %c0_109] : memref<3x80x160xf32, #tpu.memory_space<vmem>>, vector<1x80x160xf32>
    %103 = vector.shape_cast %102 : vector<1x80x160xf32> to vector<80x160xf32>
    %cst_110 = arith.constant dense<0.000000e+00> : vector<8x160xf32>
    %104 = tpu.matmul %101, %103, %cst_110 {dimension_numbers = #tpu.dot_dimension_numbers<[1], [0], [0], [1], [0, 0, 1, 1], [], []>} : vector<8x80xf32>, vector<80x160xf32>, vector<8x160xf32> -> vector<8x160xf32>
    %105 = arith.addf %100, %104 : vector<8x160xf32>
    %c2_111 = arith.constant 2 : index
    %c0_112 = arith.constant 0 : index
    %106 = vector.load %arg22[%c2_111, %c0_112] : memref<10x80xf32, #tpu.memory_space<vmem>>, vector<8x80xf32>
    %c2_113 = arith.constant 2 : index
    %c0_114 = arith.constant 0 : index
    %c0_115 = arith.constant 0 : index
    %107 = vector.load %arg12[%c2_113, %c0_114, %c0_115] : memref<3x80x160xf32, #tpu.memory_space<vmem>>, vector<1x80x160xf32>
    %108 = vector.shape_cast %107 : vector<1x80x160xf32> to vector<80x160xf32>
    %cst_116 = arith.constant dense<0.000000e+00> : vector<8x160xf32>
    %109 = tpu.matmul %106, %108, %cst_116 {dimension_numbers = #tpu.dot_dimension_numbers<[1], [0], [0], [1], [0, 0, 1, 1], [], []>} : vector<8x80xf32>, vector<80x160xf32>, vector<8x160xf32> -> vector<8x160xf32>
    %110 = arith.addf %105, %109 : vector<8x160xf32>
    %c0_117 = arith.constant 0 : index
    %c0_118 = arith.constant 0 : index
    %111 = vector.load %arg13[%c0_117, %c0_118] : memref<2x160xf32, #tpu.memory_space<vmem>>, vector<1x160xf32>
    %112 = vector.broadcast %111 : vector<1x160xf32> to vector<8x160xf32>
    %113 = arith.mulf %110, %112 : vector<8x160xf32>
    %c1_119 = arith.constant 1 : index
    %c0_120 = arith.constant 0 : index
    %114 = vector.load %arg13[%c1_119, %c0_120] : memref<2x160xf32, #tpu.memory_space<vmem>>, vector<1x160xf32>
    %115 = vector.broadcast %114 : vector<1x160xf32> to vector<8x160xf32>
    %116 = arith.addf %113, %115 : vector<8x160xf32>
    %cst_121 = arith.constant 0.000000e+00 : f32
    %117 = vector.broadcast %cst_121 : f32 to vector<8x160xf32>
    %118 = arith.maximumf %116, %117 : vector<8x160xf32>
    %c0_122 = arith.constant 0 : index
    %c0_123 = arith.constant 0 : index
    %c0_124 = arith.constant 0 : index
    %119 = vector.load %arg14[%c0_122, %c0_123, %c0_124] : memref<2x4x8xf32, #tpu.memory_space<vmem>>, vector<1x4x8xf32>
    %120 = vector.shape_cast %119 : vector<1x4x8xf32> to vector<4x8xf32>
    %cst_125 = arith.constant dense<0.000000e+00> : vector<4x160xf32>
    %121 = tpu.matmul %120, %118, %cst_125 {dimension_numbers = #tpu.dot_dimension_numbers<[1], [0], [0], [1], [0, 0, 1, 1], [], []>} : vector<4x8xf32>, vector<8x160xf32>, vector<4x160xf32> -> vector<4x160xf32>
    %c1_126 = arith.constant 1 : index
    %c0_127 = arith.constant 0 : index
    %c0_128 = arith.constant 0 : index
    %122 = vector.load %arg14[%c1_126, %c0_127, %c0_128] : memref<2x4x8xf32, #tpu.memory_space<vmem>>, vector<1x4x8xf32>
    %123 = vector.shape_cast %122 : vector<1x4x8xf32> to vector<4x8xf32>
    %cst_129 = arith.constant dense<0.000000e+00> : vector<4x160xf32>
    %124 = tpu.matmul %123, %118, %cst_129 {dimension_numbers = #tpu.dot_dimension_numbers<[1], [0], [0], [1], [0, 0, 1, 1], [], []>} : vector<4x8xf32>, vector<8x160xf32>, vector<4x160xf32> -> vector<4x160xf32>
    %125 = arith.maximumf %121, %124 : vector<4x160xf32>
    %c0_130 = arith.constant 0 : index
    %c0_131 = arith.constant 0 : index
    %c0_132 = arith.constant 0 : index
    %126 = vector.load %arg15[%c0_130, %c0_131, %c0_132] : memref<2x160x80xf32, #tpu.memory_space<vmem>>, vector<1x160x80xf32>
    %127 = vector.shape_cast %126 : vector<1x160x80xf32> to vector<160x80xf32>
    %cst_133 = arith.constant dense<0.000000e+00> : vector<4x80xf32>
    %128 = tpu.matmul %125, %127, %cst_133 {dimension_numbers = #tpu.dot_dimension_numbers<[1], [0], [0], [1], [0, 0, 1, 1], [], []>} : vector<4x160xf32>, vector<160x80xf32>, vector<4x80xf32> -> vector<4x80xf32>
    %c1_134 = arith.constant 1 : index
    %c0_135 = arith.constant 0 : index
    %c0_136 = arith.constant 0 : index
    %129 = vector.load %arg15[%c1_134, %c0_135, %c0_136] : memref<2x160x80xf32, #tpu.memory_space<vmem>>, vector<1x160x80xf32>
    %130 = vector.shape_cast %129 : vector<1x160x80xf32> to vector<160x80xf32>
    %cst_137 = arith.constant dense<0.000000e+00> : vector<4x80xf32>
    %131 = tpu.matmul %125, %130, %cst_137 {dimension_numbers = #tpu.dot_dimension_numbers<[1], [0], [0], [1], [0, 0, 1, 1], [], []>} : vector<4x160xf32>, vector<160x80xf32>, vector<4x80xf32> -> vector<4x80xf32>
    %132 = arith.maximumf %128, %131 : vector<4x80xf32>
    %c0_138 = arith.constant 0 : index
    %c0_139 = arith.constant 0 : index
    %133 = vector.load %arg23[%c0_138, %c0_139] : memref<4x80xf32, #tpu.memory_space<vmem>>, vector<4x80xf32>
    tpu.vector_store %arg23[%c0_138, %c0_139], %132 {strides = array<i32>} : memref<4x80xf32, #tpu.memory_space<vmem>>, vector<4x80xf32>,
    %c0_140 = arith.constant 0 : index
    %c0_141 = arith.constant 0 : index
    %134 = vector.load %arg23[%c0_140, %c0_141] : memref<4x80xf32, #tpu.memory_space<vmem>>, vector<2x80xf32>
    %c0_142 = arith.constant 0 : index
    %c0_143 = arith.constant 0 : index
    %c0_144 = arith.constant 0 : index
    %135 = vector.load %arg16[%c0_142, %c0_143, %c0_144] : memref<3x80x32xf32, #tpu.memory_space<vmem>>, vector<1x80x32xf32>
    %136 = vector.shape_cast %135 : vector<1x80x32xf32> to vector<80x32xf32>
    %cst_145 = arith.constant dense<0.000000e+00> : vector<2x32xf32>
    %137 = tpu.matmul %134, %136, %cst_145 {dimension_numbers = #tpu.dot_dimension_numbers<[1], [0], [0], [1], [0, 0, 1, 1], [], []>} : vector<2x80xf32>, vector<80x32xf32>, vector<2x32xf32> -> vector<2x32xf32>
    %c1_146 = arith.constant 1 : index
    %c0_147 = arith.constant 0 : index
    %138 = vector.load %arg23[%c1_146, %c0_147] : memref<4x80xf32, #tpu.memory_space<vmem>>, vector<2x80xf32>
    %c1_148 = arith.constant 1 : index
    %c0_149 = arith.constant 0 : index
    %c0_150 = arith.constant 0 : index
    %139 = vector.load %arg16[%c1_148, %c0_149, %c0_150] : memref<3x80x32xf32, #tpu.memory_space<vmem>>, vector<1x80x32xf32>
    %140 = vector.shape_cast %139 : vector<1x80x32xf32> to vector<80x32xf32>
    %cst_151 = arith.constant dense<0.000000e+00> : vector<2x32xf32>
    %141 = tpu.matmul %138, %140, %cst_151 {dimension_numbers = #tpu.dot_dimension_numbers<[1], [0], [0], [1], [0, 0, 1, 1], [], []>} : vector<2x80xf32>, vector<80x32xf32>, vector<2x32xf32> -> vector<2x32xf32>
    %142 = arith.addf %137, %141 : vector<2x32xf32>
    %c2_152 = arith.constant 2 : index
    %c0_153 = arith.constant 0 : index
    %143 = vector.load %arg23[%c2_152, %c0_153] : memref<4x80xf32, #tpu.memory_space<vmem>>, vector<2x80xf32>
    %c2_154 = arith.constant 2 : index
    %c0_155 = arith.constant 0 : index
    %c0_156 = arith.constant 0 : index
    %144 = vector.load %arg16[%c2_154, %c0_155, %c0_156] : memref<3x80x32xf32, #tpu.memory_space<vmem>>, vector<1x80x32xf32>
    %145 = vector.shape_cast %144 : vector<1x80x32xf32> to vector<80x32xf32>
    %cst_157 = arith.constant dense<0.000000e+00> : vector<2x32xf32>
    %146 = tpu.matmul %143, %145, %cst_157 {dimension_numbers = #tpu.dot_dimension_numbers<[1], [0], [0], [1], [0, 0, 1, 1], [], []>} : vector<2x80xf32>, vector<80x32xf32>, vector<2x32xf32> -> vector<2x32xf32>
    %147 = arith.addf %142, %146 : vector<2x32xf32>
    %c0_158 = arith.constant 0 : index
    %c0_159 = arith.constant 0 : index
    %148 = vector.load %arg17[%c0_158, %c0_159] : memref<2x32xf32, #tpu.memory_space<vmem>>, vector<1x32xf32>
    %149 = vector.broadcast %148 : vector<1x32xf32> to vector<2x32xf32>
    %150 = arith.mulf %147, %149 : vector<2x32xf32>
    %c1_160 = arith.constant 1 : index
    %c0_161 = arith.constant 0 : index
    %151 = vector.load %arg17[%c1_160, %c0_161] : memref<2x32xf32, #tpu.memory_space<vmem>>, vector<1x32xf32>
    %152 = vector.broadcast %151 : vector<1x32xf32> to vector<2x32xf32>
    %153 = arith.addf %150, %152 : vector<2x32xf32>
    %cst_162 = arith.constant 0.000000e+00 : f32
    %154 = vector.broadcast %cst_162 : f32 to vector<2x32xf32>
    %155 = arith.maximumf %153, %154 : vector<2x32xf32>
    %c0_163 = arith.constant 0 : index
    %c0_164 = arith.constant 0 : index
    %156 = vector.load %arg24[%c0_163, %c0_164] : memref<2x32xf32, #tpu.memory_space<vmem>>, vector<2x32xf32>
    tpu.vector_store %arg24[%c0_163, %c0_164], %155 {strides = array<i32>} : memref<2x32xf32, #tpu.memory_space<vmem>>, vector<2x32xf32>,
    %c0_165 = arith.constant 0 : index
    %c0_166 = arith.constant 0 : index
    %157 = vector.load %arg24[%c0_165, %c0_166] : memref<2x32xf32, #tpu.memory_space<vmem>>, vector<1x32xf32>
    %c0_167 = arith.constant 0 : index
    %c0_168 = arith.constant 0 : index
    %c0_169 = arith.constant 0 : index
    %158 = vector.load %arg18[%c0_167, %c0_168, %c0_169] : memref<2x32x10xf32, #tpu.memory_space<vmem>>, vector<1x32x10xf32>
    %159 = vector.shape_cast %158 : vector<1x32x10xf32> to vector<32x10xf32>
    %cst_170 = arith.constant dense<0.000000e+00> : vector<1x10xf32>
    %160 = tpu.matmul %157, %159, %cst_170 {dimension_numbers = #tpu.dot_dimension_numbers<[1], [0], [0], [1], [0, 0, 1, 1], [], []>} : vector<1x32xf32>, vector<32x10xf32>, vector<1x10xf32> -> vector<1x10xf32>
    %c1_171 = arith.constant 1 : index
    %c0_172 = arith.constant 0 : index
    %161 = vector.load %arg24[%c1_171, %c0_172] : memref<2x32xf32, #tpu.memory_space<vmem>>, vector<1x32xf32>
    %c1_173 = arith.constant 1 : index
    %c0_174 = arith.constant 0 : index
    %c0_175 = arith.constant 0 : index
    %162 = vector.load %arg18[%c1_173, %c0_174, %c0_175] : memref<2x32x10xf32, #tpu.memory_space<vmem>>, vector<1x32x10xf32>
    %163 = vector.shape_cast %162 : vector<1x32x10xf32> to vector<32x10xf32>
    %cst_176 = arith.constant dense<0.000000e+00> : vector<1x10xf32>
    %164 = tpu.matmul %161, %163, %cst_176 {dimension_numbers = #tpu.dot_dimension_numbers<[1], [0], [0], [1], [0, 0, 1, 1], [], []>} : vector<1x32xf32>, vector<32x10xf32>, vector<1x10xf32> -> vector<1x10xf32>
    %165 = arith.addf %160, %164 : vector<1x10xf32>
    %cst_177 = arith.constant dense<0xFF800000> : vector<1xf32>
    %166 = vector.multi_reduction <maximumf>, %165, %cst_177 [1] : vector<1x10xf32> to vector<1xf32>
    %167 = vector.shape_cast %166 : vector<1xf32> to vector<1x1xf32>
    %168 = vector.broadcast %167 : vector<1x1xf32> to vector<1x10xf32>
    %169 = arith.subf %165, %168 : vector<1x10xf32>
    %170 = math.exp %169 : vector<1x10xf32>
    %cst_178 = arith.constant dense<0.000000e+00> : vector<1xf32>
    %171 = vector.multi_reduction <add>, %170, %cst_178 [1] : vector<1x10xf32> to vector<1xf32>
    %172 = vector.shape_cast %171 : vector<1xf32> to vector<1x1xf32>
    %173 = math.log %172 : vector<1x1xf32>
    %174 = arith.addf %167, %173 : vector<1x1xf32>
    %175 = vector.broadcast %174 : vector<1x1xf32> to vector<1x10xf32>
    %176 = arith.subf %165, %175 : vector<1x10xf32>
    %c0_179 = arith.constant 0 : index
    %c0_180 = arith.constant 0 : index
    %c0_181 = arith.constant 0 : index
    %177 = vector.load %arg19[%c0_179, %c0_180, %c0_181] : memref<1x1x10xf32, #tpu.memory_space<vmem>>, vector<1x1x10xf32>
    %178 = vector.shape_cast %177 : vector<1x1x10xf32> to vector<1x10xf32>
    %179 = vector.shape_cast %176 : vector<1x10xf32> to vector<1x1x10xf32>
    tpu.vector_store %arg19[%c0_179, %c0_180, %c0_181], %179 {strides = array<i32>} : memref<1x1x10xf32, #tpu.memory_space<vmem>>, vector<1x1x10xf32>,
    return
  }
  func.func @transform_0(%arg0: i32) -> (i32, i32, i32) {
    %c0_i32 = arith.constant 0 : i32
    %c0_i32_0 = arith.constant 0 : i32
    %c0_i32_1 = arith.constant 0 : i32
    return %arg0, %c0_i32, %c0_i32_0 : i32, i32, i32
  }
  func.func @transform_1(%arg0: i32) -> (i32, i32, i32) {
    %c0_i32 = arith.constant 0 : i32
    %c0_i32_0 = arith.constant 0 : i32
    %c0_i32_1 = arith.constant 0 : i32
    %c0_i32_2 = arith.constant 0 : i32
    return %c0_i32, %c0_i32_0, %c0_i32_1 : i32, i32, i32
  }
  func.func @transform_2(%arg0: i32) -> (i32, i32) {
    %c0_i32 = arith.constant 0 : i32
    %c0_i32_0 = arith.constant 0 : i32
    %c0_i32_1 = arith.constant 0 : i32
    return %c0_i32, %c0_i32_0 : i32, i32
  }
  func.func @transform_3(%arg0: i32) -> (i32, i32, i32) {
    %c0_i32 = arith.constant 0 : i32
    %c0_i32_0 = arith.constant 0 : i32
    %c0_i32_1 = arith.constant 0 : i32
    %c0_i32_2 = arith.constant 0 : i32
    return %c0_i32, %c0_i32_0, %c0_i32_1 : i32, i32, i32
  }
  func.func @transform_4(%arg0: i32) -> (i32, i32) {
    %c0_i32 = arith.constant 0 : i32
    %c0_i32_0 = arith.constant 0 : i32
    %c0_i32_1 = arith.constant 0 : i32
    return %c0_i32, %c0_i32_0 : i32, i32
  }
  func.func @transform_5(%arg0: i32) -> (i32, i32, i32) {
    %c0_i32 = arith.constant 0 : i32
    %c0_i32_0 = arith.constant 0 : i32
    %c0_i32_1 = arith.constant 0 : i32
    %c0_i32_2 = arith.constant 0 : i32
    return %c0_i32, %c0_i32_0, %c0_i32_1 : i32, i32, i32
  }
  func.func @transform_6(%arg0: i32) -> (i32, i32, i32) {
    %c0_i32 = arith.constant 0 : i32
    %c0_i32_0 = arith.constant 0 : i32
    %c0_i32_1 = arith.constant 0 : i32
    %c0_i32_2 = arith.constant 0 : i32
    return %c0_i32, %c0_i32_0, %c0_i32_1 : i32, i32, i32
  }
  func.func @transform_7(%arg0: i32) -> (i32, i32, i32) {
    %c0_i32 = arith.constant 0 : i32
    %c0_i32_0 = arith.constant 0 : i32
    %c0_i32_1 = arith.constant 0 : i32
    %c0_i32_2 = arith.constant 0 : i32
    return %c0_i32, %c0_i32_0, %c0_i32_1 : i32, i32, i32
  }
  func.func @transform_8(%arg0: i32) -> (i32, i32) {
    %c0_i32 = arith.constant 0 : i32
    %c0_i32_0 = arith.constant 0 : i32
    %c0_i32_1 = arith.constant 0 : i32
    return %c0_i32, %c0_i32_0 : i32, i32
  }
  func.func @transform_9(%arg0: i32) -> (i32, i32, i32) {
    %c0_i32 = arith.constant 0 : i32
    %c0_i32_0 = arith.constant 0 : i32
    %c0_i32_1 = arith.constant 0 : i32
    %c0_i32_2 = arith.constant 0 : i32
    return %c0_i32, %c0_i32_0, %c0_i32_1 : i32, i32, i32
  }
  func.func @transform_10(%arg0: i32) -> (i32, i32) {
    %c0_i32 = arith.constant 0 : i32
    %c0_i32_0 = arith.constant 0 : i32
    %c0_i32_1 = arith.constant 0 : i32
    return %c0_i32, %c0_i32_0 : i32, i32
  }
  func.func @transform_11(%arg0: i32) -> (i32, i32, i32) {
    %c0_i32 = arith.constant 0 : i32
    %c0_i32_0 = arith.constant 0 : i32
    %c0_i32_1 = arith.constant 0 : i32
    %c0_i32_2 = arith.constant 0 : i32
    return %c0_i32, %c0_i32_0, %c0_i32_1 : i32, i32, i32
  }
  func.func @transform_12(%arg0: i32) -> (i32, i32) {
    %c0_i32 = arith.constant 0 : i32
    %c0_i32_0 = arith.constant 0 : i32
    %c0_i32_1 = arith.constant 0 : i32
    return %c0_i32, %c0_i32_0 : i32, i32
  }
  func.func @transform_13(%arg0: i32) -> (i32, i32, i32) {
    %c0_i32 = arith.constant 0 : i32
    %c0_i32_0 = arith.constant 0 : i32
    %c0_i32_1 = arith.constant 0 : i32
    %c0_i32_2 = arith.constant 0 : i32
    return %c0_i32, %c0_i32_0, %c0_i32_1 : i32, i32, i32
  }
  func.func @transform_14(%arg0: i32) -> (i32, i32, i32) {
    %c0_i32 = arith.constant 0 : i32
    %c0_i32_0 = arith.constant 0 : i32
    %c0_i32_1 = arith.constant 0 : i32
    %c0_i32_2 = arith.constant 0 : i32
    return %c0_i32, %c0_i32_0, %c0_i32_1 : i32, i32, i32
  }
  func.func @transform_15(%arg0: i32) -> (i32, i32, i32) {
    %c0_i32 = arith.constant 0 : i32
    %c0_i32_0 = arith.constant 0 : i32
    %c0_i32_1 = arith.constant 0 : i32
    %c0_i32_2 = arith.constant 0 : i32
    return %c0_i32, %c0_i32_0, %c0_i32_1 : i32, i32, i32
  }
  func.func @transform_16(%arg0: i32) -> (i32, i32) {
    %c0_i32 = arith.constant 0 : i32
    %c0_i32_0 = arith.constant 0 : i32
    %c0_i32_1 = arith.constant 0 : i32
    return %c0_i32, %c0_i32_0 : i32, i32
  }
  func.func @transform_17(%arg0: i32) -> (i32, i32, i32) {
    %c0_i32 = arith.constant 0 : i32
    %c0_i32_0 = arith.constant 0 : i32
    %c0_i32_1 = arith.constant 0 : i32
    %c0_i32_2 = arith.constant 0 : i32
    return %c0_i32, %c0_i32_0, %c0_i32_1 : i32, i32, i32
  }
  func.func @transform_18(%arg0: i32) -> (i32, i32, i32) {
    %c0_i32 = arith.constant 0 : i32
    %c0_i32_0 = arith.constant 0 : i32
    %c0_i32_1 = arith.constant 0 : i32
    return %arg0, %c0_i32, %c0_i32_0 : i32, i32, i32
  }
}

</mosaic_0001>

<bundles_post_ra>
// kernel: model3_forward.1
= control target key start
LH: loop header
LB: loop body
LE: loop exit
PB: predicated region body
PF: predicated region fallthrough
CT: control target
= control target key end

     0   :  { %s6829_s0 = inlined_call_operand.vmem [shape: f32[2,28,28], index: 0, kind: input, shape index: {}]   ;;  %s6830_s1 = inlined_call_operand.hbm [shape: f32[3,28,208], index: 1, kind: input, shape index: {}]   ;;  %s6831_s2 = inlined_call_operand.hbm [shape: f32[2,208], index: 2, kind: input, shape index: {}]   ;;  %s6832_s3 = inlined_call_operand.hbm [shape: f32[3,208,480], index: 3, kind: input, shape index: {}]   ;;  %s6833_s4 = inlined_call_operand.hbm [shape: f32[2,480], index: 4, kind: input, shape index: {}]   ;;  %s6834_s5 = inlined_call_operand.vmem [shape: f32[2,12,24], index: 5, kind: input, shape index: {}]   ;;  %s6835_s6 = inlined_call_operand.hbm [shape: f32[2,480,240], index: 6, kind: input, shape index: {}]   ;;  %s6836_s7 = inlined_call_operand.hbm [shape: f32[1,240,120], index: 7, kind: input, shape index: {}]   ;;  %s6837_s8 = inlined_call_operand.hbm [shape: f32[2,120], index: 8, kind: input, shape index: {}]   ;;  %s6838_s9 = inlined_call_operand.vmem [shape: f32[3,120,80], index: 9, kind: input, shape index: {}]   ;;  %s6839_s10 = inlined_call_operand.hbm [shape: f32[2,80], index: 10, kind: input, shape index: {}]   ;;  %s6840_s11 = inlined_call_operand.hbm [shape: f32[3,80,160], index: 11, kind: input, shape index: {}]   ;;  %s6841_s12 = inlined_call_operand.hbm [shape: f32[2,160], index: 12, kind: input, shape index: {}]   ;;  %s6842_s13 = inlined_call_operand.hbm [shape: f32[2,4,8], index: 13, kind: input, shape index: {}]   ;;  %s6843_s14 = inlined_call_operand.hbm [shape: f32[2,160,80], index: 14, kind: input, shape index: {}]   ;;  %s6844_s15 = inlined_call_operand.vmem [shape: f32[3,80,32], index: 15, kind: input, shape index: {}]   ;;  %s6845_s16 = inlined_call_operand.hbm [shape: f32[2,32], index: 16, kind: input, shape index: {}]   ;;  %s6846_s17 = inlined_call_operand.vmem [shape: f32[2,32,10], index: 17, kind: input, shape index: {}]   ;;  %s6847_s18 = inlined_call_operand.hbm [shape: f32[2,1,10], index: 18, kind: output, shape index: {}]  }
   0x1   :  { %6862 = sst [smem:[#allocation43_spill]] %s6829_s0 }
   0x2   :  { %6863 = sst [smem:[#allocation44_spill]] %s6830_s1 }
   0x3   :  { %6864 = sst [smem:[#allocation45_spill]] %s6831_s2 }
   0x4   :  { %6865 = sst [smem:[#allocation46_spill]] %s6833_s4 }
   0x5   :  { %6866 = sst [smem:[#allocation47_spill]] %s6847_s18 }
   0x6   :  { %23 = vsyncpa [#allocation8], 0 }
   0x7   :  { %24 = vsyncpa [#allocation11], 0 }
   0x8   :  { %25 = vsyncpa [#allocation14], 0 }
   0x9   :  { %26 = vsyncpa [#allocation17], 0 }
   0xa   :  { %27 = vsyncpa [#allocation20], 0 }
   0xb   :  { %28 = vsyncpa [#allocation23], 0 }
   0xc   :  { %29 = vsyncpa [#allocation26], 0 }
   0xd   :  { %30 = vsyncpa [#allocation9], 0 }
   0xe   :  { %32 = vsyncpa [#allocation9 + $0x1], 0  ;;  %s5985_s27 = smov 0   ;;  %s5987_s28 = smov 0  }
   0xf   :  { %s5989_s29 = smov 0   ;;  %s5991_s30 = smov 0  }
  0x10 LB: > { %6867 = sst [smem:[#allocation37_spill]] %s5852_s27  ;;  %s6006_s0 = sadd.s32 4294967295, %s5864_s30   ;;  %s5864_s30 = sphi %s5991_s30, %s6905_s30   ;;  %s5860_s29 = sphi %s5989_s29, %s6907_s29   ;;  %s5856_s28 = sphi %s5987_s28, %s6909_s28   ;;  %s5852_s27 = sphi %s5985_s27, %s6908_s27  }
  0x11   : > { %6868 = sst [smem:[#allocation38_spill]] %s5860_s29  ;;  %s4804_s19 = sadd.s32 4294967294, %s5864_s30  }
  0x12   : > { %6869 = sst [smem:[#allocation39_spill]] %s5864_s30  ;;  %s6010_s1 = sadd.s32 1, %s5864_s30  }
  0x13   : > { %6870 = sst [smem:[#allocation40_spill]] %s6010_s1  ;;  %s428_s20 = sadd.s32 1, %s5860_s29 }
  0x14   : > { %s425_s21 = ssub.s32 %s5864_s30, %s6010_s1  ;;  %p438_p0 = scmp.ne.s32.totalorder %s5860_s29, %s5856_s28 }
  0x15   : > { %p426_p1 = scmp.eq.s32.totalorder %s425_s21, 0  ;;  %p439_p2 = scmp.eq.s32.totalorder %s6006_s0, 1 }
  0x16   : > { %p444_p3 = scmp.ne.s32.totalorder %s5856_s28, %s5852_s27  ;;  %p445_p4 = scmp.eq.s32.totalorder %s4804_s19, 1 }
  0x17   : > { %s6021_s22 = scalar_select %p426_p1, %s5860_s29, %s428_s20  }
  0x18   : > { %p6023_p5 = por %p439_p2, %p438_p0  ;;  %p6027_p6 = por %p445_p4, %p444_p3 }
  0x19   : > { %6871 = sst [smem:[#allocation41_spill]] %s6021_s22  ;;  %p4805_p7 = scmp.ge.s32.totalorder %s5864_s30, 1 }
  0x1a   : > { %s6872_s2 = scalar_select %p6023_p5, 1, 0 }
  0x1b   : > { %s6873_s23 = scalar_select %p6027_p6, 1, 0 }
  0x1c   : > { %p452_p8 = scmp.lt.s32.totalorder %s5864_s30, 3  ;;  %p6853_p9 = scmp.eq.s32.totalorder %s6006_s0, 0 }
  0x1d   : > { %6874 = sst [smem:[#allocation42_spill]] %s6873_s23  ;;  %s5866_s25 = smov [#allocation10]  }
  0x1e   : > { %p6034_p10 = pnand %p4805_p7, %p452_p8  ;;  %s478_s26 = sshll.u32 %s5866_s25, 4  ;;  %s479_s26 = int_to_ptr.vmem [resolvable:$true] %s478_s26 }
  0x1f   : > { %s5867_s19 = smov [#allocation13]   ;;  %s5868_s22 = smov [#allocation16]  }
  0x20   : > { %s6875_s24 = scalar_select %p6034_p10, 1, 0 }
  0x21   : > { %p5308_p11 = pneg %p6034_p10  ;;  %s502_s20 = sshll.u32 %s5867_s19, 4  ;;  %s503_s20 = int_to_ptr.vmem [resolvable:$true] %s502_s20 }
  0x22   : > { %s528_s29 = sshll.u32 %s5868_s22, 4  ;;  %s5449_s25 = scalar_lea.vmem %s479_s26, 64  ;;  %s6046_s29 = int_to_ptr.vmem [resolvable:$true] %s528_s29 }
  0x23   : > { %p6042_p12 = pnand %p6853_p9, %p5308_p11  ;;  %p5450_p0 = scmp.ne.s32.totalorder %s479_s26, %s5449_s25 }
  0x24   : > { %p5457_p3 = scmp.lt.s32.totalorder %s479_s26, %s479_s26  ;;  %p5458_p4 = scmp.lt.s32.totalorder %s5449_s25, %s5449_s25 }
  0x25   : > { %p6050_p13 = pneg %p6042_p12 }
  0x26   : > { %p5459_p7 = por %p5458_p4, %p5457_p3 }
  0x27   : > { %p5452_p1 = pnand %p5450_p0, %p6050_p13 }
  0x29   : > { %p5453_p2 = pneg %p5452_p1 }
  0x2b   : > { %p5460_p8 = pnand %p5459_p7, %p5453_p2 }
  0x2d   : > { %5463 = shalt.err (!%p5460_p8)
}
  0x2e   : > { %s6878_s23 = sld [smem:[#allocation45_spill]]  ;;  %s5475_s27 = scalar_lea.vmem %s503_s20, 128 }
  0x2f   : > { %p5476_p11 = scmp.ne.s32.totalorder %s503_s20, %s5475_s27  ;;  %p5483_p5 = scmp.lt.s32.totalorder %s503_s20, %s503_s20 }
  0x30   : > { %p5484_p0 = scmp.lt.s32.totalorder %s5475_s27, %s5475_s27 }
  0x31   : > { %p5478_p9 = pnand %p5476_p11, %p6050_p13 }
  0x32   : > { %p5485_p1 = por %p5484_p0, %p5483_p5 }
  0x33   : > { %p5479_p6 = pneg %p5478_p9 }
  0x34   : > { %5314 = dma.hbm_to_vmem [thread:$0]  (!%p6042_p12), %s6878_s23, 64, %s479_s26, [#allocation11]  }
  0x35   : > { %p5486_p10 = pnand %p5485_p1, %p5479_p6 }
  0x37   : > { %5489 = shalt.err (!%p5486_p10)
}
  0x38   : > { %s6879_s4 = sld [smem:[#allocation46_spill]]  ;;  %s5501_s23 = scalar_lea.vmem %s6046_s29, 3840 }
  0x39   : > { %p5502_p2 = scmp.ne.s32.totalorder %s6046_s29, %s5501_s23  ;;  %p5509_p4 = scmp.lt.s32.totalorder %s6046_s29, %s6046_s29 }
  0x3a   : > { %p5510_p5 = scmp.lt.s32.totalorder %s5501_s23, %s5501_s23 }
  0x3b   : > { %p5504_p3 = pnand %p5502_p2, %p6050_p13 }
  0x3c   : > { %p5511_p6 = por %p5510_p5, %p5509_p4 }
  0x3d   : > { %p5505_p9 = pneg %p5504_p3 }
  0x3e   : > { %5320 = dma.hbm_to_vmem [thread:$0]  (!%p6042_p12), %s6879_s4, 128, %s503_s20, [#allocation14]  }
  0x3f   : > { %p5512_p10 = pnand %p5511_p6, %p5505_p9 }
  0x41   : > { %5515 = shalt.err (!%p5512_p10)
}
  0x42   : > { %s5869_s27 = smov 128   ;;  %s5870_s30 = smov 8  }
  0x43   : > { %5326 = dma.hbm_to_vmem [thread:$0]  (!%p6042_p12), %s6836_s7, 3840, %s6046_s29, [#allocation17], %s5869_s27, %s5869_s27, %s5870_s30  }
  0x44   : > { %s5871_s22 = smov [#allocation19]   ;;  %s5872_s25 = smov [#allocation22]  }
  0x45   : > { %s556_s19 = sshll.u32 %s5871_s22, 4  ;;  %s580_s23 = sshll.u32 %s5872_s25, 4  ;;  %s557_s19 = int_to_ptr.vmem [resolvable:$true] %s556_s19  ;;  %s581_s23 = int_to_ptr.vmem [resolvable:$true] %s580_s23 }
  0x46   : > { %s5527_s4 = scalar_lea.vmem %s557_s19, 32  ;;  %p5535_p0 = scmp.lt.s32.totalorder %s557_s19, %s557_s19 }
  0x47   : > { %p5528_p7 = scmp.ne.s32.totalorder %s557_s19, %s5527_s4  ;;  %p5536_p1 = scmp.lt.s32.totalorder %s5527_s4, %s5527_s4 }
  0x49   : > { %p5530_p8 = pnand %p5528_p7, %p6050_p13  ;;  %p5537_p2 = por %p5536_p1, %p5535_p0 }
  0x4b   : > { %p5531_p11 = pneg %p5530_p8 }
  0x4d   : > { %p5538_p3 = pnand %p5537_p2, %p5531_p11 }
  0x4f   : > { %5541 = shalt.err (!%p5538_p3)
}
  0x50   : > { %5332 = dma.hbm_to_vmem [thread:$0]  (!%p6042_p12), %s6839_s10, 32, %s557_s19, [#allocation20]  }
  0x51   : > { %s5553_s29 = scalar_lea.vmem %s581_s23, 64  ;;  %p5561_p6 = scmp.lt.s32.totalorder %s581_s23, %s581_s23 }
  0x52   : > { %p5554_p9 = scmp.ne.s32.totalorder %s581_s23, %s5553_s29  ;;  %p5562_p10 = scmp.lt.s32.totalorder %s5553_s29, %s5553_s29 }
  0x54   : > { %p5556_p4 = pnand %p5554_p9, %p6050_p13  ;;  %p5563_p7 = por %p5562_p10, %p5561_p6 }
  0x56   : > { %p5557_p5 = pneg %p5556_p4 }
  0x58   : > { %p5564_p8 = pnand %p5563_p7, %p5557_p5 }
  0x5a   : > { %5567 = shalt.err (!%p5564_p8)
}
  0x5b   : > { %5338 = dma.hbm_to_vmem [thread:$0]  (!%p6042_p12), %s6841_s12, 64, %s581_s23, [#allocation23]  }
  0x5c   : > { %s5873_s18 = smov [#allocation25]   ;;  %s5874_s19 = smov [#allocation7]  }
  0x5d   : > { %s603_s22 = sshll.u32 %s5873_s18, 4  ;;  %s464_s25 = sshll.u32 %s5874_s19, 4  ;;  %s604_s22 = int_to_ptr.vmem [resolvable:$true] %s603_s22  ;;  %s465_s25 = int_to_ptr.vmem [resolvable:$true] %s464_s25 }
  0x5e   : > { %s5579_s26 = scalar_lea.vmem %s604_s22, 5120  ;;  %p5587_p2 = scmp.lt.s32.totalorder %s604_s22, %s604_s22 }
  0x5f   : > { %p5580_p11 = scmp.ne.s32.totalorder %s604_s22, %s5579_s26  ;;  %p5588_p3 = scmp.lt.s32.totalorder %s5579_s26, %s5579_s26 }
  0x61   : > { %p5582_p0 = pnand %p5580_p11, %p6050_p13  ;;  %p5589_p9 = por %p5588_p3, %p5587_p2 }
  0x63   : > { %p5583_p1 = pneg %p5582_p0 }
  0x65   : > { %p5590_p4 = pnand %p5589_p9, %p5583_p1 }
  0x67   : > { %5593 = shalt.err (!%p5590_p4)
}
  0x68   : > { %5344 = dma.hbm_to_vmem [thread:$0]  (!%p6042_p12), %s6843_s14, 5120, %s604_s22, [#allocation26], %s5869_s27, %s5869_s27, %s5870_s30  }
  0x69   : > { %s5605_s4 = scalar_lea.vmem %s465_s25, 3072  ;;  %p5613_p7 = scmp.lt.s32.totalorder %s465_s25, %s465_s25 }
  0x6a   : > { %p5606_p5 = scmp.ne.s32.totalorder %s465_s25, %s5605_s4  ;;  %p5614_p8 = scmp.lt.s32.totalorder %s5605_s4, %s5605_s4 }
  0x6c   : > { %p5608_p6 = pnand %p5606_p5, %p6050_p13  ;;  %p5615_p11 = por %p5614_p8, %p5613_p7 }
  0x6e   : > { %p5609_p10 = pneg %p5608_p6 }
  0x70   : > { %p5616_p0 = pnand %p5615_p11, %p5609_p10 }
  0x72   : > { %5619 = shalt.err (!%p5616_p0)
}
  0x73   : > { %s6858_s20 = smov 256   ;;  %s6860_s18 = smov 16  }
  0x74   : > { %s6880_s22 = sld [smem:[#allocation44_spill]]  ;;  %s5877_s19 = smov [#allocation12]  }
  0x75   : > { %s488_s26 = sshll.u32 %s5877_s19, 4  ;;  %s489_s26 = int_to_ptr.vmem [resolvable:$true] %s488_s26 }
  0x76   : > { %s5631_s23 = scalar_lea.vmem %s489_s26, 39936  ;;  %p5639_p9 = scmp.lt.s32.totalorder %s489_s26, %s489_s26 }
  0x77   : > { %p5632_p1 = scmp.ne.s32.totalorder %s489_s26, %s5631_s23  ;;  %p5640_p4 = scmp.lt.s32.totalorder %s5631_s23, %s5631_s23 }
  0x79   : > { %p5634_p2 = pnand %p5632_p1, %p6050_p13  ;;  %p5641_p5 = por %p5640_p4, %p5639_p9 }
  0x7a   : > { %5311 = dma.hbm_to_vmem [thread:$0]  (!%p6042_p12), %s6880_s22, 3072, %s465_s25, [#allocation8], %s6858_s20, %s6858_s20, %s6860_s18  }
  0x7b   : > { %p5635_p3 = pneg %p5634_p2 }
  0x7d   : > { %p5642_p6 = pnand %p5641_p5, %p5635_p3 }
  0x7f   : > { %5645 = shalt.err (!%p5642_p6)
}
  0x80   : > { %s5878_s29 = smov 512   ;;  %s5879_s4 = smov 32  }
  0x81   : > { %5317 = dma.hbm_to_vmem [thread:$0]  (!%p6042_p12), %s6832_s3, 39936, %s489_s26, [#allocation11], %s5878_s29, %s5878_s29, %s5879_s4  }
  0x82   : > { %s5880_s30 = smov [#allocation15]   ;;  %s5881_s19 = smov [#allocation18]  }
  0x83   : > { %s515_s22 = sshll.u32 %s5880_s30, 4  ;;  %s542_s20 = sshll.u32 %s5881_s19, 4  ;;  %s516_s22 = int_to_ptr.vmem [resolvable:$true] %s515_s22  ;;  %s543_s20 = int_to_ptr.vmem [resolvable:$true] %s542_s20 }
  0x84   : > { %s5657_s18 = scalar_lea.vmem %s516_s22, 30720  ;;  %p5665_p11 = scmp.lt.s32.totalorder %s516_s22, %s516_s22 }
  0x85   : > { %p5658_p10 = scmp.ne.s32.totalorder %s516_s22, %s5657_s18  ;;  %p5666_p0 = scmp.lt.s32.totalorder %s5657_s18, %s5657_s18 }
  0x87   : > { %p5660_p7 = pnand %p5658_p10, %p6050_p13  ;;  %p5667_p1 = por %p5666_p0, %p5665_p11 }
  0x89   : > { %p5661_p8 = pneg %p5660_p7 }
  0x8b   : > { %p5668_p2 = pnand %p5667_p1, %p5661_p8 }
  0x8d   : > { %5671 = shalt.err (!%p5668_p2)
}
  0x8e   : > { %s6881_s23 = smov 16   ;;  %s6882_s26 = smov 256  }
  0x8f   : > { %5323 = dma.hbm_to_vmem [thread:$0]  (!%p6042_p12), %s6835_s6, 30720, %s516_s22, [#allocation14], %s6882_s26, %s6882_s26, %s6881_s23  }
  0x90   : > { %s5683_s27 = scalar_lea.vmem %s543_s20, 32  ;;  %p5691_p5 = scmp.lt.s32.totalorder %s543_s20, %s543_s20 }
  0x91   : > { %p5684_p3 = scmp.ne.s32.totalorder %s543_s20, %s5683_s27  ;;  %p5692_p6 = scmp.lt.s32.totalorder %s5683_s27, %s5683_s27 }
  0x93   : > { %p5686_p9 = pnand %p5684_p3, %p6050_p13  ;;  %p5693_p10 = por %p5692_p6, %p5691_p5 }
  0x95   : > { %p5687_p4 = pneg %p5686_p9 }
  0x97   : > { %p5694_p7 = pnand %p5693_p10, %p5687_p4 }
  0x99   : > { %5697 = shalt.err (!%p5694_p7)
}
  0x9a   : > { %5329 = dma.hbm_to_vmem [thread:$0]  (!%p6042_p12), %s6837_s8, 32, %s543_s20, [#allocation17]  }
  0x9b   : > { %s5882_s30 = smov [#allocation21]   ;;  %s5883_s22 = smov [#allocation24]  }
  0x9c   : > { %s566_s19 = sshll.u32 %s5882_s30, 4  ;;  %s590_s29 = sshll.u32 %s5883_s22, 4  ;;  %s567_s19 = int_to_ptr.vmem [resolvable:$true] %s566_s19  ;;  %s591_s29 = int_to_ptr.vmem [resolvable:$true] %s590_s29 }
  0x9d   : > { %s5709_s4 = scalar_lea.vmem %s567_s19, 7680  ;;  %p5717_p1 = scmp.lt.s32.totalorder %s567_s19, %s567_s19 }
  0x9e   : > { %p5710_p8 = scmp.ne.s32.totalorder %s567_s19, %s5709_s4  ;;  %p5718_p2 = scmp.lt.s32.totalorder %s5709_s4, %s5709_s4 }
  0xa0   : > { %p5712_p11 = pnand %p5710_p8, %p6050_p13  ;;  %p5719_p3 = por %p5718_p2, %p5717_p1 }
  0xa2   : > { %p5713_p0 = pneg %p5712_p11 }
  0xa4   : > { %p5720_p9 = pnand %p5719_p3, %p5713_p0 }
  0xa6   : > { %5723 = shalt.err (!%p5720_p9)
}
  0xa7   : > { %5335 = dma.hbm_to_vmem [thread:$0]  (!%p6042_p12), %s6840_s11, 7680, %s567_s19, [#allocation20], %s6882_s26, %s6882_s26, %s6881_s23  }
  0xa8   : > { %s5735_s18 = scalar_lea.vmem %s591_s29, 128  ;;  %p5743_p10 = scmp.lt.s32.totalorder %s591_s29, %s591_s29 }
  0xa9   : > { %p5736_p4 = scmp.ne.s32.totalorder %s591_s29, %s5735_s18  ;;  %p5744_p7 = scmp.lt.s32.totalorder %s5735_s18, %s5735_s18 }
  0xab   : > { %p5738_p5 = pnand %p5736_p4, %p6050_p13  ;;  %p5745_p8 = por %p5744_p7, %p5743_p10 }
  0xad   : > { %p5739_p6 = pneg %p5738_p5 }
  0xaf   : > { %p5746_p11 = pnand %p5745_p8, %p5739_p6 }
  0xb1   : > { %5749 = shalt.err (!%p5746_p11)
}
  0xb2   : > { %s5884_s25 = smov 64   ;;  %s5885_s30 = smov 4  }
  0xb3   : > { %5341 = dma.hbm_to_vmem [thread:$0]  (!%p6042_p12), %s6842_s13, 128, %s591_s29, [#allocation23], %s5884_s25, %s5884_s25, %s5885_s30  }
  0xb4   : > { %s5886_s23 = smov [#allocation27]  }
  0xb5   : > { %s620_s26 = sshll.u32 %s5886_s23, 4  ;;  %s621_s26 = int_to_ptr.vmem [resolvable:$true] %s620_s26 }
  0xb6   : > { %s5761_s19 = scalar_lea.vmem %s621_s26, 32  ;;  %p5769_p3 = scmp.lt.s32.totalorder %s621_s26, %s621_s26 }
  0xb7   : > { %p5762_p0 = scmp.ne.s32.totalorder %s621_s26, %s5761_s19  ;;  %p5770_p9 = scmp.lt.s32.totalorder %s5761_s19, %s5761_s19 }
  0xb9   : > { %p5764_p1 = pnand %p5762_p0, %p6050_p13  ;;  %p5771_p4 = por %p5770_p9, %p5769_p3 }
  0xbb   : > { %p5765_p2 = pneg %p5764_p1 }
  0xbd   : > { %p5772_p5 = pnand %p5771_p4, %p5765_p2 }
  0xbf   : > { %5775 = shalt.err (!%p5772_p5)
}
  0xc0   : > { %5347 = dma.hbm_to_vmem [thread:$0]  (!%p6042_p12), %s6845_s16, 32, %s621_s26, [#allocation26]  }
  0xc1   : > { %p6883_p6 = scmp.ne.s32.totalorder %s6875_s24, 0 }
  0xc2   : > { %p6884_p10 = scmp.eq.s32.totalorder (!%p6883_p6), %s6006_s0, 0 }
  0xc3   : > { %644 = sbr.rel (%p6883_p6) target bundleno = 3125 (0xc35), region = 92 }
  0xc8   : > { %5819 = dma.done.wait (%p6884_p10), [#allocation8], 3072   ;;  %p6885_p13 = pmov %p6884_p10 }
  0xc9   : > { %p6886_p7 = pmov %p6884_p10 }
  0xca   : > { %5821 = vsyncadd (%p6885_p13), [#allocation8], 4294964224 }
  0xcb   : > { %5823 = dma.done.wait (%p6886_p7), [#allocation11], 40000   ;;  %p6887_p8 = pmov %p6886_p7 }
  0xcc   : > { %p6888_p11 = pmov %p6886_p7 }
  0xcd   : > { %5825 = vsyncadd (%p6887_p8), [#allocation11], 4294927296 }
  0xce   : > { %5827 = dma.done.wait (%p6888_p11), [#allocation14], 30848   ;;  %p6889_p12 = pmov %p6886_p7 }
  0xcf   : > { %p6890_p0 = pmov %p6886_p7 }
  0xd0   : > { %5829 = vsyncadd (%p6889_p12), [#allocation14], 4294936448 }
  0xd1   : > { %5831 = dma.done.wait (%p6890_p0), [#allocation17], 3872   ;;  %p6891_p1 = pmov %p6890_p0 }
  0xd2   : > { %p6892_p2 = pmov %p6890_p0 }
  0xd3   : > { %5833 = vsyncadd (%p6891_p1), [#allocation17], 4294963424 }
  0xd4   : > { %5835 = dma.done.wait (%p6892_p2), [#allocation20], 7712   ;;  %p6893_p3 = pmov %p6890_p0 }
  0xd5   : > { %p6894_p9 = pmov %p6890_p0 }
  0xd6   : > { %5837 = vsyncadd (%p6893_p3), [#allocation20], 4294959584 }
  0xd7   : > { %5839 = dma.done.wait (%p6894_p9), [#allocation23], 192   ;;  %p6895_p4 = pmov %p6890_p0 }
  0xd8   : > { %p6896_p5 = pmov %p6890_p0 }
  0xd9   : > { %5841 = vsyncadd (%p6895_p4), [#allocation23], 4294967104 }
  0xda   : > { %5843 = dma.done.wait (%p6896_p5), [#allocation26], 5152   ;;  %p6897_p6 = pmov %p6890_p0 }
  0xdb   : > { %p745_p10 = scmp.lt.s32.totalorder %s6006_s0, 1  ;;  %v5887_v0 = vmov 0.0   ;;  %vm788_vm0 = vcmask 1043456   ;;  %v774_v1 = vld [vmem:[#allocation7 + $0x78] sm:$0xf]  ;;  %v772_v5 = vld [vmem:[#allocation7 + $0x68] sm:$0xff] }
  0xdc   : > { %5845 = vsyncadd (%p6897_p6), [#allocation26], 4294962144  ;;  %859 = vmatprep.mubr.f32.mxu0 %v5887_v0  ;;  %966 = vmatprep.mubr.f32.mxu1 %v5887_v0  ;;  %v761_v2 = vld [vmem:[#allocation7 + $0x38] sm:$0xf]  ;;  %v773_v3 = vld [vmem:[#allocation7 + $0x70] sm:$0xf] }
  0xdd   : > { %s746_s1 = scalar_select %p745_p10, %s6006_s0, 1  ;;  %4836 = vmatprep.subr.msk.mxu0 %vm788_vm0, %v774_v1  ;;  %4842 = vmatprep.subr.msk.mxu1 %vm788_vm0, %v761_v2  ;;  %v760_v4 = vld [vmem:[#allocation7 + $0x30] sm:$0xf]  ;;  %v759_v6 = vld [vmem:[#allocation7 + $0x28] sm:$0xff]  ;;  %v771_v7 = vld [vmem:[#allocation7 + $0x60] sm:$0xff]  ;;  %vm775_vm1 = vcmask 228352  }
  0xde   : > { %4837 = vmatpush1.msk.msra.mxu0 %vm788_vm0, %v773_v3  ;;  %4843 = vmatpush1.msk.msra.mxu1 %vm788_vm0, %v760_v4  ;;  %v758_v8 = vld [vmem:[#allocation7 + $0x20] sm:$0xff]  ;;  %v770_v9 = vld [vmem:[#allocation7 + $0x58] sm:$0xff]  ;;  %v769_v11 = vld [vmem:[#allocation7 + $0x50] sm:$0xff]  ;;  %s6898_s18 = sld [smem:[#allocation43_spill]]  ;;  %vm1169_vm2 = vcmask 654336   ;;  %vm1176_vm3 = vcmask 648192  }
  0xdf   : > { %s4969_s24 = sshll.u32 %s746_s1, 5  ;;  %821 = vmatprep.subr.mxu0 %v772_v5  ;;  %928 = vmatprep.subr.mxu1 %v759_v6  ;;  %v757_v10 = vld [vmem:[#allocation7 + $0x18] sm:$0xff]  ;;  %v756_v12 = vld [vmem:[#allocation7 + $0x10] sm:$0xff]  ;;  %v768_v13 = vld [vmem:[#allocation7 + $0x48] sm:$0xff]  ;;  %vm1405_vm4 = vcmask 1046528   ;;  %vm1881_vm5 = vcmask 1045504  }
  0xe0   : > { %822 = vmatpush1.msra.mxu0 %v771_v7  ;;  %929 = vmatpush1.msra.mxu1 %v758_v8  ;;  %v755_v14 = vld [vmem:[#allocation7 + $0x8] sm:$0xff]  ;;  %v767_v15 = vld [vmem:[#allocation7 + $0x40] sm:$0xff]  ;;  %v1003_v19 = vld [vmem:[#allocation7 + $0xb8] sm:$0xf]  ;;  %vm2166_vm6 = vcmask 195584   ;;  %vm2618_vm7 = vcmask 785408  }
  0xe1   : > { %823 = vmatprep.subr.mxu0 %v770_v9  ;;  %930 = vmatprep.subr.mxu1 %v757_v10  ;;  %v754_v16 = vld [vmem:[#allocation7] sm:$0xff]  ;;  %v1002_v20 = vld [vmem:[#allocation7 + $0xb0] sm:$0xf]  ;;  %v1001_v23 = vld [vmem:[#allocation7 + $0xa8] sm:$0xff]  ;;  %vm3088_vm8 = vcmask 916480   ;;  %vm3186_vm9 = vcmask 982016  }
  0xe2   : > { %824 = vmatpush1.msra.mxu0 %v769_v11  ;;  %931 = vmatpush1.msra.mxu1 %v756_v12  ;;  %v1354_v24 = vld [vmem:[#allocation12 + $0x528] sm:$0xff]  ;;  %v1000_v25 = vld [vmem:[#allocation7 + $0xa0] sm:$0xff]  ;;  %v999_v29 = vld [vmem:[#allocation7 + $0x98] sm:$0xff]  ;;  %vm3188_vm10 = vcmask 977920   ;;  %vm3827_vm11 = vcmask 64512   ;;  %vm4000_vm12 = vcmask 261120  }
  0xe3   : > { %825 = vmatprep.subr.mxu0 %v768_v13  ;;  %932 = vmatprep.subr.mxu1 %v755_v14  ;;  %v1353_v26 = vld [vmem:[#allocation12 + $0x520] sm:$0xff]  ;;  %v1350_v30 = vld [vmem:[#allocation12 + $0x508] sm:$0xff]  ;;  %v1356_v38 = vld [vmem:[#allocation12 + $0x538] sm:$0xff]  ;;  %vm5888_vm13 = vmmov 0   ;;  %vm4166_vm14 = vcmask 650240   ;;  %vm4436_vm15 = vcmask 254976  }
  0xe4   : > { %s6206_s25 = scalar_lea.vmem %s6898_s18, %s4969_s24  ;;  %826 = vmatpush1.msra.mxu0 %v767_v15  ;;  %933 = vmatpush1.msra.mxu1 %v754_v16  ;;  %v998_v31 = vld [vmem:[#allocation7 + $0x90] sm:$0xff]  ;;  %v1349_v32 = vld [vmem:[#allocation12 + $0x500] sm:$0xff]  ;;  %v1352_v43 = vld [vmem:[#allocation12 + $0x518] sm:$0xff]  ;;  %s743_s20 = sand.u32 1, %s5856_s28  }
  0xe5   : > { %v762_v17 = vld [vmem:[%s6206_s25 + $0x1] sm:$0xff]  ;;  %v763_v21 = vld [vmem:[%s6206_s25 + $0x9] sm:$0xff]  ;;  %4848 = vmatprep.subr.msk.mxu0 %vm788_vm0, %v1003_v19  ;;  %v764_v27 = vld [vmem:[%s6206_s25 + $0x11] sm:$0xff]  ;;  %1429 = vmatprep.subr.mxu1 %v1354_v24  ;;  %s4966_s27 = sshll.u32 %s6006_s0, 4  ;;  %s744_s1 = scalar_lea.vmem [#allocation28], %s743_s20 }
  0xe6   : > { %v750_v18 = vld [vmem:[%s6206_s25] sm:$0xff]  ;;  %4838 = vmatmul.mubr.msk.f32.vlgmr.msra.gmra.mxu0 %vm775_vm1, %v762_v17  ;;  %v751_v22 = vld [vmem:[%s6206_s25 + $0x8] sm:$0xff]  ;;  %v752_v28 = vld [vmem:[%s6206_s25 + $0x10] sm:$0xff]  ;;  %s4623_s24 = sshll.u32 %s744_s1, 4  ;;  %s6899_s18 = sld [smem:[#allocation47_spill]]  ;;  %s4624_s24 = int_to_ptr.vmem [resolvable:$true] %s4623_s24 }
  0xe7   : > { %4844 = vmatmul.mubr.msk.f32.vlgmr.msra.gmra.mxu1 %vm775_vm1, %v750_v18  ;;  %865 = vmatprep.mubr.f32.mxu0 %v5887_v0  ;;  %v765_v33 = vld [vmem:[%s6206_s25 + $0x19] sm:$0x3]  ;;  %v997_v35 = vld [vmem:[#allocation7 + $0x88] sm:$0xff]  ;;  %v996_v36 = vld [vmem:[#allocation7 + $0x80] sm:$0xff]  ;;  %s4611_s30 = scalar_lea.sflag [#allocation9], %s743_s20  ;;  %s5776_s22 = scalar_lea.vmem %s4624_s24, 16 }
  0xe8   : > { %972 = vmatprep.mubr.f32.mxu1 %v5887_v0  ;;  %4849 = vmatpush1.msk.msra.mxu0 %vm788_vm0, %v1002_v20  ;;  %v753_v34 = vld [vmem:[%s6206_s25 + $0x18] sm:$0x3]  ;;  %v1345_v39 = vld [vmem:[#allocation12 + $0x4e0] sm:$0xff]  ;;  %v991_v40 = vld [vmem:[%s6206_s25 + $0x2] sm:$0xff]  ;;  %vm4595_vm0 = vcmask 73728   ;;  %p5777_p13 = scmp.ne.s32.totalorder %s4624_s24, %s5776_s22  ;;  %p6900_p7 = scmp.ne.s32.totalorder %s6872_s2, 0 }
  0xe9   : > { %1048 = vmatprep.subr.mxu0 %v1001_v23  ;;  %1430 = vmatpush1.msra.mxu1 %v1353_v26  ;;  %v1346_v37 = vld [vmem:[#allocation12 + $0x4e8] sm:$0xff]  ;;  %v1355_v42 = vld [vmem:[#allocation12 + $0x530] sm:$0xff]  ;;  %v1341_v44 = vld [vmem:[#allocation12 + $0x4c0] sm:$0xff]  ;;  %s5889_s4 = smov [#allocation28]  }
  0xea   : > { %4839 = vmatmul.mubr.msk.f32.gmra.mxu0 %vm775_vm1, %v763_v21  ;;  %1431 = vmatprep.subr.mxu1 %v1350_v30  ;;  %v1342_v41 = vld [vmem:[#allocation12 + $0x4c8] sm:$0xff]  ;;  %v1351_v45 = vld [vmem:[#allocation12 + $0x510] sm:$0xff]  ;;  %v992_v47 = vld [vmem:[%s6206_s25 + $0xa] sm:$0xff]  ;;  %p5778_p8 = pnand %p5777_p13, %p6900_p7  ;;  %s5780_s23 = sshll.u32 %s5889_s4, 4  ;;  %s5781_s23 = int_to_ptr.vmem [resolvable:$false] %s5780_s23 }
  0xeb   : > { %4845 = vmatmul.mubr.msk.f32.gmra.mxu1 %vm775_vm1, %v751_v22  ;;  %871 = vmatprep.mubr.f32.mxu0 %v5887_v0  ;;  %v1338_v46 = vld [vmem:[#allocation12 + $0x4a8] sm:$0xff]  ;;  %v1348_v48 = vld [vmem:[#allocation12 + $0x4f8] sm:$0xff]  ;;  %v1347_v49 = vld [vmem:[#allocation12 + $0x4f0] sm:$0xff]  ;;  %s5782_s0 = scalar_lea.vmem %s5781_s23, 32  ;;  %p5783_p12 = scmp.lt.s32.totalorder %s4624_s24, %s5781_s23 }
  0xec   : > { %978 = vmatprep.mubr.f32.mxu1 %v5887_v0  ;;  %1049 = vmatpush1.msra.mxu0 %v1000_v25  ;;  %v1344_v50 = vld [vmem:[#allocation12 + $0x4d8] sm:$0xff]  ;;  %v1337_v51 = vld [vmem:[#allocation12 + $0x4a0] sm:$0xff]  ;;  %v1343_v52 = vld [vmem:[#allocation12 + $0x4d0] sm:$0xff]  ;;  %p5779_p11 = pneg %p5778_p8  ;;  %p5784_p0 = scmp.lt.s32.totalorder %s5782_s0, %s5776_s22 }
  0xed   : > { %1050 = vmatprep.subr.mxu0 %v999_v29  ;;  %1432 = vmatpush1.msra.mxu1 %v1349_v32  ;;  %v993_v53 = vld [vmem:[%s6206_s25 + $0x12] sm:$0xff]  ;;  %v1340_v54 = vld [vmem:[#allocation12 + $0x4b8] sm:$0xff]  ;;  %v1339_v55 = vld [vmem:[#allocation12 + $0x4b0] sm:$0xff] }
  0xee   : > { %4840 = vmatmul.mubr.msk.f32.gmra.mxu0 %vm775_vm1, %v764_v27  ;;  %1433 = vmatprep.subr.mxu1 %v1346_v37  ;;  %v994_v56 = vld [vmem:[%s6206_s25 + $0x1a] sm:$0x3]  ;;  %v1334_v57 = vld [vmem:[#allocation12 + $0x488] sm:$0xff]  ;;  %v1336_v58 = vld [vmem:[#allocation12 + $0x498] sm:$0xff]  ;;  %s4621_s25 = scalar_lea.hbm %s6899_s18, %s4966_s27  ;;  %p5785_p1 = por %p5784_p0, %p5783_p12 }
  0xef   : > { %4846 = vmatmul.mubr.msk.f32.gmra.mxu1 %vm775_vm1, %v752_v28  ;;  %877 = vmatprep.mubr.f32.mxu0 %v5887_v0  ;;  %v1333_v59 = vld [vmem:[#allocation12 + $0x480] sm:$0xff]  ;;  %v1335_v60 = vld [vmem:[#allocation12 + $0x490] sm:$0xff]  ;;  %v1330_v61 = vld [vmem:[#allocation12 + $0x468] sm:$0xff] }
  0xf0   : > { %984 = vmatprep.mubr.f32.mxu1 %v5887_v0  ;;  %1051 = vmatpush1.msra.mxu0 %v998_v31  ;;  %v1332_v62 = vld [vmem:[#allocation12 + $0x478] sm:$0xff]  ;;  %v1329_v63 = vld [vmem:[#allocation12 + $0x460] sm:$0xff]  ;;  %v1331_v1 = vld [vmem:[#allocation12 + $0x470] sm:$0xff]  ;;  %p5786_p2 = pnand %p5785_p1, %p5779_p11 }
  0xf1   : > { %1052 = vmatprep.subr.mxu0 %v997_v35  ;;  %1434 = vmatpush1.msra.mxu1 %v1345_v39  ;;  %v1326_v2 = vld [vmem:[#allocation12 + $0x448] sm:$0xff]  ;;  %v1328_v3 = vld [vmem:[#allocation12 + $0x458] sm:$0xff]  ;;  %v1325_v4 = vld [vmem:[#allocation12 + $0x440] sm:$0xff] }
  0xf2   : > { %4841 = vmatmul.mubr.msk.f32.gmra.mxu0 %vm775_vm1, %v765_v33  ;;  %1435 = vmatprep.subr.mxu1 %v1342_v41  ;;  %v1327_v5 = vld [vmem:[#allocation12 + $0x450] sm:$0xff]  ;;  %v1322_v6 = vld [vmem:[#allocation12 + $0x428] sm:$0xff]  ;;  %v1324_v7 = vld [vmem:[#allocation12 + $0x438] sm:$0xff] }
  0xf3   : > { %4847 = vmatmul.mubr.msk.f32.gmra.mxu1 %vm775_vm1, %v753_v34  ;;  %1086 = vmatprep.mubr.f32.mxu0 %v5887_v0  ;;  %v1321_v8 = vld [vmem:[#allocation12 + $0x420] sm:$0xff]  ;;  %v1323_v9 = vld [vmem:[#allocation12 + $0x430] sm:$0xff]  ;;  %v1318_v10 = vld [vmem:[#allocation12 + $0x408] sm:$0xff] }
  0xf4   : > { %1053 = vmatpush1.msra.mxu0 %v996_v36  ;;  %1436 = vmatpush1.msra.mxu1 %v1341_v44  ;;  %v1320_v11 = vld [vmem:[#allocation12 + $0x418] sm:$0xff]  ;;  %v1317_v12 = vld [vmem:[#allocation12 + $0x400] sm:$0xff]  ;;  %v1319_v13 = vld [vmem:[#allocation12 + $0x410] sm:$0xff] }
  0xf5   : > { %1512 = vmatprep.subr.mxu0 %v1356_v38  ;;  %1437 = vmatprep.subr.mxu1 %v1338_v46  ;;  %v1314_v14 = vld [vmem:[#allocation12 + $0x3e8] sm:$0xff]  ;;  %v1316_v15 = vld [vmem:[#allocation12 + $0x3f8] sm:$0xff]  ;;  %v1313_v16 = vld [vmem:[#allocation12 + $0x3e0] sm:$0xff] }
  0xf6   : > { %4850 = vmatmul.mubr.msk.f32.vlgmr.msra.gmra.mxu0 %vm775_vm1, %v991_v40  ;;  %1438 = vmatpush1.msra.mxu1 %v1337_v51  ;;  %v1315_v17 = vld [vmem:[#allocation12 + $0x3f0] sm:$0xff]  ;;  %v1310_v18 = vld [vmem:[#allocation12 + $0x3c8] sm:$0xff]  ;;  %v1312_v19 = vld [vmem:[#allocation12 + $0x3d8] sm:$0xff] }
  0xf7   : > { %1092 = vmatprep.mubr.f32.mxu0 %v5887_v0  ;;  %1513 = vmatpush1.msra.mxu0 %v1355_v42  ;;  %v1309_v20 = vld [vmem:[#allocation12 + $0x3c0] sm:$0xff]  ;;  %v1311_v21 = vld [vmem:[#allocation12 + $0x3d0] sm:$0xff]  ;;  %v1306_v22 = vld [vmem:[#allocation12 + $0x3a8] sm:$0xff] }
  0xf8   : > { %1514 = vmatprep.subr.mxu0 %v1352_v43  ;;  %1439 = vmatprep.subr.mxu1 %v1334_v57  ;;  %v1308_v23 = vld [vmem:[#allocation12 + $0x3b8] sm:$0xff]  ;;  %v1305_v24 = vld [vmem:[#allocation12 + $0x3a0] sm:$0xff]  ;;  %v1307_v25 = vld [vmem:[#allocation12 + $0x3b0] sm:$0xff] }
  0xf9   : > { %1515 = vmatpush1.msra.mxu0 %v1351_v45  ;;  %1440 = vmatpush1.msra.mxu1 %v1333_v59  ;;  %v1302_v26 = vld [vmem:[#allocation12 + $0x388] sm:$0xff]  ;;  %v1304_v27 = vld [vmem:[#allocation12 + $0x398] sm:$0xff]  ;;  %v1301_v28 = vld [vmem:[#allocation12 + $0x380] sm:$0xff] }
  0xfa   : > { %4851 = vmatmul.mubr.msk.f32.gmra.mxu0 %vm775_vm1, %v992_v47  ;;  %1516 = vmatprep.subr.mxu0 %v1348_v48  ;;  %v1303_v29 = vld [vmem:[#allocation12 + $0x390] sm:$0xff]  ;;  %v1298_v30 = vld [vmem:[#allocation12 + $0x368] sm:$0xff]  ;;  %v1300_v31 = vld [vmem:[#allocation12 + $0x378] sm:$0xff] }
  0xfb   : > { %1098 = vmatprep.mubr.f32.mxu0 %v5887_v0  ;;  %1517 = vmatpush1.msra.mxu0 %v1347_v49  ;;  %v1297_v32 = vld [vmem:[#allocation12 + $0x360] sm:$0xff]  ;;  %v1299_v33 = vld [vmem:[#allocation12 + $0x370] sm:$0xff]  ;;  %v1294_v34 = vld [vmem:[#allocation12 + $0x348] sm:$0xff] }
  0xfc   : > { %1518 = vmatprep.subr.mxu0 %v1344_v50  ;;  %1441 = vmatprep.subr.mxu1 %v1330_v61  ;;  %v1296_v35 = vld [vmem:[#allocation12 + $0x358] sm:$0xff]  ;;  %v1293_v36 = vld [vmem:[#allocation12 + $0x340] sm:$0xff]  ;;  %v1295_v37 = vld [vmem:[#allocation12 + $0x350] sm:$0xff] }
  0xfd   : > { %1519 = vmatpush1.msra.mxu0 %v1343_v52  ;;  %1442 = vmatpush1.msra.mxu1 %v1329_v63  ;;  %v1394_v38 = vld [vmem:[#allocation12 + $0x668] sm:$0xff]  ;;  %v1396_v39 = vld [vmem:[#allocation12 + $0x678] sm:$0xff]  ;;  %v1393_v40 = vld [vmem:[#allocation12 + $0x660] sm:$0xff] }
  0xfe   : > { %4852 = vmatmul.mubr.msk.f32.gmra.mxu0 %vm775_vm1, %v993_v53  ;;  %1520 = vmatprep.subr.mxu0 %v1340_v54  ;;  %v1395_v41 = vld [vmem:[#allocation12 + $0x670] sm:$0xff]  ;;  %v1390_v42 = vld [vmem:[#allocation12 + $0x648] sm:$0xff]  ;;  %v1392_v43 = vld [vmem:[#allocation12 + $0x658] sm:$0xff] }
  0xff   : > { %1104 = vmatprep.mubr.f32.mxu0 %v5887_v0  ;;  %1521 = vmatpush1.msra.mxu0 %v1339_v55  ;;  %v1389_v44 = vld [vmem:[#allocation12 + $0x640] sm:$0xff]  ;;  %v1391_v45 = vld [vmem:[#allocation12 + $0x650] sm:$0xff]  ;;  %v1386_v46 = vld [vmem:[#allocation12 + $0x628] sm:$0xff] }
 0x100   : > { %1522 = vmatprep.subr.mxu0 %v1336_v58  ;;  %1443 = vmatprep.subr.mxu1 %v1326_v2  ;;  %v1388_v47 = vld [vmem:[#allocation12 + $0x638] sm:$0xff]  ;;  %v1385_v48 = vld [vmem:[#allocation12 + $0x620] sm:$0xff]  ;;  %v1387_v49 = vld [vmem:[#allocation12 + $0x630] sm:$0xff] }
 0x101   : > { %1523 = vmatpush1.msra.mxu0 %v1335_v60  ;;  %1444 = vmatpush1.msra.mxu1 %v1325_v4  ;;  %v1382_v50 = vld [vmem:[#allocation12 + $0x608] sm:$0xff]  ;;  %v1384_v51 = vld [vmem:[#allocation12 + $0x618] sm:$0xff]  ;;  %v1381_v52 = vld [vmem:[#allocation12 + $0x600] sm:$0xff] }
 0x102   : > { %4853 = vmatmul.mubr.msk.f32.gmra.mxu0 %vm775_vm1, %v994_v56  ;;  %1524 = vmatprep.subr.mxu0 %v1332_v62  ;;  %v1383_v53 = vld [vmem:[#allocation12 + $0x610] sm:$0xff]  ;;  %v1378_v54 = vld [vmem:[#allocation12 + $0x5e8] sm:$0xff]  ;;  %v1380_v55 = vld [vmem:[#allocation12 + $0x5f8] sm:$0xff] }
 0x103   : > { %1525 = vmatpush1.msra.mxu0 %v1331_v1  ;;  %1445 = vmatprep.subr.mxu1 %v1322_v6  ;;  %v1377_v56 = vld [vmem:[#allocation12 + $0x5e0] sm:$0xff]  ;;  %v1379_v57 = vld [vmem:[#allocation12 + $0x5f0] sm:$0xff]  ;;  %v1374_v58 = vld [vmem:[#allocation12 + $0x5c8] sm:$0xff] }
 0x104   : > { %1526 = vmatprep.subr.mxu0 %v1328_v3  ;;  %1446 = vmatpush1.msra.mxu1 %v1321_v8  ;;  %v1376_v59 = vld [vmem:[#allocation12 + $0x5d8] sm:$0xff]  ;;  %v1373_v60 = vld [vmem:[#allocation12 + $0x5c0] sm:$0xff]  ;;  %v1375_v61 = vld [vmem:[#allocation12 + $0x5d0] sm:$0xff] }
 0x105   : > { %1527 = vmatpush1.msra.mxu0 %v1327_v5  ;;  %1447 = vmatprep.subr.mxu1 %v1318_v10  ;;  %v1370_v62 = vld [vmem:[#allocation12 + $0x5a8] sm:$0xff]  ;;  %v1372_v63 = vld [vmem:[#allocation12 + $0x5b8] sm:$0xff]  ;;  %v1369_v1 = vld [vmem:[#allocation12 + $0x5a0] sm:$0xff] }
 0x106   : > { %1528 = vmatprep.subr.mxu0 %v1324_v7  ;;  %1448 = vmatpush1.msra.mxu1 %v1317_v12  ;;  %v1371_v2 = vld [vmem:[#allocation12 + $0x5b0] sm:$0xff]  ;;  %v1366_v3 = vld [vmem:[#allocation12 + $0x588] sm:$0xff]  ;;  %v1368_v4 = vld [vmem:[#allocation12 + $0x598] sm:$0xff] }
 0x107   : > { %1529 = vmatpush1.msra.mxu0 %v1323_v9  ;;  %1449 = vmatprep.subr.mxu1 %v1314_v14  ;;  %v1365_v5 = vld [vmem:[#allocation12 + $0x580] sm:$0xff]  ;;  %v1367_v6 = vld [vmem:[#allocation12 + $0x590] sm:$0xff]  ;;  %v1362_v7 = vld [vmem:[#allocation12 + $0x568] sm:$0xff] }
 0x108   : > { %1530 = vmatprep.subr.mxu0 %v1320_v11  ;;  %1450 = vmatpush1.msra.mxu1 %v1313_v16  ;;  %v1364_v8 = vld [vmem:[#allocation12 + $0x578] sm:$0xff]  ;;  %v1361_v9 = vld [vmem:[#allocation12 + $0x560] sm:$0xff]  ;;  %v1363_v10 = vld [vmem:[#allocation12 + $0x570] sm:$0xff] }
 0x109   : > { %1531 = vmatpush1.msra.mxu0 %v1319_v13  ;;  %1451 = vmatprep.subr.mxu1 %v1310_v18  ;;  %v1358_v11 = vld [vmem:[#allocation12 + $0x548] sm:$0xff]  ;;  %v1360_v12 = vld [vmem:[#allocation12 + $0x558] sm:$0xff]  ;;  %v1357_v13 = vld [vmem:[#allocation12 + $0x540] sm:$0xff] }
 0x10a   : > { %1532 = vmatprep.subr.mxu0 %v1316_v15  ;;  %1452 = vmatpush1.msra.mxu1 %v1309_v20  ;;  %v1359_v14 = vld [vmem:[#allocation12 + $0x550] sm:$0xff]  ;;  %v1245_v15 = vld [vmem:[#allocation12 + $0x1e8] sm:$0xff]  ;;  %v1247_v16 = vld [vmem:[#allocation12 + $0x1f8] sm:$0xff] }
 0x10b   : > { %1533 = vmatpush1.msra.mxu0 %v1315_v17  ;;  %1453 = vmatprep.subr.mxu1 %v1306_v22 }
 0x10c   : > { %1534 = vmatprep.subr.mxu0 %v1312_v19  ;;  %1454 = vmatpush1.msra.mxu1 %v1305_v24 }
 0x10d   : > { %1535 = vmatpush1.msra.mxu0 %v1311_v21  ;;  %1455 = vmatprep.subr.mxu1 %v1302_v26  ;;  %v1121_v21 = vlaneseq }
 0x10e   : > { %1536 = vmatprep.subr.mxu0 %v1308_v23  ;;  %1456 = vmatpush1.msra.mxu1 %v1301_v28 }
 0x10f   : > { %1537 = vmatpush1.msra.mxu0 %v1307_v25  ;;  %1457 = vmatprep.subr.mxu1 %v1298_v30  ;;  %v6244_v25 = vshrl.u32 %v1121_v21, 7 }
 0x110   : > { %1538 = vmatprep.subr.mxu0 %v1304_v27  ;;  %1458 = vmatpush1.msra.mxu1 %v1297_v32 }
 0x111   : > { %1539 = vmatpush1.msra.mxu0 %v1303_v29  ;;  %1459 = vmatprep.subr.mxu1 %v1294_v34  ;;  %v6247_v29 = vsub.s32 0, %v6244_v25 }
 0x112   : > { %1540 = vmatprep.subr.mxu0 %v1300_v31  ;;  %1460 = vmatpush1.msra.mxu1 %v1293_v36  ;;  %v1119_v31 = vld [vmem:[#allocation10] ss:$2 sm:$0x3] }
 0x113   : > { %1541 = vmatpush1.msra.mxu0 %v1299_v33  ;;  %1473 = vmatprep.subr.mxu1 %v1394_v38  ;;  %v6250_v33 = vsub.s32 1, %v6244_v25 }
 0x114   : > { %1542 = vmatprep.subr.mxu0 %v1296_v35  ;;  %1474 = vmatpush2.msra.mxu1 %v1393_v40  ;;  %v1140_v35 = vld [vmem:[#allocation10 + $0x1] ss:$2 sm:$0x3] }
 0x115   : > { %1543 = vmatpush1.msra.mxu0 %v1295_v37  ;;  %1475 = vmatprep.subr.mxu1 %v1390_v42  ;;  %v1124_v37 = vrot.slane %v1119_v31, %v6247_v29  ;;  %v1145_v42 = vrot.slane %v1140_v35, %v6247_v29 }
 0x116   : > { %1556 = vmatprep.subr.mxu0 %v1396_v39  ;;  %1476 = vmatpush2.msra.mxu1 %v1389_v44 }
 0x117   : > { %1557 = vmatpush2.msra.mxu0 %v1395_v41  ;;  %1477 = vmatprep.subr.mxu1 %v1386_v46 }
 0x118   : > { %1558 = vmatprep.subr.mxu0 %v1392_v43  ;;  %1478 = vmatpush2.msra.mxu1 %v1385_v48  ;;  %v1128_v43 = vrot.slane %v1119_v31, %v6250_v33  ;;  %v1149_v48 = vrot.slane %v1140_v35, %v6250_v33 }
 0x119   : > { %1559 = vmatpush2.msra.mxu0 %v1391_v45  ;;  %1479 = vmatprep.subr.mxu1 %v1382_v50 }
 0x11a   : > { %1560 = vmatprep.subr.mxu0 %v1388_v47  ;;  %1480 = vmatpush2.msra.mxu1 %v1381_v52 }
 0x11b   : > { %1561 = vmatpush2.msra.mxu0 %v1387_v49  ;;  %1481 = vmatprep.subr.mxu1 %v1378_v54 }
 0x11c   : > { %1562 = vmatprep.subr.mxu0 %v1384_v51  ;;  %1482 = vmatpush2.msra.mxu1 %v1377_v56 }
 0x11d   : > { %1563 = vmatpush2.msra.mxu0 %v1383_v53  ;;  %1483 = vmatprep.subr.mxu1 %v1374_v58 }
 0x11e   : > { %1564 = vmatprep.subr.mxu0 %v1380_v55  ;;  %1484 = vmatpush2.msra.mxu1 %v1373_v60 }
 0x11f   : > { %1565 = vmatpush2.msra.mxu0 %v1379_v57  ;;  %1485 = vmatprep.subr.mxu1 %v1370_v62 }
 0x120   : > { %1566 = vmatprep.subr.mxu0 %v1376_v59  ;;  %1486 = vmatpush2.msra.mxu1 %v1369_v1 }
 0x121   : > { %1567 = vmatpush2.msra.mxu0 %v1375_v61  ;;  %1487 = vmatprep.subr.mxu1 %v1366_v3 }
 0x122   : > { %1568 = vmatprep.subr.mxu0 %v1372_v63  ;;  %1488 = vmatpush2.msra.mxu1 %v1365_v5 }
 0x123   : > { %1569 = vmatpush2.msra.mxu0 %v1371_v2  ;;  %1489 = vmatprep.subr.mxu1 %v1362_v7 }
 0x124   : > { %1570 = vmatprep.subr.mxu0 %v1368_v4  ;;  %1490 = vmatpush2.msra.mxu1 %v1361_v9 }
 0x125   : > { %1571 = vmatpush2.msra.mxu0 %v1367_v6  ;;  %1491 = vmatprep.subr.mxu1 %v1358_v11 }
 0x126   : > { %1572 = vmatprep.subr.mxu0 %v1364_v8  ;;  %1492 = vmatpush2.msra.mxu1 %v1357_v13 }
 0x127   : > { %1573 = vmatpush2.msra.mxu0 %v1363_v10  ;;  %1602 = vmatprep.subr.mxu1 %v1245_v15 }
 0x128   : > { %1574 = vmatprep.subr.mxu0 %v1360_v12 }
 0x129   : > { %1575 = vmatpush2.msra.mxu0 %v1359_v14 }
 0x12a   : > { %1685 = vmatprep.subr.mxu0 %v1247_v16 }
 0x1a6   : > { %v861_v17 = vpop.f32.mrf.mxu0 }
 0x1a7   : > { %v968_v18 = vpop.f32.mrf.mxu1 }
 0x1a8   : > { %v863_v19 = vpop.f32.mrf.mxu0  ;;  %v969_v36 = vadd.f32 %v968_v18, %v861_v17 }
 0x1a9   : > { %v970_v20 = vpop.f32.mrf.mxu1 }
 0x1aa   : > { %v867_v22 = vpop.f32.mrf.mxu0  ;;  %v971_v39 = vadd.f32 %v970_v20, %v863_v19 }
 0x1ab   : > { %v974_v23 = vpop.f32.mrf.mxu1 }
 0x1ac   : > { %v869_v24 = vpop.f32.mrf.mxu0  ;;  %v975_v45 = vadd.f32 %v974_v23, %v867_v22 }
 0x1ad   : > { %v976_v27 = vpop.f32.mrf.mxu1 }
 0x1ae   : > { %v873_v26 = vpop.f32.mrf.mxu0  ;;  %v977_v50 = vadd.f32 %v976_v27, %v869_v24 }
 0x1af   : > { %v980_v32 = vpop.f32.mrf.mxu1 }
 0x1b0   : > { %v875_v28 = vpop.f32.mrf.mxu0  ;;  %v981_v55 = vadd.f32 %v980_v32, %v873_v26 }
 0x1b1   : > { %v982_v40 = vpop.f32.mrf.mxu1 }
 0x1b2   : > { %v879_v30 = vpop.f32.mrf.mxu0  ;;  %v983_v61 = vadd.f32 %v982_v40, %v875_v28  ;;  %v1246_v40 = vld [vmem:[#allocation12 + $0x1f0] sm:$0xff] }
 0x1b3   : > { %v986_v51 = vpop.f32.mrf.mxu1 }
 0x1b4   : > { %v881_v34 = vpop.f32.mrf.mxu0  ;;  %v987_v5 = vadd.f32 %v986_v51, %v879_v30  ;;  %v1239_v51 = vld [vmem:[#allocation12 + $0x1b8] sm:$0xff] }
 0x1b5   : > { %v988_v63 = vpop.f32.mrf.mxu1 }
 0x1b6   : > { %v1088_v38 = vpop.f32.mrf.mxu0  ;;  %v989_v11 = vadd.f32 %v988_v63, %v881_v34 }
 0x1b7   : > { %v1111_v41 = vadd.f32 %v1088_v38, %v969_v36 }
 0x1b8   : > { %v1090_v44 = vpop.f32.mrf.mxu0 }
 0x1b9   : > { %v1131_v46 = vmul.f32 %v1124_v37, %v1111_v41  ;;  %v1112_v47 = vadd.f32 %v1090_v44, %v971_v39  ;;  %v1244_v39 = vld [vmem:[#allocation12 + $0x1e0] sm:$0xff] }
 0x1ba   : > { %v1094_v49 = vpop.f32.mrf.mxu0 }
 0x1bb   : > { %v1152_v52 = vadd.f32 %v1145_v42, %v1131_v46  ;;  %v1132_v53 = vmul.f32 %v1128_v43, %v1112_v47  ;;  %v1113_v54 = vadd.f32 %v1094_v49, %v975_v45  ;;  %v1240_v45 = vld [vmem:[#allocation12 + $0x1c0] sm:$0xff]  ;;  %v1242_v46 = vld [vmem:[#allocation12 + $0x1d0] sm:$0xff] }
 0x1bc   : > { %v1096_v56 = vpop.f32.mrf.mxu0 }
 0x1bd   : > { %v6256_v57 = vmax.f32 %v1152_v52, 0.0  ;;  %v1153_v58 = vadd.f32 %v1149_v48, %v1132_v53  ;;  %v1133_v59 = vmul.f32 %v1124_v37, %v1113_v54  ;;  %v1114_v60 = vadd.f32 %v1096_v56, %v977_v50  ;;  %v1237_v50 = vld [vmem:[#allocation12 + $0x1a8] sm:$0xff]  ;;  %v1236_v53 = vld [vmem:[#allocation12 + $0x1a0] sm:$0xff]  ;;  %v1238_v54 = vld [vmem:[#allocation12 + $0x1b0] sm:$0xff] }
 0x1be   : > { %v1100_v62 = vpop.f32.mrf.mxu0 }
 0x1bf   : > { %1168 = vst [vmem:[#allocation2] sm:$0xff] %v6256_v57  ;;  %v1161_v1 = vmax.f32 %v1153_v58, 0.0  ;;  %v1154_v2 = vadd.f32 %v1145_v42, %v1133_v59  ;;  %v1134_v3 = vmul.f32 %v1128_v43, %v1114_v60  ;;  %v1115_v4 = vadd.f32 %v1100_v62, %v981_v55  ;;  %v1233_v59 = vld [vmem:[#allocation12 + $0x188] sm:$0xff]  ;;  %v1235_v60 = vld [vmem:[#allocation12 + $0x198] sm:$0xff]  ;;  %v1234_v62 = vld [vmem:[#allocation12 + $0x190] sm:$0xff] }
 0x1c0   : > { %v1102_v6 = vpop.f32.mrf.mxu0 }
 0x1c1   : > { %1170 = vst.msk [vmem:[#allocation2 + $0x8] sm:$0xff] %vm1169_vm2, %v1161_v1  ;;  %v6260_v7 = vmax.f32 %v1154_v2, 0.0  ;;  %v1155_v8 = vadd.f32 %v1149_v48, %v1134_v3  ;;  %v1135_v9 = vmul.f32 %v1124_v37, %v1115_v4  ;;  %v1116_v10 = vadd.f32 %v1102_v6, %v983_v61  ;;  %v1232_v61 = vld [vmem:[#allocation12 + $0x180] sm:$0xff]  ;;  %v1229_v2 = vld [vmem:[#allocation12 + $0x168] sm:$0xff]  ;;  %v1231_v3 = vld [vmem:[#allocation12 + $0x178] sm:$0xff] }
 0x1c2   : > { %v1106_v12 = vpop.f32.mrf.mxu0  ;;  %v1228_v4 = vld [vmem:[#allocation12 + $0x160] sm:$0xff] }
 0x1c3   : > { %v1163_v13 = vmax.f32 %v1155_v8, 0.0  ;;  %v1156_v14 = vadd.f32 %v1145_v42, %v1135_v9  ;;  %v1136_v15 = vmul.f32 %v1128_v43, %v1116_v10  ;;  %v1117_v16 = vadd.f32 %v1106_v12, %v987_v5  ;;  %v1230_v5 = vld [vmem:[#allocation12 + $0x170] sm:$0xff]  ;;  %v1225_v8 = vld [vmem:[#allocation12 + $0x148] sm:$0xff]  ;;  %v1227_v9 = vld [vmem:[#allocation12 + $0x158] sm:$0xff] }
 0x1c4   : > { %v1108_v17 = vpop.f32.mrf.mxu0  ;;  %v1226_v12 = vld [vmem:[#allocation12 + $0x150] sm:$0xff] }
 0x1c5   : > { %1172 = vst.msk [vmem:[#allocation2 + $0x18] sm:$0xff] %vm1169_vm2, %v1163_v13  ;;  %v6263_v18 = vmax.f32 %v1156_v14, 0.0  ;;  %v1157_v19 = vadd.f32 %v1149_v48, %v1136_v15  ;;  %v1137_v20 = vmul.f32 %v1124_v37, %v1117_v16  ;;  %v1118_v21 = vadd.f32 %v1108_v17, %v989_v11  ;;  %v1224_v11 = vld [vmem:[#allocation12 + $0x140] sm:$0xff]  ;;  %v1221_v13 = vld [vmem:[#allocation12 + $0x128] sm:$0xff]  ;;  %v1223_v14 = vld [vmem:[#allocation12 + $0x138] sm:$0xff] }
 0x1c6   : > { %v1288_v28 = vld [vmem:[#allocation2] sm:$0xfe]  ;;  %v1407_v37 = vrot.slane %v6260_v7, 1  ;;  %v1220_v15 = vld [vmem:[#allocation12 + $0x120] sm:$0xff]  ;;  %v1217_v17 = vld [vmem:[#allocation12 + $0x108] sm:$0xff] }
 0x1c7   : > { %v1165_v22 = vmax.f32 %v1157_v19, 0.0  ;;  %v1158_v23 = vadd.f32 %v1145_v42, %v1137_v20  ;;  %v1138_v24 = vmul.f32 %v1128_v43, %v1118_v21  ;;  %v1406_v34 = vrot.slane %v1288_v28, 1  ;;  %v1241_v42 = vld [vmem:[#allocation12 + $0x1c8] sm:$0xff]  ;;  %v1243_v43 = vld [vmem:[#allocation12 + $0x1d8] sm:$0xff]  ;;  %v1222_v16 = vld [vmem:[#allocation12 + $0x130] sm:$0xff] }
 0x1c8   : > { %v1289_v30 = vld [vmem:[#allocation2 + $0x8] sm:$0xfe]  ;;  %v1218_v21 = vld [vmem:[#allocation12 + $0x110] sm:$0xff] }
 0x1c9   : > { %1174 = vst.msk [vmem:[#allocation2 + $0x28] sm:$0xff] %vm1169_vm2, %v1165_v22  ;;  %v1166_v26 = vmax.f32 %v1158_v23, 0.0  ;;  %v1159_v27 = vadd.f32 %v1149_v48, %v1138_v24  ;;  %v1409_v35 = vrot.slane %v1289_v30, 1  ;;  %v1408_v41 = vsel %vm1405_vm4, %v1406_v34, %v1407_v37  ;;  %v1179_v10 = vld [vmem:[#allocation2 + $0x8] sm:$0xff]  ;;  %v1213_v22 = vld [vmem:[#allocation12 + $0xe8] sm:$0xff] }
 0x1ca   : > { %v1412_v48 = vrot.slane %v6263_v18, 1  ;;  %v1219_v19 = vld [vmem:[#allocation12 + $0x118] sm:$0xff]  ;;  %v1216_v20 = vld [vmem:[#allocation12 + $0x100] sm:$0xff]  ;;  %v1205_v34 = vld [vmem:[#allocation12 + $0xa8] sm:$0xff] }
 0x1cb   : > { %1175 = vst [vmem:[#allocation2 + $0x30] sm:$0x3] %v1166_v26  ;;  %v1167_v31 = vmax.f32 %v1159_v27, 0.0  ;;  %v1215_v23 = vld [vmem:[#allocation12 + $0xf8] sm:$0xff]  ;;  %v1212_v24 = vld [vmem:[#allocation12 + $0xe0] sm:$0xff]  ;;  %v1214_v26 = vld [vmem:[#allocation12 + $0xf0] sm:$0xff] }
 0x1cc   : > { %v6266_v32 = vld [vmem:[#allocation2 + $0x18] sm:$0xff]  ;;  %v1413_v58 = vsel %vm1405_vm4, %v1407_v37, %v1412_v48  ;;  %v1211_v28 = vld [vmem:[#allocation12 + $0xd8] sm:$0xff]  ;;  %v1208_v30 = vld [vmem:[#allocation12 + $0xc0] sm:$0xff] }
 0x1cd   : > { %1177 = vst.msk [vmem:[#allocation2 + $0x38] sm:$0x3] %vm1176_vm3, %v1167_v31  ;;  %v1410_v36 = vrot.slane %v6266_v32, 1  ;;  %v1209_v27 = vld [vmem:[#allocation12 + $0xc8] sm:$0xff]  ;;  %v1210_v31 = vld [vmem:[#allocation12 + $0xd0] sm:$0xff] }
 0x1ce   : > { %v1206_v37 = vld [vmem:[#allocation12 + $0xb0] sm:$0xff] }
 0x1cf   : > { %v1411_v38 = vsel %vm1405_vm4, %v1409_v35, %v1410_v36  ;;  %v1207_v35 = vld [vmem:[#allocation12 + $0xb8] sm:$0xff] }
 0x1d0   : > { %4854 = vmatprep.mubr.msk.f32.mxu1 %vm1169_vm2, %v1411_v38  ;;  %4857 = vmatprep.mubr.msk.f32.mxu0 %vm1169_vm2, %v1411_v38  ;;  %v6275_v44 = vld [vmem:[#allocation2 + $0x28] sm:$0xff]  ;;  %v1201_v38 = vld [vmem:[#allocation12 + $0x88] sm:$0xff] }
 0x1d1   : > { %1494 = vmatmul.mubr.f32.vlgmr.msra.gmra.mxu1 %v1408_v41  ;;  %1577 = vmatmul.mubr.f32.vlgmr.msra.gmra.mxu0 %v1408_v41  ;;  %v1414_v47 = vrot.slane %v6275_v44, 1  ;;  %v1202_v41 = vld [vmem:[#allocation12 + $0x90] sm:$0xff] }
 0x1d2   : > { %1603 = vmatpush1.msra.mxu1 %v1244_v39  ;;  %1686 = vmatpush1.msra.mxu0 %v1246_v40  ;;  %v1290_v56 = vld [vmem:[#allocation2 + $0x30] sm:$0x1]  ;;  %v1203_v39 = vld [vmem:[#allocation12 + $0x98] sm:$0xff] }
 0x1d3   : > { %1604 = vmatprep.subr.mxu1 %v1241_v42  ;;  %1687 = vmatprep.subr.mxu0 %v1243_v43  ;;  %v1415_v49 = vsel %vm1405_vm4, %v1410_v36, %v1414_v47  ;;  %v1416_v1 = vrot.slane %v1290_v56, 1  ;;  %v1204_v36 = vld [vmem:[#allocation12 + $0xa0] sm:$0xff]  ;;  %v1197_v42 = vld [vmem:[#allocation12 + $0x68] sm:$0xff]  ;;  %v1199_v43 = vld [vmem:[#allocation12 + $0x78] sm:$0xff] }
 0x1d4   : > { %1605 = vmatpush1.msra.mxu1 %v1240_v45  ;;  %1688 = vmatpush1.msra.mxu0 %v1242_v46  ;;  %v1291_v52 = vld [vmem:[#allocation2 + $0x38] sm:$0x1]  ;;  %v1200_v40 = vld [vmem:[#allocation12 + $0x80] sm:$0xff]  ;;  %v1198_v46 = vld [vmem:[#allocation12 + $0x70] sm:$0xff] }
 0x1d5   : > { %4855 = vmatprep.mubr.msk.f32.mxu1 %vm1169_vm2, %v1415_v49  ;;  %4858 = vmatprep.mubr.msk.f32.mxu0 %vm1169_vm2, %v1415_v49  ;;  %v1418_v55 = vrot.slane %v1291_v52, 1  ;;  %v1417_v6 = vsel %vm1405_vm4, %v1412_v48, %v1416_v1  ;;  %v1196_v45 = vld [vmem:[#allocation12 + $0x60] sm:$0xff]  ;;  %v1195_v48 = vld [vmem:[#allocation12 + $0x58] sm:$0xff]  ;;  %v1281_v1 = vld [vmem:[#allocation12 + $0x308] sm:$0xff] }
 0x1d6   : > { %1606 = vmatprep.subr.mxu1 %v1237_v50  ;;  %1689 = vmatprep.subr.mxu0 %v1239_v51  ;;  %v1192_v49 = vld [vmem:[#allocation12 + $0x40] sm:$0xff]  ;;  %v1194_v50 = vld [vmem:[#allocation12 + $0x50] sm:$0xff]  ;;  %v1189_v51 = vld [vmem:[#allocation12 + $0x28] sm:$0xff] }
 0x1d7   : > { %1500 = vmatmul.mubr.f32.gmra.mxu1 %v1413_v58  ;;  %1583 = vmatmul.mubr.f32.gmra.mxu0 %v1413_v58  ;;  %v1419_v63 = vsel %vm1405_vm4, %v1414_v47, %v1418_v55  ;;  %v1193_v47 = vld [vmem:[#allocation12 + $0x48] sm:$0xff]  ;;  %v1191_v52 = vld [vmem:[#allocation12 + $0x38] sm:$0xff]  ;;  %v1184_v58 = vld [vmem:[#allocation12] sm:$0xff] }
 0x1d8   : > { %1607 = vmatpush1.msra.mxu1 %v1236_v53  ;;  %1690 = vmatpush1.msra.mxu0 %v1238_v54  ;;  %v1188_v53 = vld [vmem:[#allocation12 + $0x20] sm:$0xff]  ;;  %v1190_v54 = vld [vmem:[#allocation12 + $0x30] sm:$0xff]  ;;  %v1185_v55 = vld [vmem:[#allocation12 + $0x8] sm:$0xff] }
 0x1d9   : > { %1608 = vmatprep.subr.mxu1 %v1233_v59  ;;  %1691 = vmatprep.subr.mxu0 %v1235_v60  ;;  %v1187_v56 = vld [vmem:[#allocation12 + $0x18] sm:$0xff]  ;;  %v1186_v59 = vld [vmem:[#allocation12 + $0x10] sm:$0xff]  ;;  %v1285_v60 = vld [vmem:[#allocation12 + $0x328] sm:$0xff] }
 0x1da   : > { %1609 = vmatpush1.msra.mxu1 %v1232_v61  ;;  %1692 = vmatpush1.msra.mxu0 %v1234_v62  ;;  %v1287_v61 = vld [vmem:[#allocation12 + $0x338] sm:$0xff]  ;;  %v1284_v62 = vld [vmem:[#allocation12 + $0x320] sm:$0xff] }
 0x1db   : > { %4856 = vmatprep.mubr.msk.f32.mxu1 %vm1169_vm2, %v1419_v63  ;;  %4859 = vmatprep.mubr.msk.f32.mxu0 %vm1169_vm2, %v1419_v63  ;;  %v1286_v63 = vld [vmem:[#allocation12 + $0x330] sm:$0xff] }
 0x1dc   : > { %1610 = vmatprep.subr.mxu1 %v1229_v2  ;;  %1693 = vmatprep.subr.mxu0 %v1231_v3  ;;  %v1283_v2 = vld [vmem:[#allocation12 + $0x318] sm:$0xff]  ;;  %v1280_v3 = vld [vmem:[#allocation12 + $0x300] sm:$0xff] }
 0x1dd   : > { %1506 = vmatmul.mubr.f32.gmra.mxu1 %v1417_v6  ;;  %1589 = vmatmul.mubr.f32.gmra.mxu0 %v1417_v6  ;;  %v1279_v6 = vld [vmem:[#allocation12 + $0x2f8] sm:$0xff] }
 0x1de   : > { %1611 = vmatpush1.msra.mxu1 %v1228_v4  ;;  %1694 = vmatpush1.msra.mxu0 %v1230_v5  ;;  %v1282_v4 = vld [vmem:[#allocation12 + $0x310] sm:$0xff]  ;;  %v1277_v5 = vld [vmem:[#allocation12 + $0x2e8] sm:$0xff] }
 0x1df   : > { %1612 = vmatprep.subr.mxu1 %v1225_v8  ;;  %4860 = vmatprep.mubr.msk.f32.mxu1 %vm1169_vm2, %v1179_v10  ;;  %v1276_v8 = vld [vmem:[#allocation12 + $0x2e0] sm:$0xff] }
 0x1e0   : > { %1695 = vmatprep.subr.mxu0 %v1227_v9  ;;  %4863 = vmatprep.mubr.msk.f32.mxu0 %vm1169_vm2, %v1179_v10  ;;  %v1278_v9 = vld [vmem:[#allocation12 + $0x2f0] sm:$0xff]  ;;  %v1273_v10 = vld [vmem:[#allocation12 + $0x2c8] sm:$0xff] }
 0x1e1   : > { %1613 = vmatpush1.msra.mxu1 %v1224_v11  ;;  %1696 = vmatpush1.msra.mxu0 %v1226_v12  ;;  %v1275_v11 = vld [vmem:[#allocation12 + $0x2d8] sm:$0xff]  ;;  %v1272_v12 = vld [vmem:[#allocation12 + $0x2c0] sm:$0xff] }
 0x1e2   : > { %1614 = vmatprep.subr.mxu1 %v1221_v13  ;;  %1697 = vmatprep.subr.mxu0 %v1223_v14  ;;  %v1274_v13 = vld [vmem:[#allocation12 + $0x2d0] sm:$0xff]  ;;  %v1269_v14 = vld [vmem:[#allocation12 + $0x2a8] sm:$0xff] }
 0x1e3   : > { %1615 = vmatpush1.msra.mxu1 %v1220_v15  ;;  %1698 = vmatpush1.msra.mxu0 %v1222_v16  ;;  %v1271_v15 = vld [vmem:[#allocation12 + $0x2b8] sm:$0xff]  ;;  %v1268_v16 = vld [vmem:[#allocation12 + $0x2a0] sm:$0xff] }
 0x1e4   : > { %1616 = vmatprep.subr.mxu1 %v1217_v17  ;;  %1699 = vmatprep.subr.mxu0 %v1219_v19  ;;  %v1270_v17 = vld [vmem:[#allocation12 + $0x2b0] sm:$0xff]  ;;  %v1265_v19 = vld [vmem:[#allocation12 + $0x288] sm:$0xff] }
 0x1e5   : > { %1617 = vmatpush1.msra.mxu1 %v1216_v20  ;;  %1700 = vmatpush1.msra.mxu0 %v1218_v21  ;;  %v1267_v20 = vld [vmem:[#allocation12 + $0x298] sm:$0xff]  ;;  %v1264_v21 = vld [vmem:[#allocation12 + $0x280] sm:$0xff] }
 0x1e6   : > { %1618 = vmatprep.subr.mxu1 %v1213_v22  ;;  %1701 = vmatprep.subr.mxu0 %v1215_v23  ;;  %v1266_v22 = vld [vmem:[#allocation12 + $0x290] sm:$0xff]  ;;  %v1261_v23 = vld [vmem:[#allocation12 + $0x268] sm:$0xff] }
 0x1e7   : > { %1619 = vmatpush1.msra.mxu1 %v1212_v24  ;;  %1702 = vmatpush1.msra.mxu0 %v1214_v26  ;;  %v1263_v24 = vld [vmem:[#allocation12 + $0x278] sm:$0xff]  ;;  %v1260_v26 = vld [vmem:[#allocation12 + $0x260] sm:$0xff] }
 0x1e8   : > { %1620 = vmatprep.subr.mxu1 %v1209_v27  ;;  %1703 = vmatprep.subr.mxu0 %v1211_v28  ;;  %v1262_v27 = vld [vmem:[#allocation12 + $0x270] sm:$0xff]  ;;  %v1257_v28 = vld [vmem:[#allocation12 + $0x248] sm:$0xff] }
 0x1e9   : > { %1621 = vmatpush1.msra.mxu1 %v1208_v30  ;;  %1704 = vmatpush1.msra.mxu0 %v1210_v31  ;;  %v1259_v30 = vld [vmem:[#allocation12 + $0x258] sm:$0xff]  ;;  %v1256_v31 = vld [vmem:[#allocation12 + $0x240] sm:$0xff] }
 0x1ea   : > { %1622 = vmatprep.subr.mxu1 %v1205_v34  ;;  %1705 = vmatprep.subr.mxu0 %v1207_v35  ;;  %v1258_v34 = vld [vmem:[#allocation12 + $0x250] sm:$0xff]  ;;  %v1253_v35 = vld [vmem:[#allocation12 + $0x228] sm:$0xff] }
 0x1eb   : > { %1623 = vmatpush1.msra.mxu1 %v1204_v36  ;;  %1706 = vmatpush1.msra.mxu0 %v1206_v37  ;;  %v1255_v36 = vld [vmem:[#allocation12 + $0x238] sm:$0xff]  ;;  %v1252_v37 = vld [vmem:[#allocation12 + $0x220] sm:$0xff] }
 0x1ec   : > { %1624 = vmatprep.subr.mxu1 %v1201_v38  ;;  %1707 = vmatprep.subr.mxu0 %v1203_v39  ;;  %v1254_v38 = vld [vmem:[#allocation12 + $0x230] sm:$0xff]  ;;  %v1249_v39 = vld [vmem:[#allocation12 + $0x208] sm:$0xff] }
 0x1ed   : > { %1625 = vmatpush1.msra.mxu1 %v1200_v40  ;;  %1708 = vmatpush1.msra.mxu0 %v1202_v41  ;;  %v1251_v40 = vld [vmem:[#allocation12 + $0x218] sm:$0xff]  ;;  %v1248_v41 = vld [vmem:[#allocation12 + $0x200] sm:$0xff] }
 0x1ee   : > { %1626 = vmatprep.subr.mxu1 %v1197_v42  ;;  %1709 = vmatprep.subr.mxu0 %v1199_v43  ;;  %v1250_v42 = vld [vmem:[#allocation12 + $0x210] sm:$0xff]  ;;  %v1834_v43 = vld [vmem:[#allocation12 + $0x868] sm:$0xff] }
 0x1ef   : > { %1627 = vmatpush1.msra.mxu1 %v1196_v45  ;;  %1710 = vmatpush1.msra.mxu0 %v1198_v46  ;;  %v1836_v45 = vld [vmem:[#allocation12 + $0x878] sm:$0xff]  ;;  %v1833_v46 = vld [vmem:[#allocation12 + $0x860] sm:$0xff] }
 0x1f0   : > { %1628 = vmatprep.subr.mxu1 %v1193_v47  ;;  %1711 = vmatprep.subr.mxu0 %v1195_v48  ;;  %v1835_v47 = vld [vmem:[#allocation12 + $0x870] sm:$0xff]  ;;  %v1830_v48 = vld [vmem:[#allocation12 + $0x848] sm:$0xff] }
 0x1f1   : > { %1629 = vmatpush1.msra.mxu1 %v1192_v49  ;;  %1712 = vmatpush1.msra.mxu0 %v1194_v50  ;;  %v1832_v49 = vld [vmem:[#allocation12 + $0x858] sm:$0xff]  ;;  %v1829_v50 = vld [vmem:[#allocation12 + $0x840] sm:$0xff] }
 0x1f2   : > { %1630 = vmatprep.subr.mxu1 %v1189_v51  ;;  %1713 = vmatprep.subr.mxu0 %v1191_v52  ;;  %v1831_v51 = vld [vmem:[#allocation12 + $0x850] sm:$0xff]  ;;  %v1826_v52 = vld [vmem:[#allocation12 + $0x828] sm:$0xff] }
 0x1f3   : > { %1631 = vmatpush1.msra.mxu1 %v1188_v53  ;;  %1714 = vmatpush1.msra.mxu0 %v1190_v54  ;;  %v1825_v53 = vld [vmem:[#allocation12 + $0x820] sm:$0xff]  ;;  %v1827_v54 = vld [vmem:[#allocation12 + $0x830] sm:$0xff] }
 0x1f4   : > { %1632 = vmatprep.subr.mxu1 %v1185_v55  ;;  %1715 = vmatprep.subr.mxu0 %v1187_v56  ;;  %v1822_v55 = vld [vmem:[#allocation12 + $0x808] sm:$0xff]  ;;  %v1824_v56 = vld [vmem:[#allocation12 + $0x818] sm:$0xff] }
 0x1f5   : > { %1633 = vmatpush1.msra.mxu1 %v1184_v58  ;;  %1716 = vmatpush1.msra.mxu0 %v1186_v59  ;;  %v1821_v58 = vld [vmem:[#allocation12 + $0x800] sm:$0xff]  ;;  %v1823_v59 = vld [vmem:[#allocation12 + $0x810] sm:$0xff] }
 0x1f6   : > { %1646 = vmatprep.subr.mxu1 %v1285_v60  ;;  %1729 = vmatprep.subr.mxu0 %v1287_v61  ;;  %v1769_v60 = vld [vmem:[#allocation2 + $0x8] sm:$0xfc]  ;;  %v1886_v61 = vrot.slane %v6266_v32, 2 }
 0x1f7   : > { %1647 = vmatpush2.msra.mxu1 %v1284_v62  ;;  %1730 = vmatpush2.msra.mxu0 %v1286_v63  ;;  %v1818_v62 = vld [vmem:[#allocation12 + $0x7e8] sm:$0xff]  ;;  %v1820_v63 = vld [vmem:[#allocation12 + $0x7f8] sm:$0xff] }
 0x1f8   : > { %1648 = vmatprep.subr.mxu1 %v1281_v1  ;;  %1731 = vmatprep.subr.mxu0 %v1283_v2  ;;  %v1817_v1 = vld [vmem:[#allocation12 + $0x7e0] sm:$0xff]  ;;  %v1885_v2 = vrot.slane %v1769_v60, 2  ;;  %v1870_v60 = vld [vmem:[#allocation12 + $0x988] sm:$0xff] }
 0x1f9   : > { %1649 = vmatpush2.msra.mxu1 %v1280_v3  ;;  %1732 = vmatpush2.msra.mxu0 %v1282_v4  ;;  %v1819_v3 = vld [vmem:[#allocation12 + $0x7f0] sm:$0xff] }
 0x1fa   : > { %1650 = vmatprep.subr.mxu1 %v1277_v5  ;;  %1733 = vmatprep.subr.mxu0 %v1279_v6  ;;  %v1887_v4 = vsel %vm1881_vm5, %v1885_v2, %v1886_v61  ;;  %v1814_v5 = vld [vmem:[#allocation12 + $0x7c8] sm:$0xff]  ;;  %v1816_v6 = vld [vmem:[#allocation12 + $0x7d8] sm:$0xff] }
 0x1fb   : > { %1651 = vmatpush2.msra.mxu1 %v1276_v8  ;;  %1734 = vmatpush2.msra.mxu0 %v1278_v9  ;;  %v1813_v8 = vld [vmem:[#allocation12 + $0x7c0] sm:$0xff]  ;;  %v1815_v9 = vld [vmem:[#allocation12 + $0x7d0] sm:$0xff]  ;;  %v1866_v2 = vld [vmem:[#allocation12 + $0x968] sm:$0xff] }
 0x1fc   : > { %1652 = vmatprep.subr.mxu1 %v1273_v10  ;;  %1735 = vmatprep.subr.mxu0 %v1275_v11  ;;  %v1810_v10 = vld [vmem:[#allocation12 + $0x7a8] sm:$0xff]  ;;  %v1812_v11 = vld [vmem:[#allocation12 + $0x7b8] sm:$0xff] }
 0x1fd   : > { %1653 = vmatpush2.msra.mxu1 %v1272_v12  ;;  %1736 = vmatpush2.msra.mxu0 %v1274_v13  ;;  %v1809_v12 = vld [vmem:[#allocation12 + $0x7a0] sm:$0xff]  ;;  %v1811_v13 = vld [vmem:[#allocation12 + $0x7b0] sm:$0xff] }
 0x1fe   : > { %1654 = vmatprep.subr.mxu1 %v1269_v14  ;;  %1737 = vmatprep.subr.mxu0 %v1271_v15  ;;  %v1806_v14 = vld [vmem:[#allocation12 + $0x788] sm:$0xff]  ;;  %v1808_v15 = vld [vmem:[#allocation12 + $0x798] sm:$0xff] }
 0x1ff   : > { %1655 = vmatpush2.msra.mxu1 %v1268_v16  ;;  %1738 = vmatpush2.msra.mxu0 %v1270_v17  ;;  %v1805_v16 = vld [vmem:[#allocation12 + $0x780] sm:$0xff]  ;;  %v1807_v17 = vld [vmem:[#allocation12 + $0x790] sm:$0xff] }
 0x200   : > { %1656 = vmatprep.subr.mxu1 %v1265_v19  ;;  %1739 = vmatprep.subr.mxu0 %v1267_v20  ;;  %v1802_v19 = vld [vmem:[#allocation12 + $0x768] sm:$0xff]  ;;  %v1804_v20 = vld [vmem:[#allocation12 + $0x778] sm:$0xff] }
 0x201   : > { %1657 = vmatpush2.msra.mxu1 %v1264_v21  ;;  %1740 = vmatpush2.msra.mxu0 %v1266_v22  ;;  %v1801_v21 = vld [vmem:[#allocation12 + $0x760] sm:$0xff]  ;;  %v1803_v22 = vld [vmem:[#allocation12 + $0x770] sm:$0xff] }
 0x202   : > { %1658 = vmatprep.subr.mxu1 %v1261_v23  ;;  %1741 = vmatprep.subr.mxu0 %v1263_v24  ;;  %v1798_v23 = vld [vmem:[#allocation12 + $0x748] sm:$0xff]  ;;  %v1800_v24 = vld [vmem:[#allocation12 + $0x758] sm:$0xff] }
 0x203   : > { %1659 = vmatpush2.msra.mxu1 %v1260_v26  ;;  %1742 = vmatpush2.msra.mxu0 %v1262_v27  ;;  %v1797_v26 = vld [vmem:[#allocation12 + $0x740] sm:$0xff]  ;;  %v1799_v27 = vld [vmem:[#allocation12 + $0x750] sm:$0xff] }
 0x204   : > { %1660 = vmatprep.subr.mxu1 %v1257_v28  ;;  %1743 = vmatprep.subr.mxu0 %v1259_v30  ;;  %v1794_v28 = vld [vmem:[#allocation12 + $0x728] sm:$0xff]  ;;  %v1796_v30 = vld [vmem:[#allocation12 + $0x738] sm:$0xff] }
 0x205   : > { %1661 = vmatpush2.msra.mxu1 %v1256_v31  ;;  %1744 = vmatpush2.msra.mxu0 %v1258_v34  ;;  %v1793_v31 = vld [vmem:[#allocation12 + $0x720] sm:$0xff]  ;;  %v1795_v34 = vld [vmem:[#allocation12 + $0x730] sm:$0xff] }
 0x206   : > { %1662 = vmatprep.subr.mxu1 %v1253_v35  ;;  %1745 = vmatprep.subr.mxu0 %v1255_v36  ;;  %v1790_v35 = vld [vmem:[#allocation12 + $0x708] sm:$0xff]  ;;  %v1792_v36 = vld [vmem:[#allocation12 + $0x718] sm:$0xff] }
 0x207   : > { %1663 = vmatpush2.msra.mxu1 %v1252_v37  ;;  %1746 = vmatpush2.msra.mxu0 %v1254_v38  ;;  %v1789_v37 = vld [vmem:[#allocation12 + $0x700] sm:$0xff]  ;;  %v1791_v38 = vld [vmem:[#allocation12 + $0x710] sm:$0xff] }
 0x208   : > { %1664 = vmatprep.subr.mxu1 %v1249_v39  ;;  %1747 = vmatprep.subr.mxu0 %v1251_v40  ;;  %v1786_v39 = vld [vmem:[#allocation12 + $0x6e8] sm:$0xff]  ;;  %v1788_v40 = vld [vmem:[#allocation12 + $0x6f8] sm:$0xff] }
 0x209   : > { %1665 = vmatpush2.msra.mxu1 %v1248_v41  ;;  %1748 = vmatpush2.msra.mxu0 %v1250_v42  ;;  %v1785_v41 = vld [vmem:[#allocation12 + $0x6e0] sm:$0xff]  ;;  %v1787_v42 = vld [vmem:[#allocation12 + $0x6f0] sm:$0xff] }
 0x20a   : > { %1667 = vmatmul.mubr.f32.vlgmr.msra.gmra.mxu1 %v6256_v57  ;;  %1750 = vmatmul.mubr.f32.vlgmr.msra.gmra.mxu0 %v6256_v57  ;;  %v1828_v57 = vld [vmem:[#allocation12 + $0x838] sm:$0xff] }
 0x20b   : > { %1905 = vmatprep.subr.mxu1 %v1834_v43  ;;  %1988 = vmatprep.subr.mxu0 %v1836_v45  ;;  %v1782_v43 = vld [vmem:[#allocation12 + $0x6c8] sm:$0xff]  ;;  %v1784_v45 = vld [vmem:[#allocation12 + $0x6d8] sm:$0xff] }
 0x20c   : > { %4861 = vmatprep.mubr.msk.f32.mxu1 %vm1169_vm2, %v6266_v32  ;;  %4864 = vmatprep.mubr.msk.f32.mxu0 %vm1169_vm2, %v6266_v32 }
 0x20d   : > { %1906 = vmatpush1.msra.mxu1 %v1833_v46  ;;  %1989 = vmatpush1.msra.mxu0 %v1835_v47  ;;  %v1781_v46 = vld [vmem:[#allocation12 + $0x6c0] sm:$0xff]  ;;  %v1783_v47 = vld [vmem:[#allocation12 + $0x6d0] sm:$0xff] }
 0x20e   : > { %1907 = vmatprep.subr.mxu1 %v1830_v48  ;;  %1990 = vmatprep.subr.mxu0 %v1832_v49  ;;  %v1778_v48 = vld [vmem:[#allocation12 + $0x6a8] sm:$0xff]  ;;  %v1780_v49 = vld [vmem:[#allocation12 + $0x6b8] sm:$0xff] }
 0x20f   : > { %1908 = vmatpush1.msra.mxu1 %v1829_v50  ;;  %1991 = vmatpush1.msra.mxu0 %v1831_v51  ;;  %v1777_v50 = vld [vmem:[#allocation12 + $0x6a0] sm:$0xff]  ;;  %v1779_v51 = vld [vmem:[#allocation12 + $0x6b0] sm:$0xff] }
 0x210   : > { %1673 = vmatmul.mubr.f32.gmra.mxu1 %v6260_v7  ;;  %1756 = vmatmul.mubr.f32.gmra.mxu0 %v6260_v7 }
 0x211   : > { %1909 = vmatprep.subr.mxu1 %v1826_v52  ;;  %1992 = vmatprep.subr.mxu0 %v1828_v57  ;;  %v1774_v52 = vld [vmem:[#allocation12 + $0x688] sm:$0xff]  ;;  %v1776_v57 = vld [vmem:[#allocation12 + $0x698] sm:$0xff] }
 0x212   : > { %4862 = vmatprep.mubr.msk.f32.mxu1 %vm1169_vm2, %v6275_v44  ;;  %4865 = vmatprep.mubr.msk.f32.mxu0 %vm1169_vm2, %v6275_v44 }
 0x213   : > { %1910 = vmatpush1.msra.mxu1 %v1825_v53  ;;  %1993 = vmatpush1.msra.mxu0 %v1827_v54  ;;  %v1773_v53 = vld [vmem:[#allocation12 + $0x680] sm:$0xff]  ;;  %v1775_v54 = vld [vmem:[#allocation12 + $0x690] sm:$0xff] }
 0x214   : > { %1911 = vmatprep.subr.mxu1 %v1822_v55  ;;  %1994 = vmatprep.subr.mxu0 %v1824_v56  ;;  %v1874_v55 = vld [vmem:[#allocation12 + $0x9a8] sm:$0xff]  ;;  %v1876_v56 = vld [vmem:[#allocation12 + $0x9b8] sm:$0xff] }
 0x215   : > { %1912 = vmatpush1.msra.mxu1 %v1821_v58  ;;  %1995 = vmatpush1.msra.mxu0 %v1823_v59  ;;  %v1873_v58 = vld [vmem:[#allocation12 + $0x9a0] sm:$0xff]  ;;  %v1875_v59 = vld [vmem:[#allocation12 + $0x9b0] sm:$0xff] }
 0x216   : > { %1679 = vmatmul.mubr.f32.gmra.mxu1 %v6263_v18  ;;  %1762 = vmatmul.mubr.f32.gmra.mxu0 %v6263_v18 }
 0x217   : > { %1913 = vmatprep.subr.mxu1 %v1818_v62  ;;  %1996 = vmatprep.subr.mxu0 %v1820_v63  ;;  %v1872_v62 = vld [vmem:[#allocation12 + $0x998] sm:$0xff]  ;;  %v1869_v63 = vld [vmem:[#allocation12 + $0x980] sm:$0xff] }
 0x218   : > { %1914 = vmatpush1.msra.mxu1 %v1817_v1  ;;  %4866 = vmatprep.mubr.msk.f32.mxu1 %vm1169_vm2, %v1887_v4  ;;  %v1871_v1 = vld [vmem:[#allocation12 + $0x990] sm:$0xff] }
 0x219   : > { %1997 = vmatpush1.msra.mxu0 %v1819_v3  ;;  %4869 = vmatprep.mubr.msk.f32.mxu0 %vm1169_vm2, %v1887_v4  ;;  %v1868_v3 = vld [vmem:[#allocation12 + $0x978] sm:$0xff]  ;;  %v1865_v4 = vld [vmem:[#allocation12 + $0x960] sm:$0xff] }
 0x21a   : > { %1915 = vmatprep.subr.mxu1 %v1814_v5  ;;  %1998 = vmatprep.subr.mxu0 %v1816_v6  ;;  %v1867_v5 = vld [vmem:[#allocation12 + $0x970] sm:$0xff]  ;;  %v1862_v6 = vld [vmem:[#allocation12 + $0x948] sm:$0xff] }
 0x21b   : > { %1916 = vmatpush1.msra.mxu1 %v1813_v8  ;;  %1999 = vmatpush1.msra.mxu0 %v1815_v9  ;;  %v1864_v8 = vld [vmem:[#allocation12 + $0x958] sm:$0xff]  ;;  %v1861_v9 = vld [vmem:[#allocation12 + $0x940] sm:$0xff] }
 0x21c   : > { %1917 = vmatprep.subr.mxu1 %v1810_v10  ;;  %2000 = vmatprep.subr.mxu0 %v1812_v11  ;;  %v1863_v10 = vld [vmem:[#allocation12 + $0x950] sm:$0xff]  ;;  %v1858_v11 = vld [vmem:[#allocation12 + $0x928] sm:$0xff] }
 0x21d   : > { %1918 = vmatpush1.msra.mxu1 %v1809_v12  ;;  %2001 = vmatpush1.msra.mxu0 %v1811_v13  ;;  %v1860_v12 = vld [vmem:[#allocation12 + $0x938] sm:$0xff]  ;;  %v1857_v13 = vld [vmem:[#allocation12 + $0x920] sm:$0xff] }
 0x21e   : > { %1919 = vmatprep.subr.mxu1 %v1806_v14  ;;  %2002 = vmatprep.subr.mxu0 %v1808_v15  ;;  %v1859_v14 = vld [vmem:[#allocation12 + $0x930] sm:$0xff]  ;;  %v1854_v15 = vld [vmem:[#allocation12 + $0x908] sm:$0xff] }
 0x21f   : > { %1920 = vmatpush1.msra.mxu1 %v1805_v16  ;;  %2003 = vmatpush1.msra.mxu0 %v1807_v17  ;;  %v1856_v16 = vld [vmem:[#allocation12 + $0x918] sm:$0xff]  ;;  %v1853_v17 = vld [vmem:[#allocation12 + $0x900] sm:$0xff] }
 0x220   : > { %1921 = vmatprep.subr.mxu1 %v1802_v19  ;;  %2004 = vmatprep.subr.mxu0 %v1804_v20  ;;  %v1855_v19 = vld [vmem:[#allocation12 + $0x910] sm:$0xff]  ;;  %v1850_v20 = vld [vmem:[#allocation12 + $0x8e8] sm:$0xff] }
 0x221   : > { %1922 = vmatpush1.msra.mxu1 %v1801_v21  ;;  %2005 = vmatpush1.msra.mxu0 %v1803_v22  ;;  %v1852_v21 = vld [vmem:[#allocation12 + $0x8f8] sm:$0xff]  ;;  %v1849_v22 = vld [vmem:[#allocation12 + $0x8e0] sm:$0xff] }
 0x222   : > { %1923 = vmatprep.subr.mxu1 %v1798_v23  ;;  %2006 = vmatprep.subr.mxu0 %v1800_v24  ;;  %v1851_v23 = vld [vmem:[#allocation12 + $0x8f0] sm:$0xff]  ;;  %v1846_v24 = vld [vmem:[#allocation12 + $0x8c8] sm:$0xff] }
 0x223   : > { %1924 = vmatpush1.msra.mxu1 %v1797_v26  ;;  %2007 = vmatpush1.msra.mxu0 %v1799_v27  ;;  %v1848_v26 = vld [vmem:[#allocation12 + $0x8d8] sm:$0xff]  ;;  %v1845_v27 = vld [vmem:[#allocation12 + $0x8c0] sm:$0xff] }
 0x224   : > { %1925 = vmatprep.subr.mxu1 %v1794_v28  ;;  %2008 = vmatprep.subr.mxu0 %v1796_v30  ;;  %v1847_v28 = vld [vmem:[#allocation12 + $0x8d0] sm:$0xff]  ;;  %v1768_v30 = vld [vmem:[#allocation2] sm:$0xfc] }
 0x225   : > { %1926 = vmatpush1.msra.mxu1 %v1793_v31  ;;  %2009 = vmatpush1.msra.mxu0 %v1795_v34  ;;  %v1842_v31 = vld [vmem:[#allocation12 + $0x8a8] sm:$0xff]  ;;  %v1844_v34 = vld [vmem:[#allocation12 + $0x8b8] sm:$0xff] }
 0x226   : > { %1927 = vmatprep.subr.mxu1 %v1790_v35  ;;  %2010 = vmatprep.subr.mxu0 %v1792_v36  ;;  %v1841_v35 = vld [vmem:[#allocation12 + $0x8a0] sm:$0xff]  ;;  %v1843_v36 = vld [vmem:[#allocation12 + $0x8b0] sm:$0xff] }
 0x227   : > { %1928 = vmatpush1.msra.mxu1 %v1789_v37  ;;  %2011 = vmatpush1.msra.mxu0 %v1791_v38  ;;  %v1838_v37 = vld [vmem:[#allocation12 + $0x888] sm:$0xff]  ;;  %v1840_v38 = vld [vmem:[#allocation12 + $0x898] sm:$0xff] }
 0x228   : > { %1929 = vmatprep.subr.mxu1 %v1786_v39  ;;  %2012 = vmatprep.subr.mxu0 %v1788_v40  ;;  %v1882_v39 = vrot.slane %v1768_v30, 2  ;;  %v1837_v40 = vld [vmem:[#allocation12 + $0x880] sm:$0xff] }
 0x229   : > { %1930 = vmatpush1.msra.mxu1 %v1785_v41  ;;  %2013 = vmatpush1.msra.mxu0 %v1787_v42  ;;  %v1839_v41 = vld [vmem:[#allocation12 + $0x890] sm:$0xff]  ;;  %v1890_v42 = vrot.slane %v6275_v44, 2 }
 0x22a   : > { %1931 = vmatprep.subr.mxu1 %v1782_v43  ;;  %2014 = vmatprep.subr.mxu0 %v1784_v45  ;;  %v1883_v43 = vrot.slane %v6260_v7, 2  ;;  %v1771_v45 = vld [vmem:[#allocation2 + $0x38] sm:$0x3] }
 0x22b   : > { %1932 = vmatpush1.msra.mxu1 %v1781_v46  ;;  %2015 = vmatpush1.msra.mxu0 %v1783_v47  ;;  %v1888_v47 = vrot.slane %v6263_v18, 2  ;;  %v1894_v44 = vrot.slane %v1771_v45, 2 }
 0x22c   : > { %1933 = vmatprep.subr.mxu1 %v1778_v48  ;;  %2016 = vmatprep.subr.mxu0 %v1780_v49  ;;  %v1884_v46 = vsel %vm1881_vm5, %v1882_v39, %v1883_v43  ;;  %v1891_v48 = vsel %vm1881_vm5, %v1886_v61, %v1890_v42  ;;  %v1770_v49 = vld [vmem:[#allocation2 + $0x30] sm:$0x3] }
 0x22d   : > { %1934 = vmatpush1.msra.mxu1 %v1777_v50  ;;  %2017 = vmatpush1.msra.mxu0 %v1779_v51  ;;  %v1889_v7 = vsel %vm1881_vm5, %v1883_v43, %v1888_v47  ;;  %v1892_v50 = vrot.slane %v1770_v49, 2  ;;  %v1895_v51 = vsel %vm1881_vm5, %v1890_v42, %v1894_v44 }
 0x22e   : > { %1935 = vmatprep.subr.mxu1 %v1774_v52  ;;  %2018 = vmatprep.subr.mxu0 %v1776_v57 }
 0x22f   : > { %1936 = vmatpush1.msra.mxu1 %v1773_v53  ;;  %2019 = vmatpush1.msra.mxu0 %v1775_v54  ;;  %v1893_v18 = vsel %vm1881_vm5, %v1888_v47, %v1892_v50 }
 0x230   : > { %1949 = vmatprep.subr.mxu1 %v1874_v55  ;;  %2032 = vmatprep.subr.mxu0 %v1876_v56 }
 0x231   : > { %1950 = vmatpush2.msra.mxu1 %v1873_v58  ;;  %2033 = vmatpush2.msra.mxu0 %v1875_v59 }
 0x232   : > { %1951 = vmatprep.subr.mxu1 %v1870_v60  ;;  %2034 = vmatprep.subr.mxu0 %v1872_v62 }
 0x233   : > { %1952 = vmatpush2.msra.mxu1 %v1869_v63  ;;  %2035 = vmatpush2.msra.mxu0 %v1871_v1 }
 0x234   : > { %1953 = vmatprep.subr.mxu1 %v1866_v2  ;;  %2036 = vmatprep.subr.mxu0 %v1868_v3 }
 0x235   : > { %1954 = vmatpush2.msra.mxu1 %v1865_v4  ;;  %2037 = vmatpush2.msra.mxu0 %v1867_v5 }
 0x236   : > { %1955 = vmatprep.subr.mxu1 %v1862_v6  ;;  %2038 = vmatprep.subr.mxu0 %v1864_v8 }
 0x237   : > { %1956 = vmatpush2.msra.mxu1 %v1861_v9  ;;  %2039 = vmatpush2.msra.mxu0 %v1863_v10 }
 0x238   : > { %1957 = vmatprep.subr.mxu1 %v1858_v11  ;;  %2040 = vmatprep.subr.mxu0 %v1860_v12 }
 0x239   : > { %1958 = vmatpush2.msra.mxu1 %v1857_v13  ;;  %2041 = vmatpush2.msra.mxu0 %v1859_v14 }
 0x23a   : > { %1959 = vmatprep.subr.mxu1 %v1854_v15  ;;  %2042 = vmatprep.subr.mxu0 %v1856_v16 }
 0x23b   : > { %1960 = vmatpush2.msra.mxu1 %v1853_v17  ;;  %2043 = vmatpush2.msra.mxu0 %v1855_v19  ;;  %v2083_v17 = vld [vmem:[#allocation13] ss:$2 sm:$0xf]  ;;  %v2095_v19 = vsub.s32 2, %v6244_v25 }
 0x23c   : > { %1961 = vmatprep.subr.mxu1 %v1850_v20  ;;  %2044 = vmatprep.subr.mxu0 %v1852_v21  ;;  %v2092_v39 = vrot.slane %v2083_v17, %v6250_v33 }
 0x23d   : > { %1962 = vmatpush2.msra.mxu1 %v1849_v22  ;;  %2045 = vmatpush2.msra.mxu0 %v1851_v23  ;;  %v2118_v23 = vld [vmem:[#allocation13 + $0x1] ss:$2 sm:$0xf] }
 0x23e   : > { %1963 = vmatprep.subr.mxu1 %v1846_v24  ;;  %2046 = vmatprep.subr.mxu0 %v1848_v26  ;;  %v2088_v26 = vrot.slane %v2083_v17, %v6247_v29 }
 0x23f   : > { %1964 = vmatpush2.msra.mxu1 %v1845_v27  ;;  %2047 = vmatpush2.msra.mxu0 %v1847_v28  ;;  %v2099_v27 = vsub.s32 3, %v6244_v25 }
 0x240   : > { %1965 = vmatprep.subr.mxu1 %v1842_v31  ;;  %2048 = vmatprep.subr.mxu0 %v1844_v34 }
 0x241   : > { %1966 = vmatpush2.msra.mxu1 %v1841_v35  ;;  %2049 = vmatpush2.msra.mxu0 %v1843_v36  ;;  %v2096_v35 = vrot.slane %v2083_v17, %v2095_v19  ;;  %v2100_v49 = vrot.slane %v2083_v17, %v2099_v27 }
 0x242   : > { %1967 = vmatprep.subr.mxu1 %v1838_v37  ;;  %2050 = vmatprep.subr.mxu0 %v1840_v38  ;;  %v2123_v38 = vrot.slane %v2118_v23, %v6247_v29 }
 0x243   : > { %1968 = vmatpush2.msra.mxu1 %v1837_v40  ;;  %2051 = vmatpush2.msra.mxu0 %v1839_v41 }
 0x244   : > { %1970 = vmatmul.mubr.f32.vlgmr.msra.gmra.mxu1 %v1884_v46  ;;  %2053 = vmatmul.mubr.f32.vlgmr.msra.gmra.mxu0 %v1884_v46 }
 0x245   : > { %4867 = vmatprep.mubr.msk.f32.mxu1 %vm1169_vm2, %v1891_v48  ;;  %4870 = vmatprep.mubr.msk.f32.mxu0 %vm1169_vm2, %v1891_v48 }
 0x248   : > { %1976 = vmatmul.mubr.f32.gmra.mxu1 %v1889_v7  ;;  %2059 = vmatmul.mubr.f32.gmra.mxu0 %v1889_v7 }
 0x249   : > { %4868 = vmatprep.mubr.msk.f32.mxu1 %vm1169_vm2, %v1895_v51  ;;  %4871 = vmatprep.mubr.msk.f32.mxu0 %vm1169_vm2, %v1895_v51 }
 0x24c   : > { %1982 = vmatmul.mubr.f32.gmra.mxu1 %v1893_v18  ;;  %2065 = vmatmul.mubr.f32.gmra.mxu0 %v1893_v18 }
 0x24d   : > { %2237 = vmatprep.mubr.f32.mxu1 %v5887_v0  ;;  %2400 = vmatprep.mubr.f32.mxu0 %v5887_v0 }
 0x291   : > { %v1495_v32 = vpop.f32.mrf.mxu1  ;;  %v6325_v61 = vpop.f32.mrf.mxu0 }
 0x293   : > { %v1497_v52 = vpop.f32.mrf.mxu1  ;;  %v6327_v57 = vpop.f32.mrf.mxu0 }
 0x297   : > { %v1501_v53 = vpop.f32.mrf.mxu1  ;;  %v1584_v54 = vpop.f32.mrf.mxu0 }
 0x299   : > { %v1503_v55 = vpop.f32.mrf.mxu1  ;;  %v1586_v56 = vpop.f32.mrf.mxu0 }
 0x29d   : > { %v1507_v58 = vpop.f32.mrf.mxu1  ;;  %v1590_v59 = vpop.f32.mrf.mxu0 }
 0x29f   : > { %v1509_v60 = vpop.f32.mrf.mxu1  ;;  %v1592_v62 = vpop.f32.mrf.mxu0 }
 0x2ca   : > { %v1668_v63 = vpop.f32.mrf.mxu1  ;;  %v1751_v1 = vpop.f32.mrf.mxu0 }
 0x2cb   : > { %v1669_v37 = vadd.f32 %v1668_v63, %v1495_v32  ;;  %v2127_v63 = vrot.slane %v2118_v23, %v6250_v33 }
 0x2cc   : > { %v1670_v2 = vpop.f32.mrf.mxu1  ;;  %v1753_v3 = vpop.f32.mrf.mxu0 }
 0x2cd   : > { %v1671_v31 = vadd.f32 %v1670_v2, %v1497_v52 }
 0x2d0   : > { %v1674_v4 = vpop.f32.mrf.mxu1  ;;  %v1757_v5 = vpop.f32.mrf.mxu0 }
 0x2d1   : > { %v1675_v24 = vadd.f32 %v1674_v4, %v1501_v53  ;;  %v1758_v53 = vadd.f32 %v1757_v5, %v1584_v54 }
 0x2d2   : > { %v1676_v6 = vpop.f32.mrf.mxu1  ;;  %v1759_v8 = vpop.f32.mrf.mxu0 }
 0x2d3   : > { %v1677_v22 = vadd.f32 %v1676_v6, %v1503_v55  ;;  %v1760_v48 = vadd.f32 %v1759_v8, %v1586_v56  ;;  %v1752_v56 = vadd.f32 %v1751_v1, %v6325_v61 }
 0x2d6   : > { %v1680_v9 = vpop.f32.mrf.mxu1  ;;  %v1763_v10 = vpop.f32.mrf.mxu0 }
 0x2d7   : > { %v1681_v34 = vadd.f32 %v1680_v9, %v1507_v58  ;;  %v1764_v25 = vadd.f32 %v1763_v10, %v1590_v59 }
 0x2d8   : > { %v1682_v11 = vpop.f32.mrf.mxu1  ;;  %v1765_v12 = vpop.f32.mrf.mxu0 }
 0x2d9   : > { %v1683_v43 = vadd.f32 %v1682_v11, %v1509_v60  ;;  %v1766_v45 = vadd.f32 %v1765_v12, %v1592_v62  ;;  %v1754_v60 = vadd.f32 %v1753_v3, %v6327_v57  ;;  %v2131_v3 = vrot.slane %v2118_v23, %v2095_v19  ;;  %v2164_v19 = vld [vmem:[%s6834_s5] sm:$0xff] }
 0x304   : > { %v1971_v13 = vpop.f32.mrf.mxu1  ;;  %v2054_v14 = vpop.f32.mrf.mxu0 }
 0x305   : > { %v2071_v44 = vadd.f32 %v1971_v13, %v1669_v37  ;;  %v2073_v13 = vadd.f32 %v2054_v14, %v1752_v56  ;;  %v2515_v56 = vld [vmem:[#allocation15 + $0x88] sm:$0xff] }
 0x306   : > { %v1973_v15 = vpop.f32.mrf.mxu1  ;;  %v2056_v16 = vpop.f32.mrf.mxu0 }
 0x307   : > { %v2072_v46 = vadd.f32 %v1973_v15, %v1671_v31  ;;  %v2105_v59 = vmul.f32 %v2088_v26, %v2071_v44  ;;  %v2074_v9 = vadd.f32 %v2056_v16, %v1754_v60  ;;  %v2107_v16 = vmul.f32 %v2096_v35, %v2073_v13  ;;  %v2525_v44 = vld [vmem:[#allocation15 + $0xd8] sm:$0xff]  ;;  %v2511_v13 = vld [vmem:[#allocation15 + $0x68] sm:$0xff] }
 0x308   : > { %v1977_v20 = vpop.f32.mrf.mxu1  ;;  %v2060_v21 = vpop.f32.mrf.mxu0  ;;  %v2517_v60 = vld [vmem:[#allocation15 + $0x98] sm:$0xff] }
 0x309   : > { %v2075_v40 = vadd.f32 %v1977_v20, %v1675_v24  ;;  %v2106_v62 = vmul.f32 %v2092_v39, %v2072_v46  ;;  %v2077_v6 = vadd.f32 %v2060_v21, %v1758_v53  ;;  %v2140_v57 = vadd.f32 %v2123_v38, %v2105_v59  ;;  %v2529_v46 = vld [vmem:[#allocation15 + $0xf8] sm:$0xff]  ;;  %v2591_v53 = vld [vmem:[#allocation15 + $0x2e8] sm:$0xff] }
 0x30a   : > { %v1979_v28 = vpop.f32.mrf.mxu1  ;;  %v2062_v30 = vpop.f32.mrf.mxu0  ;;  %v2142_v37 = vadd.f32 %v2131_v3, %v2107_v16  ;;  %v2587_v59 = vld [vmem:[#allocation15 + $0x2c8] sm:$0xff]  ;;  %v2504_v16 = vld [vmem:[#allocation15 + $0x30] sm:$0xff] }
 0x30b   : > { %v2076_v36 = vadd.f32 %v1979_v28, %v1677_v22  ;;  %v2109_v55 = vmul.f32 %v2088_v26, %v2075_v40  ;;  %v2078_v2 = vadd.f32 %v2062_v30, %v1760_v48  ;;  %v2141_v20 = vadd.f32 %v2127_v63, %v2106_v62  ;;  %v2527_v48 = vld [vmem:[#allocation15 + $0xe8] sm:$0xff]  ;;  %v2589_v62 = vld [vmem:[#allocation15 + $0x2d8] sm:$0xff] }
 0x30c   : > { %v1983_v41 = vpop.f32.mrf.mxu1  ;;  %v2066_v42 = vpop.f32.mrf.mxu0  ;;  %v2135_v22 = vrot.slane %v2118_v23, %v2099_v27  ;;  %v2111_v24 = vmul.f32 %v2096_v35, %v2077_v6  ;;  %v2108_v30 = vmul.f32 %v2100_v49, %v2074_v9  ;;  %v2514_v6 = vld [vmem:[#allocation15 + $0x80] sm:$0xff]  ;;  %v2513_v9 = vld [vmem:[#allocation15 + $0x78] sm:$0xff] }
 0x30d   : > { %v2079_v47 = vadd.f32 %v1983_v41, %v1681_v34  ;;  %v2110_v51 = vmul.f32 %v2092_v39, %v2076_v36  ;;  %v2081_v58 = vadd.f32 %v2066_v42, %v1764_v25  ;;  %v2144_v54 = vadd.f32 %v2123_v38, %v2109_v55  ;;  %v2165_v41 = vld [vmem:[%s6834_s5 + $0x8] sm:$0xf]  ;;  %v2526_v25 = vld [vmem:[#allocation15 + $0xe0] sm:$0xff]  ;;  %v2519_v55 = vld [vmem:[#allocation15 + $0xa8] sm:$0xff] }
 0x30e   : > { %v1985_v7 = vpop.f32.mrf.mxu1  ;;  %v2068_v50 = vpop.f32.mrf.mxu0  ;;  %v2112_v15 = vmul.f32 %v2100_v49, %v2078_v2  ;;  %v2153_v14 = vmax.f32 %v2141_v20, 0.0  ;;  %v2152_v34 = vmax.f32 %v2140_v57, 0.0  ;;  %v2146_v27 = vadd.f32 %v2131_v3, %v2111_v24  ;;  %v2516_v2 = vld [vmem:[#allocation15 + $0x90] sm:$0xff]  ;;  %v2581_v20 = vld [vmem:[#allocation15 + $0x298] sm:$0xff]  ;;  %v2579_v24 = vld [vmem:[#allocation15 + $0x288] sm:$0xff] }
 0x30f   : > { %v2113_v18 = vmul.f32 %v2088_v26, %v2079_v47  ;;  %v2080_v32 = vadd.f32 %v1985_v7, %v1683_v43  ;;  %v2082_v52 = vadd.f32 %v2068_v50, %v1766_v45  ;;  %v2145_v12 = vadd.f32 %v2127_v63, %v2110_v51  ;;  %v4877_v43 = vld [vmem:[%s6834_s5 + $0x18] sm:$0xf]  ;;  %v2528_v47 = vld [vmem:[#allocation15 + $0xf0] sm:$0xff] }
 0x310   : > { %v2115_v5 = vmul.f32 %v2096_v35, %v2081_v58  ;;  %v2156_v21 = vmax.f32 %v2144_v54, 0.0  ;;  %v2147_v31 = vadd.f32 %v2135_v22, %v2112_v15  ;;  %v4876_v35 = vld [vmem:[%s6834_s5 + $0x10] sm:$0xff]  ;;  %v2143_v36 = vadd.f32 %v2135_v22, %v2108_v30  ;;  %v2524_v7 = vld [vmem:[#allocation15 + $0xd0] sm:$0xff]  ;;  %v2523_v50 = vld [vmem:[#allocation15 + $0xc8] sm:$0xff] }
 0x311   : > { %v2114_v4 = vmul.f32 %v2092_v39, %v2080_v32  ;;  %v2148_v8 = vadd.f32 %v2123_v38, %v2113_v18  ;;  %v2116_v10 = vmul.f32 %v2100_v49, %v2082_v52  ;;  %v2157_v61 = vmax.f32 %v2145_v12, 0.0  ;;  %v2593_v49 = vld [vmem:[#allocation15 + $0x2f8] sm:$0xff]  ;;  %v2522_v51 = vld [vmem:[#allocation15 + $0xc0] sm:$0xff]  ;;  %v2592_v32 = vld [vmem:[#allocation15 + $0x2f0] sm:$0xff] }
 0x312   : > { %v2150_v26 = vadd.f32 %v2131_v3, %v2115_v5  ;;  %v2159_v39 = vmax.f32 %v2147_v31, 0.0  ;;  %v2158_v40 = vmax.f32 %v2146_v27, 0.0  ;;  %v2155_v42 = vmax.f32 %v2143_v36, 0.0  ;;  %v2521_v18 = vld [vmem:[#allocation15 + $0xb8] sm:$0xff]  ;;  %v2520_v52 = vld [vmem:[#allocation15 + $0xb0] sm:$0xff]  ;;  %v2518_v58 = vld [vmem:[#allocation15 + $0xa0] sm:$0xff] }
 0x313   : > { %v2149_v11 = vadd.f32 %v2127_v63, %v2114_v4  ;;  %v2160_v28 = vmax.f32 %v2148_v8, 0.0  ;;  %v2151_v1 = vadd.f32 %v2135_v22, %v2116_v10  ;;  %v2154_v45 = vmax.f32 %v2142_v37, 0.0  ;;  %v2590_v63 = vld [vmem:[#allocation15 + $0x2e0] sm:$0xff]  ;;  %v2588_v4 = vld [vmem:[#allocation15 + $0x2d0] sm:$0xff]  ;;  %v2585_v10 = vld [vmem:[#allocation15 + $0x2b8] sm:$0xff] }
 0x314   : > { %v2162_v38 = vmax.f32 %v2150_v26, 0.0  ;;  %v2586_v8 = vld [vmem:[#allocation15 + $0x2c0] sm:$0xff]  ;;  %v2584_v12 = vld [vmem:[#allocation15 + $0x2b0] sm:$0xff]  ;;  %v2583_v54 = vld [vmem:[#allocation15 + $0x2a8] sm:$0xff] }
 0x315   : > { %v2161_v17 = vmax.f32 %v2149_v11, 0.0  ;;  %v2163_v23 = vmax.f32 %v2151_v1, 0.0  ;;  %v2512_v11 = vld [vmem:[#allocation15 + $0x70] sm:$0xff]  ;;  %v2510_v5 = vld [vmem:[#allocation15 + $0x60] sm:$0xff]  ;;  %v2507_v3 = vld [vmem:[#allocation15 + $0x48] sm:$0xff] }
 0x316   : > { %v2582_v15 = vld [vmem:[#allocation15 + $0x2a0] sm:$0xff]  ;;  %v2508_v22 = vld [vmem:[#allocation15 + $0x50] sm:$0xff]  ;;  %v2577_v1 = vld [vmem:[#allocation15 + $0x278] sm:$0xff] }
 0x317   : > { %2199 = vmatprep.subr.mxu1 %v2161_v17  ;;  %2362 = vmatprep.subr.mxu0 %v2161_v17  ;;  %v2509_v17 = vld [vmem:[#allocation15 + $0x58] sm:$0xff]  ;;  %v2580_v57 = vld [vmem:[#allocation15 + $0x290] sm:$0xff]  ;;  %v2578_v30 = vld [vmem:[#allocation15 + $0x280] sm:$0xff] }
 0x318   : > { %2200 = vmatpush1.msra.mxu1 %v2160_v28  ;;  %2363 = vmatpush1.msra.mxu0 %v2160_v28  ;;  %v2506_v28 = vld [vmem:[#allocation15 + $0x40] sm:$0xff]  ;;  %v2503_v26 = vld [vmem:[#allocation15 + $0x28] sm:$0xff]  ;;  %v2501_v27 = vld [vmem:[#allocation15 + $0x18] sm:$0xff] }
 0x319   : > { %2201 = vmatprep.subr.mxu1 %v2157_v61  ;;  %2364 = vmatprep.subr.mxu0 %v2157_v61  ;;  %v2505_v61 = vld [vmem:[#allocation15 + $0x38] sm:$0xff]  ;;  %v2502_v31 = vld [vmem:[#allocation15 + $0x20] sm:$0xff]  ;;  %v2499_v36 = vld [vmem:[#allocation15 + $0x8] sm:$0xff] }
 0x31a   : > { %2202 = vmatpush1.msra.mxu1 %v2156_v21  ;;  %2365 = vmatpush1.msra.mxu0 %v2156_v21  ;;  %v2576_v21 = vld [vmem:[#allocation15 + $0x270] sm:$0xff]  ;;  %v2571_v37 = vld [vmem:[#allocation15 + $0x248] sm:$0xff] }
 0x31b   : > { %2203 = vmatprep.subr.mxu1 %v2153_v14  ;;  %2366 = vmatprep.subr.mxu0 %v2153_v14  ;;  %v2575_v14 = vld [vmem:[#allocation15 + $0x268] sm:$0xff] }
 0x31c   : > { %2204 = vmatpush1.msra.mxu1 %v2152_v34  ;;  %2367 = vmatpush1.msra.mxu0 %v2152_v34  ;;  %v2574_v34 = vld [vmem:[#allocation15 + $0x260] sm:$0xff] }
 0x31d   : > { %4872 = vmatmul.mubr.msk.f32.vlgmr.msra.gmra.mxu1 %vm2166_vm6, %v2164_v19  ;;  %2276 = vmatprep.subr.mxu1 %v2163_v23 }
 0x31e   : > { %4878 = vmatmul.mubr.msk.f32.vlgmr.msra.gmra.mxu0 %vm2166_vm6, %v4876_v35  ;;  %2277 = vmatpush1.msra.mxu1 %v2162_v38 }
 0x31f   : > { %2278 = vmatprep.subr.mxu1 %v2159_v39  ;;  %2243 = vmatprep.mubr.f32.mxu1 %v5887_v0 }
 0x320   : > { %2279 = vmatpush1.msra.mxu1 %v2158_v40  ;;  %2406 = vmatprep.mubr.f32.mxu0 %v5887_v0 }
 0x321   : > { %4873 = vmatmul.mubr.msk.f32.gmra.mxu1 %vm2166_vm6, %v2165_v41  ;;  %2280 = vmatprep.subr.mxu1 %v2155_v42 }
 0x322   : > { %4879 = vmatmul.mubr.msk.f32.gmra.mxu0 %vm2166_vm6, %v4877_v43  ;;  %2281 = vmatpush1.msra.mxu1 %v2154_v45 }
 0x323   : > { %2439 = vmatprep.subr.mxu1 %v2163_v23  ;;  %2314 = vmatprep.mubr.f32.mxu1 %v5887_v0  ;;  %v2500_v23 = vld [vmem:[#allocation15 + $0x10] sm:$0xff] }
 0x324   : > { %2625 = vmatprep.subr.mxu0 %v2529_v46  ;;  %v2567_v46 = vld [vmem:[#allocation15 + $0x228] sm:$0xff] }
 0x325   : > { %4874 = vmatmul.mubr.msk.f32.vlgmr.msra.gmra.mxu1 %vm2166_vm6, %v2164_v19  ;;  %2626 = vmatpush1.msra.mxu0 %v2528_v47  ;;  %v2573_v19 = vld [vmem:[#allocation15 + $0x258] sm:$0xff]  ;;  %v2558_v47 = vld [vmem:[#allocation15 + $0x1e0] sm:$0xff] }
 0x326   : > { %2440 = vmatpush1.msra.mxu1 %v2162_v38  ;;  %2320 = vmatprep.mubr.f32.mxu1 %v5887_v0  ;;  %v2498_v38 = vld [vmem:[#allocation15] sm:$0xff] }
 0x327   : > { %2441 = vmatprep.subr.mxu1 %v2159_v39  ;;  %2627 = vmatprep.subr.mxu0 %v2527_v48  ;;  %v2570_v39 = vld [vmem:[#allocation15 + $0x240] sm:$0xff] }
 0x328   : > { %2442 = vmatpush1.msra.mxu1 %v2158_v40  ;;  %2628 = vmatpush1.msra.mxu0 %v2526_v25  ;;  %v2561_v40 = vld [vmem:[#allocation15 + $0x1f8] sm:$0xff]  ;;  %v2566_v48 = vld [vmem:[#allocation15 + $0x220] sm:$0xff] }
 0x329   : > { %2443 = vmatprep.subr.mxu1 %v2155_v42  ;;  %4875 = vmatmul.mubr.msk.f32.gmra.mxu1 %vm2166_vm6, %v2165_v41  ;;  %v2569_v41 = vld [vmem:[#allocation15 + $0x238] sm:$0xff]  ;;  %v2560_v42 = vld [vmem:[#allocation15 + $0x1f0] sm:$0xff] }
 0x32a   : > { %2444 = vmatpush1.msra.mxu1 %v2154_v45  ;;  %2477 = vmatprep.mubr.f32.mxu1 %v5887_v0  ;;  %v2559_v45 = vld [vmem:[#allocation15 + $0x1e8] sm:$0xff]  ;;  %v2557_v25 = vld [vmem:[#allocation15 + $0x1d8] sm:$0xff] }
 0x32b   : > { %2629 = vmatprep.subr.mxu0 %v2525_v44  ;;  %2702 = vmatprep.subr.mxu1 %v2593_v49  ;;  %v2565_v44 = vld [vmem:[#allocation15 + $0x218] sm:$0xff]  ;;  %v2556_v49 = vld [vmem:[#allocation15 + $0x1d0] sm:$0xff] }
 0x32c   : > { %2630 = vmatpush1.msra.mxu0 %v2524_v7  ;;  %v2564_v7 = vld [vmem:[#allocation15 + $0x210] sm:$0xff] }
 0x32d   : > { %4880 = vmatmul.mubr.msk.f32.vlgmr.msra.gmra.mxu1 %vm2166_vm6, %v4876_v35  ;;  %2631 = vmatprep.subr.mxu0 %v2523_v50  ;;  %v2572_v35 = vld [vmem:[#allocation15 + $0x250] sm:$0xff]  ;;  %v2555_v50 = vld [vmem:[#allocation15 + $0x1c8] sm:$0xff] }
 0x32e   : > { %2483 = vmatprep.mubr.f32.mxu1 %v5887_v0  ;;  %2632 = vmatpush1.msra.mxu0 %v2522_v51  ;;  %v2563_v51 = vld [vmem:[#allocation15 + $0x208] sm:$0xff] }
 0x32f   : > { %2633 = vmatprep.subr.mxu0 %v2521_v18  ;;  %2703 = vmatpush1.msra.mxu1 %v2592_v32  ;;  %v2554_v18 = vld [vmem:[#allocation15 + $0x1c0] sm:$0xff] }
 0x330   : > { %2634 = vmatpush1.msra.mxu0 %v2520_v52  ;;  %2704 = vmatprep.subr.mxu1 %v2591_v53  ;;  %v2562_v32 = vld [vmem:[#allocation15 + $0x200] sm:$0xff]  ;;  %v2553_v52 = vld [vmem:[#allocation15 + $0x1b8] sm:$0xff] }
 0x331   : > { %4881 = vmatmul.mubr.msk.f32.gmra.mxu1 %vm2166_vm6, %v4877_v43  ;;  %2635 = vmatprep.subr.mxu0 %v2519_v55  ;;  %v2568_v43 = vld [vmem:[#allocation15 + $0x230] sm:$0xff]  ;;  %v2617_v53 = vld [vmem:[#allocation15 + $0x3b8] sm:$0xff] }
 0x332   : > { %2636 = vmatpush1.msra.mxu0 %v2518_v58  ;;  %2705 = vmatpush1.msra.mxu1 %v2590_v63  ;;  %v2552_v55 = vld [vmem:[#allocation15 + $0x1b0] sm:$0xff]  ;;  %v2551_v63 = vld [vmem:[#allocation15 + $0x1a8] sm:$0xff] }
 0x333   : > { %2637 = vmatprep.subr.mxu0 %v2517_v60  ;;  %2706 = vmatprep.subr.mxu1 %v2589_v62  ;;  %v2616_v58 = vld [vmem:[#allocation15 + $0x3b0] sm:$0xff]  ;;  %v2615_v60 = vld [vmem:[#allocation15 + $0x3a8] sm:$0xff]  ;;  %v2550_v62 = vld [vmem:[#allocation15 + $0x1a0] sm:$0xff] }
 0x334   : > { %2638 = vmatpush1.msra.mxu0 %v2516_v2  ;;  %2707 = vmatpush1.msra.mxu1 %v2588_v4  ;;  %v2549_v2 = vld [vmem:[#allocation15 + $0x198] sm:$0xff]  ;;  %v2548_v4 = vld [vmem:[#allocation15 + $0x190] sm:$0xff] }
 0x335   : > { %2639 = vmatprep.subr.mxu0 %v2515_v56  ;;  %2708 = vmatprep.subr.mxu1 %v2587_v59  ;;  %v2547_v56 = vld [vmem:[#allocation15 + $0x188] sm:$0xff]  ;;  %v2546_v59 = vld [vmem:[#allocation15 + $0x180] sm:$0xff] }
 0x336   : > { %2640 = vmatpush1.msra.mxu0 %v2514_v6  ;;  %2709 = vmatpush1.msra.mxu1 %v2586_v8  ;;  %v2545_v6 = vld [vmem:[#allocation15 + $0x178] sm:$0xff]  ;;  %v2544_v8 = vld [vmem:[#allocation15 + $0x170] sm:$0xff] }
 0x337   : > { %2641 = vmatprep.subr.mxu0 %v2513_v9  ;;  %2710 = vmatprep.subr.mxu1 %v2585_v10  ;;  %v2543_v9 = vld [vmem:[#allocation15 + $0x168] sm:$0xff]  ;;  %v2542_v10 = vld [vmem:[#allocation15 + $0x160] sm:$0xff] }
 0x338   : > { %2642 = vmatpush1.msra.mxu0 %v2512_v11  ;;  %2711 = vmatpush1.msra.mxu1 %v2584_v12  ;;  %v2541_v11 = vld [vmem:[#allocation15 + $0x158] sm:$0xff]  ;;  %v2540_v12 = vld [vmem:[#allocation15 + $0x150] sm:$0xff] }
 0x339   : > { %2643 = vmatprep.subr.mxu0 %v2511_v13  ;;  %2712 = vmatprep.subr.mxu1 %v2583_v54  ;;  %v2539_v13 = vld [vmem:[#allocation15 + $0x148] sm:$0xff]  ;;  %v2538_v54 = vld [vmem:[#allocation15 + $0x140] sm:$0xff] }
 0x33a   : > { %2644 = vmatpush1.msra.mxu0 %v2510_v5  ;;  %2713 = vmatpush1.msra.mxu1 %v2582_v15  ;;  %v2537_v5 = vld [vmem:[#allocation15 + $0x138] sm:$0xff]  ;;  %v2536_v15 = vld [vmem:[#allocation15 + $0x130] sm:$0xff] }
 0x33b   : > { %2645 = vmatprep.subr.mxu0 %v2509_v17  ;;  %2714 = vmatprep.subr.mxu1 %v2581_v20  ;;  %v2614_v17 = vld [vmem:[#allocation15 + $0x3a0] sm:$0xff]  ;;  %v2535_v20 = vld [vmem:[#allocation15 + $0x128] sm:$0xff] }
 0x33c   : > { %2646 = vmatpush1.msra.mxu0 %v2508_v22  ;;  %2715 = vmatpush1.msra.mxu1 %v2580_v57  ;;  %v2613_v22 = vld [vmem:[#allocation15 + $0x398] sm:$0xff]  ;;  %v2534_v57 = vld [vmem:[#allocation15 + $0x120] sm:$0xff] }
 0x33d   : > { %2647 = vmatprep.subr.mxu0 %v2507_v3  ;;  %2716 = vmatprep.subr.mxu1 %v2579_v24  ;;  %v2612_v3 = vld [vmem:[#allocation15 + $0x390] sm:$0xff]  ;;  %v2533_v24 = vld [vmem:[#allocation15 + $0x118] sm:$0xff] }
 0x33e   : > { %2648 = vmatpush1.msra.mxu0 %v2506_v28  ;;  %2717 = vmatpush1.msra.mxu1 %v2578_v30  ;;  %v2611_v28 = vld [vmem:[#allocation15 + $0x388] sm:$0xff]  ;;  %v2532_v30 = vld [vmem:[#allocation15 + $0x110] sm:$0xff] }
 0x33f   : > { %2649 = vmatprep.subr.mxu0 %v2505_v61  ;;  %2718 = vmatprep.subr.mxu1 %v2577_v1  ;;  %v2610_v61 = vld [vmem:[#allocation15 + $0x380] sm:$0xff]  ;;  %v2531_v1 = vld [vmem:[#allocation15 + $0x108] sm:$0xff] }
 0x340   : > { %2650 = vmatpush1.msra.mxu0 %v2504_v16  ;;  %2719 = vmatpush1.msra.mxu1 %v2576_v21  ;;  %v2609_v16 = vld [vmem:[#allocation15 + $0x378] sm:$0xff]  ;;  %v2530_v21 = vld [vmem:[#allocation15 + $0x100] sm:$0xff] }
 0x341   : > { %2651 = vmatprep.subr.mxu0 %v2503_v26  ;;  %2720 = vmatprep.subr.mxu1 %v2575_v14  ;;  %v2608_v26 = vld [vmem:[#allocation15 + $0x370] sm:$0xff]  ;;  %v2875_v14 = vld [vmem:[#allocation15 + $0x6b8] sm:$0xff] }
 0x342   : > { %2652 = vmatpush1.msra.mxu0 %v2502_v31  ;;  %2721 = vmatpush1.msra.mxu1 %v2574_v34  ;;  %v2607_v31 = vld [vmem:[#allocation15 + $0x368] sm:$0xff]  ;;  %v2606_v34 = vld [vmem:[#allocation15 + $0x360] sm:$0xff] }
 0x343   : > { %2653 = vmatprep.subr.mxu0 %v2501_v27  ;;  %2722 = vmatprep.subr.mxu1 %v2573_v19  ;;  %v2605_v27 = vld [vmem:[#allocation15 + $0x358] sm:$0xff]  ;;  %v2604_v19 = vld [vmem:[#allocation15 + $0x350] sm:$0xff] }
 0x344   : > { %2654 = vmatpush1.msra.mxu0 %v2500_v23  ;;  %2723 = vmatpush1.msra.mxu1 %v2572_v35  ;;  %v2603_v23 = vld [vmem:[#allocation15 + $0x348] sm:$0xff]  ;;  %v2602_v35 = vld [vmem:[#allocation15 + $0x340] sm:$0xff] }
 0x345   : > { %2655 = vmatprep.subr.mxu0 %v2499_v36  ;;  %2724 = vmatprep.subr.mxu1 %v2571_v37  ;;  %v2601_v36 = vld [vmem:[#allocation15 + $0x338] sm:$0xff]  ;;  %v2600_v37 = vld [vmem:[#allocation15 + $0x330] sm:$0xff] }
 0x346   : > { %2656 = vmatpush1.msra.mxu0 %v2498_v38  ;;  %2725 = vmatpush1.msra.mxu1 %v2570_v39  ;;  %v2599_v38 = vld [vmem:[#allocation15 + $0x328] sm:$0xff]  ;;  %v2598_v39 = vld [vmem:[#allocation15 + $0x320] sm:$0xff] }
 0x347   : > { %2657 = vmatprep.subr.mxu0 %v2561_v40  ;;  %2726 = vmatprep.subr.mxu1 %v2569_v41  ;;  %v2597_v40 = vld [vmem:[#allocation15 + $0x318] sm:$0xff]  ;;  %v2596_v41 = vld [vmem:[#allocation15 + $0x310] sm:$0xff] }
 0x348   : > { %2658 = vmatpush2.msra.mxu0 %v2560_v42  ;;  %2727 = vmatpush1.msra.mxu1 %v2568_v43  ;;  %v2595_v42 = vld [vmem:[#allocation15 + $0x308] sm:$0xff]  ;;  %v2594_v43 = vld [vmem:[#allocation15 + $0x300] sm:$0xff] }
 0x349   : > { %2659 = vmatprep.subr.mxu0 %v2559_v45  ;;  %2728 = vmatprep.subr.mxu1 %v2567_v46  ;;  %v2811_v45 = vld [vmem:[#allocation15 + $0x4b8] sm:$0xff] }
 0x34a   : > { %2660 = vmatpush2.msra.mxu0 %v2558_v47  ;;  %2729 = vmatpush1.msra.mxu1 %v2566_v48 }
 0x34b   : > { %2661 = vmatprep.subr.mxu0 %v2557_v25  ;;  %2730 = vmatprep.subr.mxu1 %v2565_v44 }
 0x34c   : > { %2662 = vmatpush2.msra.mxu0 %v2556_v49  ;;  %2731 = vmatpush1.msra.mxu1 %v2564_v7 }
 0x34d   : > { %2663 = vmatprep.subr.mxu0 %v2555_v50  ;;  %2732 = vmatprep.subr.mxu1 %v2563_v51  ;;  %v2874_v51 = vld [vmem:[#allocation15 + $0x6b0] sm:$0xff] }
 0x34e   : > { %2664 = vmatpush2.msra.mxu0 %v2554_v18  ;;  %2733 = vmatpush1.msra.mxu1 %v2562_v32  ;;  %v2873_v32 = vld [vmem:[#allocation15 + $0x6a8] sm:$0xff] }
 0x34f   : > { %2665 = vmatprep.subr.mxu0 %v2553_v52  ;;  %2742 = vmatprep.subr.mxu1 %v2617_v53  ;;  %v2872_v53 = vld [vmem:[#allocation15 + $0x6a0] sm:$0xff] }
 0x350   : > { %2666 = vmatpush2.msra.mxu0 %v2552_v55  ;;  %2743 = vmatpush2.msra.mxu1 %v2616_v58 }
 0x351   : > { %2667 = vmatprep.subr.mxu0 %v2551_v63  ;;  %2744 = vmatprep.subr.mxu1 %v2615_v60  ;;  %v2871_v63 = vld [vmem:[#allocation15 + $0x698] sm:$0xff] }
 0x352   : > { %2668 = vmatpush2.msra.mxu0 %v2550_v62  ;;  %2745 = vmatpush2.msra.mxu1 %v2614_v17  ;;  %v2870_v62 = vld [vmem:[#allocation15 + $0x690] sm:$0xff] }
 0x353   : > { %2669 = vmatprep.subr.mxu0 %v2549_v2  ;;  %2746 = vmatprep.subr.mxu1 %v2613_v22 }
 0x354   : > { %2670 = vmatpush2.msra.mxu0 %v2548_v4  ;;  %2747 = vmatpush2.msra.mxu1 %v2612_v3  ;;  %v2869_v4 = vld [vmem:[#allocation15 + $0x688] sm:$0xff] }
 0x355   : > { %2671 = vmatprep.subr.mxu0 %v2547_v56  ;;  %2748 = vmatprep.subr.mxu1 %v2611_v28  ;;  %v2868_v56 = vld [vmem:[#allocation15 + $0x680] sm:$0xff]  ;;  %v2858_v28 = vld [vmem:[#allocation15 + $0x630] sm:$0xff] }
 0x356   : > { %2672 = vmatpush2.msra.mxu0 %v2546_v59  ;;  %2749 = vmatpush2.msra.mxu1 %v2610_v61  ;;  %v2809_v61 = vld [vmem:[#allocation15 + $0x4a8] sm:$0xff] }
 0x357   : > { %2673 = vmatprep.subr.mxu0 %v2545_v6  ;;  %2750 = vmatprep.subr.mxu1 %v2609_v16  ;;  %v2867_v6 = vld [vmem:[#allocation15 + $0x678] sm:$0xff] }
 0x358   : > { %2674 = vmatpush2.msra.mxu0 %v2544_v8  ;;  %2751 = vmatpush2.msra.mxu1 %v2608_v26  ;;  %v2866_v8 = vld [vmem:[#allocation15 + $0x670] sm:$0xff]  ;;  %v2856_v26 = vld [vmem:[#allocation15 + $0x620] sm:$0xff] }
 0x359   : > { %2675 = vmatprep.subr.mxu0 %v2543_v9  ;;  %2752 = vmatprep.subr.mxu1 %v2607_v31  ;;  %v2855_v31 = vld [vmem:[#allocation15 + $0x618] sm:$0xff] }
 0x35a   : > { %2676 = vmatpush2.msra.mxu0 %v2542_v10  ;;  %2753 = vmatpush2.msra.mxu1 %v2606_v34  ;;  %v2865_v10 = vld [vmem:[#allocation15 + $0x668] sm:$0xff] }
 0x35b   : > { %2677 = vmatprep.subr.mxu0 %v2541_v11  ;;  %2754 = vmatprep.subr.mxu1 %v2605_v27  ;;  %v2864_v11 = vld [vmem:[#allocation15 + $0x660] sm:$0xff]  ;;  %v2806_v27 = vld [vmem:[#allocation15 + $0x490] sm:$0xff] }
 0x35c   : > { %2678 = vmatpush2.msra.mxu0 %v2540_v12  ;;  %2755 = vmatpush2.msra.mxu1 %v2604_v19  ;;  %v2854_v19 = vld [vmem:[#allocation15 + $0x610] sm:$0xff] }
 0x35d   : > { %2679 = vmatprep.subr.mxu0 %v2539_v13  ;;  %2756 = vmatprep.subr.mxu1 %v2603_v23  ;;  %v2863_v13 = vld [vmem:[#allocation15 + $0x658] sm:$0xff]  ;;  %v2805_v23 = vld [vmem:[#allocation15 + $0x488] sm:$0xff] }
 0x35e   : > { %2680 = vmatpush2.msra.mxu0 %v2538_v54  ;;  %2757 = vmatpush2.msra.mxu1 %v2602_v35  ;;  %v2862_v54 = vld [vmem:[#allocation15 + $0x650] sm:$0xff]  ;;  %v2853_v35 = vld [vmem:[#allocation15 + $0x608] sm:$0xff] }
 0x35f   : > { %2681 = vmatprep.subr.mxu0 %v2537_v5  ;;  %2758 = vmatprep.subr.mxu1 %v2601_v36  ;;  %v2804_v36 = vld [vmem:[#allocation15 + $0x480] sm:$0xff] }
 0x360   : > { %2682 = vmatpush2.msra.mxu0 %v2536_v15  ;;  %2759 = vmatpush2.msra.mxu1 %v2600_v37  ;;  %v2861_v15 = vld [vmem:[#allocation15 + $0x648] sm:$0xff]  ;;  %v2852_v37 = vld [vmem:[#allocation15 + $0x600] sm:$0xff] }
 0x361   : > { %2683 = vmatprep.subr.mxu0 %v2535_v20  ;;  %2760 = vmatprep.subr.mxu1 %v2599_v38  ;;  %v2860_v20 = vld [vmem:[#allocation15 + $0x640] sm:$0xff]  ;;  %v2803_v38 = vld [vmem:[#allocation15 + $0x478] sm:$0xff] }
 0x362   : > { %2684 = vmatpush2.msra.mxu0 %v2534_v57  ;;  %2761 = vmatpush2.msra.mxu1 %v2598_v39  ;;  %v2859_v57 = vld [vmem:[#allocation15 + $0x638] sm:$0xff] }
 0x363   : > { %2685 = vmatprep.subr.mxu0 %v2533_v24  ;;  %2762 = vmatprep.subr.mxu1 %v2597_v40  ;;  %v2810_v24 = vld [vmem:[#allocation15 + $0x4b0] sm:$0xff]  ;;  %v2851_v39 = vld [vmem:[#allocation15 + $0x5f8] sm:$0xff] }
 0x364   : > { %2686 = vmatpush2.msra.mxu0 %v2532_v30  ;;  %2763 = vmatpush2.msra.mxu1 %v2596_v41  ;;  %v2802_v40 = vld [vmem:[#allocation15 + $0x470] sm:$0xff] }
 0x365   : > { %2687 = vmatprep.subr.mxu0 %v2531_v1  ;;  %2764 = vmatprep.subr.mxu1 %v2595_v42  ;;  %v2857_v1 = vld [vmem:[#allocation15 + $0x628] sm:$0xff]  ;;  %v2850_v41 = vld [vmem:[#allocation15 + $0x5f0] sm:$0xff] }
 0x366   : > { %2688 = vmatpush2.msra.mxu0 %v2530_v21  ;;  %2765 = vmatpush2.msra.mxu1 %v2594_v43  ;;  %v2808_v21 = vld [vmem:[#allocation15 + $0x4a0] sm:$0xff]  ;;  %v2801_v42 = vld [vmem:[#allocation15 + $0x468] sm:$0xff] }
 0x367   : > { %2977 = vmatprep.subr.mxu0 %v2875_v14  ;;  %2900 = vmatprep.subr.mxu1 %v2811_v45  ;;  %v2807_v14 = vld [vmem:[#allocation15 + $0x498] sm:$0xff]  ;;  %v2849_v43 = vld [vmem:[#allocation15 + $0x5e8] sm:$0xff]  ;;  %v2800_v45 = vld [vmem:[#allocation15 + $0x460] sm:$0xff] }
 0x3dd   : > { %v2239_v46 = vpop.f32.mrf.mxu1 }
 0x3de   : > { %v2402_v47 = vpop.f32.mrf.mxu0 }
 0x3df   : > { %v2241_v48 = vpop.f32.mrf.mxu1  ;;  %v6365_v7 = vmax.f32 %v2239_v46, %v2402_v47  ;;  %v2848_v46 = vld [vmem:[#allocation15 + $0x5e0] sm:$0xff]  ;;  %v2799_v47 = vld [vmem:[#allocation15 + $0x458] sm:$0xff] }
 0x3e0   : > { %v2404_v25 = vpop.f32.mrf.mxu0 }
 0x3e1   : > { %v6363_v44 = vmax.f32 %v2241_v48, %v2404_v25  ;;  %v2245_v49 = vpop.f32.mrf.mxu1  ;;  %v2847_v48 = vld [vmem:[#allocation15 + $0x5d8] sm:$0xff]  ;;  %v2798_v25 = vld [vmem:[#allocation15 + $0x450] sm:$0xff] }
 0x3e2   : > { %v2408_v50 = vpop.f32.mrf.mxu0 }
 0x3e3   : > { %2689 = vmatprep.mubr.f32.mxu0 %v6363_v44  ;;  %v2247_v18 = vpop.f32.mrf.mxu1  ;;  %v6371_v60 = vmax.f32 %v2245_v49, %v2408_v50  ;;  %v2797_v49 = vld [vmem:[#allocation15 + $0x448] sm:$0xff] }
 0x3e4   : > { %v2410_v52 = vpop.f32.mrf.mxu0  ;;  %2690 = vmatmul.mubr.f32.vlgmr.msra.gmra.mxu0 %v6365_v7  ;;  %v2845_v50 = vld [vmem:[#allocation15 + $0x5c8] sm:$0xff] }
 0x3e5   : > { %v6369_v55 = vmax.f32 %v2247_v18, %v2410_v52  ;;  %2978 = vmatpush1.msra.mxu0 %v2874_v51  ;;  %v2316_v58 = vpop.f32.mrf.mxu1  ;;  %v2796_v51 = vld [vmem:[#allocation15 + $0x440] sm:$0xff]  ;;  %v2899_v52 = vld [vmem:[#allocation15 + $0x778] sm:$0xff] }
 0x3e6   : > { %2979 = vmatprep.subr.mxu0 %v2873_v32  ;;  %v2844_v18 = vld [vmem:[#allocation15 + $0x5c0] sm:$0xff]  ;;  %v2795_v32 = vld [vmem:[#allocation15 + $0x438] sm:$0xff] }
 0x3e7   : > { %2980 = vmatpush1.msra.mxu0 %v2872_v53  ;;  %2695 = vmatprep.mubr.f32.mxu0 %v6369_v55  ;;  %v2318_v2 = vpop.f32.mrf.mxu1  ;;  %v2794_v53 = vld [vmem:[#allocation15 + $0x430] sm:$0xff] }
 0x3e8   : > { %2981 = vmatprep.subr.mxu0 %v2871_v63  ;;  %2696 = vmatmul.mubr.f32.gmra.mxu0 %v6371_v60  ;;  %v2793_v63 = vld [vmem:[#allocation15 + $0x428] sm:$0xff] }
 0x3e9   : > { %2982 = vmatpush1.msra.mxu0 %v2870_v62  ;;  %v2322_v59 = vpop.f32.mrf.mxu1  ;;  %v2897_v62 = vld [vmem:[#allocation15 + $0x768] sm:$0xff] }
 0x3ea   : > { %2983 = vmatprep.subr.mxu0 %v2869_v4  ;;  %v2896_v4 = vld [vmem:[#allocation15 + $0x760] sm:$0xff] }
 0x3eb   : > { %2984 = vmatpush1.msra.mxu0 %v2868_v56  ;;  %v2324_v9 = vpop.f32.mrf.mxu1  ;;  %v2791_v56 = vld [vmem:[#allocation15 + $0x418] sm:$0xff] }
 0x3ec   : > { %2985 = vmatprep.subr.mxu0 %v2867_v6  ;;  %v2790_v6 = vld [vmem:[#allocation15 + $0x410] sm:$0xff] }
 0x3ed   : > { %2986 = vmatpush1.msra.mxu0 %v2866_v8  ;;  %v2479_v12 = vpop.f32.mrf.mxu1  ;;  %v2894_v8 = vld [vmem:[#allocation15 + $0x750] sm:$0xff] }
 0x3ee   : > { %2987 = vmatprep.subr.mxu0 %v2865_v10  ;;  %v6375_v3 = vmax.f32 %v2316_v58, %v2479_v12  ;;  %v2898_v58 = vld [vmem:[#allocation15 + $0x770] sm:$0xff]  ;;  %v2893_v10 = vld [vmem:[#allocation15 + $0x748] sm:$0xff]  ;;  %v2892_v12 = vld [vmem:[#allocation15 + $0x740] sm:$0xff] }
 0x3ef   : > { %2988 = vmatpush1.msra.mxu0 %v2864_v11  ;;  %v2481_v5 = vpop.f32.mrf.mxu1  ;;  %v2788_v11 = vld [vmem:[#allocation15 + $0x400] sm:$0xff] }
 0x3f0   : > { %2989 = vmatprep.subr.mxu0 %v2863_v13  ;;  %v2493_v17 = vmax.f32 %v2318_v2, %v2481_v5  ;;  %v2792_v2 = vld [vmem:[#allocation15 + $0x420] sm:$0xff]  ;;  %v2787_v13 = vld [vmem:[#allocation15 + $0x3f8] sm:$0xff]  ;;  %v2786_v5 = vld [vmem:[#allocation15 + $0x3f0] sm:$0xff] }
 0x3f1   : > { %2990 = vmatpush1.msra.mxu0 %v2862_v54  ;;  %v2485_v22 = vpop.f32.mrf.mxu1  ;;  %v2891_v54 = vld [vmem:[#allocation15 + $0x738] sm:$0xff] }
 0x3f2   : > { %2991 = vmatprep.subr.mxu0 %v2861_v15  ;;  %4882 = vmatprep.mubr.msk.f32.mxu1 %vm2618_vm7, %v2493_v17  ;;  %v6382_v34 = vmax.f32 %v2322_v59, %v2485_v22  ;;  %v2895_v59 = vld [vmem:[#allocation15 + $0x758] sm:$0xff]  ;;  %v2890_v15 = vld [vmem:[#allocation15 + $0x730] sm:$0xff]  ;;  %v2784_v22 = vld [vmem:[#allocation15 + $0x3e0] sm:$0xff] }
 0x3f3   : > { %2992 = vmatpush1.msra.mxu0 %v2860_v20  ;;  %4884 = vmatprep.mubr.msk.f32.mxu0 %vm2618_vm7, %v2493_v17  ;;  %v2487_v30 = vpop.f32.mrf.mxu1  ;;  %v2785_v17 = vld [vmem:[#allocation15 + $0x3e8] sm:$0xff] }
 0x3f4   : > { %2993 = vmatprep.subr.mxu0 %v2859_v57  ;;  %v6379_v16 = vmax.f32 %v2324_v9, %v2487_v30  ;;  %2767 = vmatmul.mubr.f32.vlgmr.msra.gmra.mxu1 %v6375_v3  ;;  %v2789_v9 = vld [vmem:[#allocation15 + $0x408] sm:$0xff]  ;;  %v2888_v57 = vld [vmem:[#allocation15 + $0x720] sm:$0xff]  ;;  %v2782_v30 = vld [vmem:[#allocation15 + $0x3d0] sm:$0xff] }
 0x3f5   : > { %2901 = vmatpush1.msra.mxu1 %v2810_v24  ;;  %2994 = vmatpush1.msra.mxu0 %v2858_v28  ;;  %v2889_v20 = vld [vmem:[#allocation15 + $0x728] sm:$0xff]  ;;  %v2783_v24 = vld [vmem:[#allocation15 + $0x3d8] sm:$0xff] }
 0x3f6   : > { %2902 = vmatprep.subr.mxu1 %v2809_v61  ;;  %2995 = vmatprep.subr.mxu0 %v2857_v1  ;;  %v2887_v28 = vld [vmem:[#allocation15 + $0x718] sm:$0xff]  ;;  %v2886_v61 = vld [vmem:[#allocation15 + $0x710] sm:$0xff]  ;;  %v2781_v1 = vld [vmem:[#allocation15 + $0x3c8] sm:$0xff] }
 0x3f7   : > { %2903 = vmatpush1.msra.mxu1 %v2808_v21  ;;  %2996 = vmatpush1.msra.mxu0 %v2856_v26  ;;  %v2885_v21 = vld [vmem:[#allocation15 + $0x708] sm:$0xff]  ;;  %v2780_v26 = vld [vmem:[#allocation15 + $0x3c0] sm:$0xff] }
 0x3f8   : > { %4883 = vmatprep.mubr.msk.f32.mxu1 %vm2618_vm7, %v6379_v16  ;;  %2904 = vmatprep.subr.mxu1 %v2807_v14  ;;  %v2884_v14 = vld [vmem:[#allocation15 + $0x700] sm:$0xff] }
 0x3f9   : > { %2997 = vmatprep.subr.mxu0 %v2855_v31  ;;  %2773 = vmatmul.mubr.f32.gmra.mxu1 %v6382_v34  ;;  %v2843_v31 = vld [vmem:[#allocation15 + $0x5b8] sm:$0xff] }
 0x3fa   : > { %2905 = vmatpush1.msra.mxu1 %v2806_v27  ;;  %2998 = vmatpush1.msra.mxu0 %v2854_v19  ;;  %v2883_v27 = vld [vmem:[#allocation15 + $0x6f8] sm:$0xff]  ;;  %v2842_v19 = vld [vmem:[#allocation15 + $0x5b0] sm:$0xff] }
 0x3fb   : > { %2906 = vmatprep.subr.mxu1 %v2805_v23  ;;  %2964 = vmatprep.mubr.f32.mxu1 %v6363_v44  ;;  %v2846_v44 = vld [vmem:[#allocation15 + $0x5d0] sm:$0xff] }
 0x3fc   : > { %2999 = vmatprep.subr.mxu0 %v2853_v35  ;;  %2907 = vmatpush1.msra.mxu1 %v2804_v36  ;;  %v2882_v23 = vld [vmem:[#allocation15 + $0x6f0] sm:$0xff]  ;;  %v2841_v35 = vld [vmem:[#allocation15 + $0x5a8] sm:$0xff] }
 0x3fd   : > { %3000 = vmatpush1.msra.mxu0 %v2852_v37  ;;  %2908 = vmatprep.subr.mxu1 %v2803_v38  ;;  %v2881_v36 = vld [vmem:[#allocation15 + $0x6e8] sm:$0xff]  ;;  %v2840_v37 = vld [vmem:[#allocation15 + $0x5a0] sm:$0xff] }
 0x3fe   : > { %3001 = vmatprep.subr.mxu0 %v2851_v39  ;;  %2909 = vmatpush1.msra.mxu1 %v2802_v40  ;;  %v2880_v38 = vld [vmem:[#allocation15 + $0x6e0] sm:$0xff]  ;;  %v2839_v39 = vld [vmem:[#allocation15 + $0x598] sm:$0xff] }
 0x3ff   : > { %3002 = vmatpush1.msra.mxu0 %v2850_v41  ;;  %2910 = vmatprep.subr.mxu1 %v2801_v42  ;;  %v2879_v40 = vld [vmem:[#allocation15 + $0x6d8] sm:$0xff]  ;;  %v2838_v41 = vld [vmem:[#allocation15 + $0x590] sm:$0xff] }
 0x400   : > { %3003 = vmatprep.subr.mxu0 %v2849_v43  ;;  %2911 = vmatpush1.msra.mxu1 %v2800_v45  ;;  %v2878_v42 = vld [vmem:[#allocation15 + $0x6d0] sm:$0xff]  ;;  %v2837_v43 = vld [vmem:[#allocation15 + $0x588] sm:$0xff] }
 0x401   : > { %3004 = vmatpush1.msra.mxu0 %v2848_v46  ;;  %2912 = vmatprep.subr.mxu1 %v2799_v47  ;;  %v2877_v45 = vld [vmem:[#allocation15 + $0x6c8] sm:$0xff]  ;;  %v2836_v46 = vld [vmem:[#allocation15 + $0x580] sm:$0xff] }
 0x402   : > { %3005 = vmatprep.subr.mxu0 %v2847_v48  ;;  %2913 = vmatpush1.msra.mxu1 %v2798_v25  ;;  %v2876_v47 = vld [vmem:[#allocation15 + $0x6c0] sm:$0xff]  ;;  %v2835_v48 = vld [vmem:[#allocation15 + $0x578] sm:$0xff]  ;;  %v2834_v25 = vld [vmem:[#allocation15 + $0x570] sm:$0xff] }
 0x403   : > { %3006 = vmatpush1.msra.mxu0 %v2846_v44  ;;  %2914 = vmatprep.subr.mxu1 %v2797_v49  ;;  %v2833_v44 = vld [vmem:[#allocation15 + $0x568] sm:$0xff]  ;;  %v2832_v49 = vld [vmem:[#allocation15 + $0x560] sm:$0xff] }
 0x404   : > { %3007 = vmatprep.subr.mxu0 %v2845_v50  ;;  %2915 = vmatpush1.msra.mxu1 %v2796_v51  ;;  %v2831_v50 = vld [vmem:[#allocation15 + $0x558] sm:$0xff]  ;;  %v2830_v51 = vld [vmem:[#allocation15 + $0x550] sm:$0xff] }
 0x405   : > { %3008 = vmatpush1.msra.mxu0 %v2844_v18  ;;  %2916 = vmatprep.subr.mxu1 %v2795_v32  ;;  %v2829_v18 = vld [vmem:[#allocation15 + $0x548] sm:$0xff]  ;;  %v2828_v32 = vld [vmem:[#allocation15 + $0x540] sm:$0xff] }
 0x406   : > { %3017 = vmatprep.subr.mxu0 %v2899_v52  ;;  %2917 = vmatpush1.msra.mxu1 %v2794_v53  ;;  %v2827_v52 = vld [vmem:[#allocation15 + $0x538] sm:$0xff]  ;;  %v2826_v53 = vld [vmem:[#allocation15 + $0x530] sm:$0xff] }
 0x407   : > { %3018 = vmatpush2.msra.mxu0 %v2898_v58  ;;  %2918 = vmatprep.subr.mxu1 %v2793_v63  ;;  %v2824_v58 = vld [vmem:[#allocation15 + $0x520] sm:$0xff]  ;;  %v2822_v63 = vld [vmem:[#allocation15 + $0x510] sm:$0xff] }
 0x408   : > { %3019 = vmatprep.subr.mxu0 %v2897_v62  ;;  %2919 = vmatpush1.msra.mxu1 %v2792_v2  ;;  %v2821_v62 = vld [vmem:[#allocation15 + $0x508] sm:$0xff]  ;;  %v2820_v2 = vld [vmem:[#allocation15 + $0x500] sm:$0xff] }
 0x409   : > { %3020 = vmatpush2.msra.mxu0 %v2896_v4  ;;  %2920 = vmatprep.subr.mxu1 %v2791_v56  ;;  %v2819_v4 = vld [vmem:[#allocation15 + $0x4f8] sm:$0xff]  ;;  %v2817_v56 = vld [vmem:[#allocation15 + $0x4e8] sm:$0xff] }
 0x40a   : > { %3021 = vmatprep.subr.mxu0 %v2895_v59  ;;  %2921 = vmatpush1.msra.mxu1 %v2790_v6  ;;  %v2816_v59 = vld [vmem:[#allocation15 + $0x4e0] sm:$0xff]  ;;  %v2815_v6 = vld [vmem:[#allocation15 + $0x4d8] sm:$0xff] }
 0x40b   : > { %3022 = vmatpush2.msra.mxu0 %v2894_v8  ;;  %2922 = vmatprep.subr.mxu1 %v2789_v9  ;;  %v2814_v8 = vld [vmem:[#allocation15 + $0x4d0] sm:$0xff]  ;;  %v2813_v9 = vld [vmem:[#allocation15 + $0x4c8] sm:$0xff] }
 0x40c   : > { %3023 = vmatprep.subr.mxu0 %v2893_v10  ;;  %2923 = vmatpush1.msra.mxu1 %v2788_v11  ;;  %v2812_v10 = vld [vmem:[#allocation15 + $0x4c0] sm:$0xff]  ;;  %v3073_v11 = vld [vmem:[#allocation16 + $0x78] sm:$0xff] }
 0x40d   : > { %3024 = vmatpush2.msra.mxu0 %v2892_v12  ;;  %2924 = vmatprep.subr.mxu1 %v2787_v13  ;;  %v3072_v12 = vld [vmem:[#allocation16 + $0x70] sm:$0xff]  ;;  %v3071_v13 = vld [vmem:[#allocation16 + $0x68] sm:$0xff] }
 0x40e   : > { %3025 = vmatprep.subr.mxu0 %v2891_v54  ;;  %2925 = vmatpush1.msra.mxu1 %v2786_v5  ;;  %v3070_v54 = vld [vmem:[#allocation16 + $0x60] sm:$0xff]  ;;  %v3069_v5 = vld [vmem:[#allocation16 + $0x58] sm:$0xff] }
 0x40f   : > { %3026 = vmatpush2.msra.mxu0 %v2890_v15  ;;  %2926 = vmatprep.subr.mxu1 %v2785_v17  ;;  %v3065_v15 = vld [vmem:[#allocation16 + $0x38] sm:$0xff]  ;;  %v3064_v17 = vld [vmem:[#allocation16 + $0x30] sm:$0xff] }
 0x410   : > { %3027 = vmatprep.subr.mxu0 %v2889_v20  ;;  %2927 = vmatpush1.msra.mxu1 %v2784_v22  ;;  %v3063_v20 = vld [vmem:[#allocation16 + $0x28] sm:$0xff]  ;;  %v3062_v22 = vld [vmem:[#allocation16 + $0x20] sm:$0xff] }
 0x411   : > { %3028 = vmatpush2.msra.mxu0 %v2888_v57  ;;  %2928 = vmatprep.subr.mxu1 %v2783_v24  ;;  %v3061_v57 = vld [vmem:[#allocation16 + $0x18] sm:$0xff]  ;;  %v3060_v24 = vld [vmem:[#allocation16 + $0x10] sm:$0xff] }
 0x412   : > { %3029 = vmatprep.subr.mxu0 %v2887_v28  ;;  %2929 = vmatpush1.msra.mxu1 %v2782_v30  ;;  %v3059_v28 = vld [vmem:[#allocation16 + $0x8] sm:$0xff]  ;;  %v3058_v30 = vld [vmem:[#allocation16] sm:$0xff] }
 0x413   : > { %3030 = vmatpush2.msra.mxu0 %v2886_v61  ;;  %2930 = vmatprep.subr.mxu1 %v2781_v1  ;;  %v3087_v61 = vld [vmem:[#allocation16 + $0xe8] sm:$0xff]  ;;  %v3086_v1 = vld [vmem:[#allocation16 + $0xe0] sm:$0xff] }
 0x414   : > { %3031 = vmatprep.subr.mxu0 %v2885_v21  ;;  %2931 = vmatpush1.msra.mxu1 %v2780_v26  ;;  %v3085_v21 = vld [vmem:[#allocation16 + $0xd8] sm:$0xff]  ;;  %v3084_v26 = vld [vmem:[#allocation16 + $0xd0] sm:$0xff] }
 0x415   : > { %3032 = vmatpush2.msra.mxu0 %v2884_v14  ;;  %2932 = vmatprep.subr.mxu1 %v2843_v31  ;;  %v3083_v14 = vld [vmem:[#allocation16 + $0xc8] sm:$0xff]  ;;  %v3082_v31 = vld [vmem:[#allocation16 + $0xc0] sm:$0xff] }
 0x416   : > { %3033 = vmatprep.subr.mxu0 %v2883_v27  ;;  %2933 = vmatpush2.msra.mxu1 %v2842_v19  ;;  %v3081_v27 = vld [vmem:[#allocation16 + $0xb8] sm:$0xff]  ;;  %v3080_v19 = vld [vmem:[#allocation16 + $0xb0] sm:$0xff] }
 0x417   : > { %3034 = vmatpush2.msra.mxu0 %v2882_v23  ;;  %2934 = vmatprep.subr.mxu1 %v2841_v35  ;;  %v3079_v23 = vld [vmem:[#allocation16 + $0xa8] sm:$0xff]  ;;  %v3078_v35 = vld [vmem:[#allocation16 + $0xa0] sm:$0xff] }
 0x418   : > { %3035 = vmatprep.subr.mxu0 %v2881_v36  ;;  %2935 = vmatpush2.msra.mxu1 %v2840_v37  ;;  %v3077_v36 = vld [vmem:[#allocation16 + $0x98] sm:$0xff]  ;;  %v3076_v37 = vld [vmem:[#allocation16 + $0x90] sm:$0xff] }
 0x419   : > { %3036 = vmatpush2.msra.mxu0 %v2880_v38  ;;  %2936 = vmatprep.subr.mxu1 %v2839_v39  ;;  %v3075_v38 = vld [vmem:[#allocation16 + $0x88] sm:$0xff]  ;;  %v3074_v39 = vld [vmem:[#allocation16 + $0x80] sm:$0xff] }
 0x41a   : > { %3037 = vmatprep.subr.mxu0 %v2879_v40  ;;  %2937 = vmatpush2.msra.mxu1 %v2838_v41  ;;  %v4904_v40 = vld [vmem:[%s6838_s9 + $0xe8] sm:$0xff]  ;;  %v4923_v41 = vld [vmem:[%s6838_s9 + $0x160] sm:$0xff] }
 0x41b   : > { %3038 = vmatpush2.msra.mxu0 %v2878_v42  ;;  %2938 = vmatprep.subr.mxu1 %v2837_v43  ;;  %v4903_v42 = vld [vmem:[%s6838_s9 + $0xe0] sm:$0xff]  ;;  %v4902_v43 = vld [vmem:[%s6838_s9 + $0xd8] sm:$0xff] }
 0x41c   : > { %3039 = vmatprep.subr.mxu0 %v2877_v45  ;;  %2939 = vmatpush2.msra.mxu1 %v2836_v46  ;;  %v4901_v45 = vld [vmem:[%s6838_s9 + $0xd0] sm:$0xff]  ;;  %v4900_v46 = vld [vmem:[%s6838_s9 + $0xc8] sm:$0xff] }
 0x41d   : > { %3040 = vmatpush2.msra.mxu0 %v2876_v47  ;;  %2940 = vmatprep.subr.mxu1 %v2835_v48  ;;  %v4899_v47 = vld [vmem:[%s6838_s9 + $0xc0] sm:$0xff] }
 0x41e   : > { %3042 = vmatmul.mubr.f32.vlgmr.msra.gmra.mxu0 %v6375_v3  ;;  %2941 = vmatpush2.msra.mxu1 %v2834_v25  ;;  %v2825_v3 = vld [vmem:[#allocation15 + $0x528] sm:$0xff] }
 0x41f   : > { %4885 = vmatprep.mubr.msk.f32.mxu0 %vm2618_vm7, %v6379_v16  ;;  %2942 = vmatprep.subr.mxu1 %v2833_v44  ;;  %v2823_v16 = vld [vmem:[#allocation15 + $0x518] sm:$0xff] }
 0x420   : > { %2943 = vmatpush2.msra.mxu1 %v2832_v49  ;;  %3095 = vmatprep.subr.mxu0 %v5887_v0 }
 0x421   : > { %2944 = vmatprep.subr.mxu1 %v2831_v50  ;;  %3096 = vmatpush1.msra.mxu0 %v3073_v11 }
 0x422   : > { %3048 = vmatmul.mubr.f32.gmra.mxu0 %v6382_v34  ;;  %2945 = vmatpush2.msra.mxu1 %v2830_v51  ;;  %v2818_v34 = vld [vmem:[#allocation15 + $0x4f0] sm:$0xff] }
 0x423   : > { %2946 = vmatprep.subr.mxu1 %v2829_v18  ;;  %3097 = vmatprep.subr.mxu0 %v5887_v0 }
 0x424   : > { %2947 = vmatpush2.msra.mxu1 %v2828_v32  ;;  %3098 = vmatpush1.msra.mxu0 %v3072_v12  ;;  %v4922_v12 = vld [vmem:[%s6838_s9 + $0x158] sm:$0xff] }
 0x425   : > { %2948 = vmatprep.subr.mxu1 %v2827_v52  ;;  %3099 = vmatprep.subr.mxu0 %v5887_v0 }
 0x426   : > { %2949 = vmatpush2.msra.mxu1 %v2826_v53  ;;  %3100 = vmatpush1.msra.mxu0 %v3071_v13 }
 0x427   : > { %2950 = vmatprep.subr.mxu1 %v2825_v3  ;;  %3101 = vmatprep.subr.mxu0 %v5887_v0 }
 0x428   : > { %2951 = vmatpush2.msra.mxu1 %v2824_v58  ;;  %3102 = vmatpush1.msra.mxu0 %v3070_v54 }
 0x429   : > { %2952 = vmatprep.subr.mxu1 %v2823_v16  ;;  %3103 = vmatprep.subr.mxu0 %v5887_v0 }
 0x42a   : > { %2953 = vmatpush2.msra.mxu1 %v2822_v63  ;;  %3104 = vmatpush1.msra.mxu0 %v3069_v5  ;;  %v4921_v5 = vld [vmem:[%s6838_s9 + $0x150] sm:$0xff] }
 0x42b   : > { %2954 = vmatprep.subr.mxu1 %v2821_v62  ;;  %3105 = vmatprep.subr.mxu0 %v5887_v0 }
 0x42c   : > { %2955 = vmatpush2.msra.mxu1 %v2820_v2 }
 0x42d   : > { %2956 = vmatprep.subr.mxu1 %v2819_v4 }
 0x42e   : > { %2957 = vmatpush2.msra.mxu1 %v2818_v34 }
 0x42f   : > { %2958 = vmatprep.subr.mxu1 %v2817_v56 }
 0x430   : > { %2959 = vmatpush2.msra.mxu1 %v2816_v59 }
 0x431   : > { %2960 = vmatprep.subr.mxu1 %v2815_v6 }
 0x432   : > { %2961 = vmatpush2.msra.mxu1 %v2814_v8 }
 0x433   : > { %2962 = vmatprep.subr.mxu1 %v2813_v9 }
 0x434   : > { %2963 = vmatpush2.msra.mxu1 %v2812_v10 }
 0x435   : > { %2965 = vmatmul.mubr.f32.vlgmr.msra.gmra.mxu1 %v6365_v7  ;;  %v3068_v7 = vld [vmem:[#allocation16 + $0x50] sm:$0xff]  ;;  %5064 = vmatprep.subr.mxu1 %v4904_v40 }
 0x436   : > { %2970 = vmatprep.mubr.f32.mxu1 %v6369_v55  ;;  %v3067_v55 = vld [vmem:[#allocation16 + $0x48] sm:$0xff]  ;;  %3106 = vmatpush1.msra.mxu0 %v3068_v7 }
 0x437   : > { %3107 = vmatprep.subr.mxu0 %v5887_v0  ;;  %5065 = vmatpush3.msra.mxu1 %v4904_v40  ;;  %v4889_v40 = vld [vmem:[#allocation18 + $0x1] ss:$0 sm:$0xff] }
 0x438   : > { %3108 = vmatpush1.msra.mxu0 %v3067_v55  ;;  %5066 = vmatprep.subr.mxu1 %v4903_v42  ;;  %v4920_v55 = vld [vmem:[%s6838_s9 + $0x148] sm:$0xff] }
 0x439   : > { %2971 = vmatmul.mubr.f32.gmra.mxu1 %v6371_v60  ;;  %v3066_v60 = vld [vmem:[#allocation16 + $0x40] sm:$0xff]  ;;  %3109 = vmatprep.subr.mxu0 %v5887_v0 }
 0x43a   : > { %3110 = vmatpush1.msra.mxu0 %v3066_v60  ;;  %5067 = vmatpush3.msra.mxu1 %v4903_v42  ;;  %v4919_v60 = vld [vmem:[%s6838_s9 + $0x140] sm:$0xff] }
 0x43b   : > { %3111 = vmatprep.subr.mxu0 %v5887_v0  ;;  %5068 = vmatprep.subr.mxu1 %v4902_v43 }
 0x43c   : > { %3112 = vmatpush1.msra.mxu0 %v3065_v15  ;;  %5069 = vmatpush3.msra.mxu1 %v4902_v43  ;;  %v4918_v15 = vld [vmem:[%s6838_s9 + $0x138] sm:$0xff] }
 0x43d   : > { %3113 = vmatprep.subr.mxu0 %v5887_v0  ;;  %5070 = vmatprep.subr.mxu1 %v4901_v45 }
 0x43e   : > { %3114 = vmatpush1.msra.mxu0 %v3064_v17  ;;  %5071 = vmatpush3.msra.mxu1 %v4901_v45  ;;  %v4898_v17 = vld [vmem:[%s6838_s9 + $0xb8] sm:$0xff] }
 0x43f   : > { %3115 = vmatprep.subr.mxu0 %v5887_v0  ;;  %5072 = vmatprep.subr.mxu1 %v4900_v46 }
 0x440   : > { %3116 = vmatpush1.msra.mxu0 %v3063_v20  ;;  %5073 = vmatpush3.msra.mxu1 %v4900_v46  ;;  %v4917_v20 = vld [vmem:[%s6838_s9 + $0x130] sm:$0xff] }
 0x441   : > { %3117 = vmatprep.subr.mxu0 %v5887_v0  ;;  %5074 = vmatprep.subr.mxu1 %v4899_v47 }
 0x442   : > { %3118 = vmatpush1.msra.mxu0 %v3062_v22  ;;  %5075 = vmatpush3.msra.mxu1 %v4899_v47  ;;  %v4897_v22 = vld [vmem:[%s6838_s9 + $0xb0] sm:$0xff] }
 0x443   : > { %3119 = vmatprep.subr.mxu0 %v5887_v0  ;;  %5076 = vmatprep.subr.mxu1 %v4898_v17 }
 0x444   : > { %3120 = vmatpush1.msra.mxu0 %v3061_v57  ;;  %5077 = vmatpush3.msra.mxu1 %v4898_v17  ;;  %v4916_v57 = vld [vmem:[%s6838_s9 + $0x128] sm:$0xff]  ;;  %v3714_v17 = vld [vmem:[#allocation21 + $0x1b8] sm:$0xff] }
 0x445   : > { %3121 = vmatprep.subr.mxu0 %v5887_v0  ;;  %5078 = vmatprep.subr.mxu1 %v4897_v22 }
 0x446   : > { %3122 = vmatpush1.msra.mxu0 %v3060_v24  ;;  %5079 = vmatpush3.msra.mxu1 %v4897_v22  ;;  %v4896_v24 = vld [vmem:[%s6838_s9 + $0xa8] sm:$0xff]  ;;  %v3713_v22 = vld [vmem:[#allocation21 + $0x1b0] sm:$0xff] }
 0x447   : > { %3123 = vmatprep.subr.mxu0 %v5887_v0  ;;  %5080 = vmatprep.subr.mxu1 %v4896_v24 }
 0x448   : > { %3124 = vmatpush1.msra.mxu0 %v3059_v28  ;;  %v4915_v28 = vld [vmem:[%s6838_s9 + $0x120] sm:$0xff]  ;;  %5081 = vmatpush3.msra.mxu1 %v4896_v24  ;;  %v3712_v24 = vld [vmem:[#allocation21 + $0x1a8] sm:$0xff] }
 0x449   : > { %3125 = vmatprep.subr.mxu0 %v5887_v0 }
 0x44a   : > { %3126 = vmatpush1.msra.mxu0 %v3058_v30  ;;  %v4895_v30 = vld [vmem:[%s6838_s9 + $0xa0] sm:$0xff] }
 0x44b   : > { %3131 = vmatprep.subr.mxu0 %v5887_v0  ;;  %5082 = vmatprep.subr.mxu1 %v4895_v30 }
 0x44c   : > { %3132 = vmatpush2.msra.mxu0 %v3087_v61  ;;  %v4914_v61 = vld [vmem:[%s6838_s9 + $0x118] sm:$0xff]  ;;  %5083 = vmatpush3.msra.mxu1 %v4895_v30  ;;  %v3711_v30 = vld [vmem:[#allocation21 + $0x1a0] sm:$0xff] }
 0x44d   : > { %3133 = vmatprep.subr.mxu0 %v5887_v0 }
 0x44e   : > { %3134 = vmatpush2.msra.mxu0 %v3086_v1  ;;  %v4894_v1 = vld [vmem:[%s6838_s9 + $0x98] sm:$0xff] }
 0x44f   : > { %3135 = vmatprep.subr.mxu0 %v5887_v0  ;;  %5084 = vmatprep.subr.mxu1 %v4894_v1 }
 0x450   : > { %3136 = vmatpush2.msra.mxu0 %v3085_v21  ;;  %v4913_v21 = vld [vmem:[%s6838_s9 + $0x110] sm:$0xff]  ;;  %5085 = vmatpush3.msra.mxu1 %v4894_v1  ;;  %v3710_v1 = vld [vmem:[#allocation21 + $0x198] sm:$0xff] }
 0x451   : > { %3137 = vmatprep.subr.mxu0 %v5887_v0 }
 0x452   : > { %3138 = vmatpush2.msra.mxu0 %v3084_v26  ;;  %v4893_v26 = vld [vmem:[%s6838_s9 + $0x90] sm:$0xff] }
 0x453   : > { %3139 = vmatprep.subr.mxu0 %v5887_v0  ;;  %5086 = vmatprep.subr.mxu1 %v4893_v26 }
 0x454   : > { %3140 = vmatpush2.msra.mxu0 %v3083_v14  ;;  %v4912_v14 = vld [vmem:[%s6838_s9 + $0x108] sm:$0xff]  ;;  %5087 = vmatpush3.msra.mxu1 %v4893_v26  ;;  %v3709_v26 = vld [vmem:[#allocation21 + $0x190] sm:$0xff] }
 0x455   : > { %3141 = vmatprep.subr.mxu0 %v5887_v0 }
 0x456   : > { %3142 = vmatpush2.msra.mxu0 %v3082_v31  ;;  %v4892_v31 = vld [vmem:[%s6838_s9 + $0x88] sm:$0xff] }
 0x457   : > { %3143 = vmatprep.subr.mxu0 %v5887_v0  ;;  %5088 = vmatprep.subr.mxu1 %v4892_v31 }
 0x458   : > { %3144 = vmatpush2.msra.mxu0 %v3081_v27  ;;  %v4911_v27 = vld [vmem:[%s6838_s9 + $0x100] sm:$0xff]  ;;  %5089 = vmatpush3.msra.mxu1 %v4892_v31  ;;  %v3708_v31 = vld [vmem:[#allocation21 + $0x188] sm:$0xff] }
 0x459   : > { %3145 = vmatprep.subr.mxu0 %v5887_v0 }
 0x45a   : > { %3146 = vmatpush2.msra.mxu0 %v3080_v19  ;;  %v4891_v19 = vld [vmem:[%s6838_s9 + $0x80] sm:$0xff] }
 0x45b   : > { %3147 = vmatprep.subr.mxu0 %v5887_v0  ;;  %5090 = vmatprep.subr.mxu1 %v4891_v19 }
 0x45c   : > { %3148 = vmatpush2.msra.mxu0 %v3079_v23  ;;  %v4910_v23 = vld [vmem:[%s6838_s9 + $0xf8] sm:$0xff]  ;;  %5091 = vmatpush3.msra.mxu1 %v4891_v19  ;;  %v3707_v19 = vld [vmem:[#allocation21 + $0x180] sm:$0xff] }
 0x45d   : > { %3149 = vmatprep.subr.mxu0 %v5887_v0 }
 0x45e   : > { %3150 = vmatpush2.msra.mxu0 %v3078_v35  ;;  %v4890_v35 = vld [vmem:[%s6838_s9 + $0x78] sm:$0xff] }
 0x45f   : > { %3151 = vmatprep.subr.mxu0 %v5887_v0  ;;  %5092 = vmatprep.subr.mxu1 %v4890_v35 }
 0x460   : > { %3152 = vmatpush2.msra.mxu0 %v3077_v36  ;;  %v4909_v36 = vld [vmem:[%s6838_s9 + $0xf0] sm:$0xff]  ;;  %5093 = vmatpush3.msra.mxu1 %v4890_v35  ;;  %v3706_v35 = vld [vmem:[#allocation21 + $0x178] sm:$0xff] }
 0x461   : > { %3153 = vmatprep.subr.mxu0 %v5887_v0 }
 0x462   : > { %3154 = vmatpush2.msra.mxu0 %v3076_v37  ;;  %v3206_v37 = vld [vmem:[%s6838_s9 + $0x70] sm:$0xff] }
 0x463   : > { %3155 = vmatprep.subr.mxu0 %v5887_v0  ;;  %5097 = vmatprep.subr.mxu1 %v3206_v37 }
 0x464   : > { %3156 = vmatpush2.msra.mxu0 %v3075_v38  ;;  %v4888_v38 = vld [vmem:[#allocation18] ss:$0 sm:$0xff] }
 0x465   : > { %3157 = vmatprep.subr.mxu0 %v5887_v0 }
 0x466   : > { %3158 = vmatpush2.msra.mxu0 %v3074_v39 }
 0x467   : > { %5130 = vmatprep.subr.mxu0 %v4923_v41 }
 0x4a4   : > { %v2691_v48 = vpop.f32.mrf.mxu0 }
 0x4a6   : > { %v2693_v25 = vpop.f32.mrf.mxu0 }
 0x4a8   : > { %v2697_v49 = vpop.f32.mrf.mxu0 }
 0x4aa   : > { %v2699_v51 = vpop.f32.mrf.mxu0 }
 0x4b4   : > { %v2768_v44 = vpop.f32.mrf.mxu1 }
 0x4b5   : > { %v2769_v4 = vadd.f32 %v2768_v44, %v2691_v48 }
 0x4b6   : > { %v2770_v50 = vpop.f32.mrf.mxu1 }
 0x4b7   : > { %v2771_v62 = vadd.f32 %v2770_v50, %v2693_v25 }
 0x4b9   : > { %v2774_v18 = vpop.f32.mrf.mxu1 }
 0x4ba   : > { %v2775_v13 = vadd.f32 %v2774_v18, %v2697_v49 }
 0x4bb   : > { %v2776_v52 = vpop.f32.mrf.mxu1 }
 0x4bc   : > { %v2777_v10 = vadd.f32 %v2776_v52, %v2699_v51 }
 0x4de   : > { %v3043_v32 = vpop.f32.mrf.mxu0 }
 0x4e0   : > { %v3045_v53 = vpop.f32.mrf.mxu0 }
 0x4e2   : > { %v3049_v58 = vpop.f32.mrf.mxu0 }
 0x4e4   : > { %v3051_v59 = vpop.f32.mrf.mxu0 }
 0x4f5   : > { %v2966_v3 = vpop.f32.mrf.mxu1 }
 0x4f6   : > { %v3044_v16 = vadd.f32 %v3043_v32, %v2966_v3  ;;  %v3205_v32 = vld [vmem:[%s6838_s9 + $0x68] sm:$0xff]  ;;  %v3203_v3 = vld [vmem:[%s6838_s9 + $0x58] sm:$0xff] }
 0x4f7   : > { %v2968_v63 = vpop.f32.mrf.mxu1 }
 0x4f8   : > { %v3046_v2 = vadd.f32 %v3045_v53, %v2968_v63  ;;  %v3054_v6 = vmax.f32 %v2769_v4, %v3044_v16  ;;  %v3204_v53 = vld [vmem:[%s6838_s9 + $0x60] sm:$0xff]  ;;  %v3201_v16 = vld [vmem:[%s6838_s9 + $0x48] sm:$0xff] }
 0x4f9   : > { %v2972_v34 = vpop.f32.mrf.mxu1  ;;  %v3200_v63 = vld [vmem:[%s6838_s9 + $0x40] sm:$0xff]  ;;  %v3197_v4 = vld [vmem:[%s6838_s9 + $0x28] sm:$0xff] }
 0x4fa   : > { %v3055_v56 = vmax.f32 %v2771_v62, %v3046_v2  ;;  %v3050_v8 = vadd.f32 %v3049_v58, %v2972_v34  ;;  %v3202_v58 = vld [vmem:[%s6838_s9 + $0x50] sm:$0xff]  ;;  %v3199_v62 = vld [vmem:[%s6838_s9 + $0x38] sm:$0xff]  ;;  %v3196_v34 = vld [vmem:[%s6838_s9 + $0x20] sm:$0xff] }
 0x4fb   : > { %v2974_v9 = vpop.f32.mrf.mxu1  ;;  %v3198_v2 = vld [vmem:[%s6838_s9 + $0x30] sm:$0xff] }
 0x4fc   : > { %v3052_v11 = vadd.f32 %v3051_v59, %v2974_v9  ;;  %4886 = vmatprep.mubr.msk.f32.mxu0 %vm3088_vm8, %v3055_v56  ;;  %v3056_v7 = vmax.f32 %v2775_v13, %v3050_v8  ;;  %v3195_v56 = vld [vmem:[%s6838_s9 + $0x18] sm:$0xff]  ;;  %v3194_v59 = vld [vmem:[%s6838_s9 + $0x10] sm:$0xff]  ;;  %v3192_v8 = vld [vmem:[%s6838_s9] sm:$0xff] }
 0x4fd   : > { %3160 = vmatmul.mubr.f32.vlgmr.msra.gmra.mxu0 %v3054_v6  ;;  %v3193_v6 = vld [vmem:[%s6838_s9 + $0x8] sm:$0xff] }
 0x4fe   : > { %v3057_v54 = vmax.f32 %v2777_v10, %v3052_v11  ;;  %5131 = vmatpush3.msra.mxu0 %v4923_v41  ;;  %v3548_v10 = vld [vmem:[#allocation21 + $0x138] sm:$0xff]  ;;  %v3547_v11 = vld [vmem:[#allocation21 + $0x130] sm:$0xff]  ;;  %v3546_v13 = vld [vmem:[#allocation21 + $0x128] sm:$0xff] }
 0x4ff   : > { %5132 = vmatprep.subr.mxu0 %v4922_v12 }
 0x500   : > { %4887 = vmatprep.mubr.msk.f32.mxu0 %vm3088_vm8, %v3057_v54  ;;  %5133 = vmatpush3.msra.mxu0 %v4922_v12  ;;  %v3718_v12 = vld [vmem:[#allocation21 + $0x1d8] sm:$0xff]  ;;  %v3717_v54 = vld [vmem:[#allocation21 + $0x1d0] sm:$0xff] }
 0x501   : > { %3165 = vmatmul.mubr.f32.gmra.mxu0 %v3056_v7  ;;  %5134 = vmatprep.subr.mxu0 %v4921_v5  ;;  %v3716_v7 = vld [vmem:[#allocation21 + $0x1c8] sm:$0xff] }
 0x502   : > { %5135 = vmatpush3.msra.mxu0 %v4921_v5  ;;  %v3545_v5 = vld [vmem:[#allocation21 + $0x120] sm:$0xff] }
 0x503   : > { %5136 = vmatprep.subr.mxu0 %v4920_v55 }
 0x504   : > { %5137 = vmatpush3.msra.mxu0 %v4920_v55  ;;  %v3544_v55 = vld [vmem:[#allocation21 + $0x118] sm:$0xff] }
 0x505   : > { %5138 = vmatprep.subr.mxu0 %v4919_v60 }
 0x506   : > { %5139 = vmatpush3.msra.mxu0 %v4919_v60  ;;  %v3715_v60 = vld [vmem:[#allocation21 + $0x1c0] sm:$0xff] }
 0x507   : > { %5140 = vmatprep.subr.mxu0 %v4918_v15 }
 0x508   : > { %5141 = vmatpush3.msra.mxu0 %v4918_v15  ;;  %v3543_v15 = vld [vmem:[#allocation21 + $0x110] sm:$0xff] }
 0x509   : > { %5142 = vmatprep.subr.mxu0 %v4917_v20 }
 0x50a   : > { %5143 = vmatpush3.msra.mxu0 %v4917_v20  ;;  %v3542_v20 = vld [vmem:[#allocation21 + $0x108] sm:$0xff] }
 0x50b   : > { %5144 = vmatprep.subr.mxu0 %v4916_v57 }
 0x50c   : > { %5145 = vmatpush3.msra.mxu0 %v4916_v57  ;;  %v3541_v57 = vld [vmem:[#allocation21 + $0x100] sm:$0xff] }
 0x50d   : > { %5146 = vmatprep.subr.mxu0 %v4915_v28 }
 0x50e   : > { %5147 = vmatpush3.msra.mxu0 %v4915_v28  ;;  %v3540_v28 = vld [vmem:[#allocation21 + $0xf8] sm:$0xff] }
 0x50f   : > { %5148 = vmatprep.subr.mxu0 %v4914_v61 }
 0x510   : > { %5149 = vmatpush3.msra.mxu0 %v4914_v61  ;;  %v3539_v61 = vld [vmem:[#allocation21 + $0xf0] sm:$0xff] }
 0x511   : > { %5150 = vmatprep.subr.mxu0 %v4913_v21 }
 0x512   : > { %5151 = vmatpush3.msra.mxu0 %v4913_v21  ;;  %v3538_v21 = vld [vmem:[#allocation21 + $0xe8] sm:$0xff] }
 0x513   : > { %5152 = vmatprep.subr.mxu0 %v4912_v14 }
 0x514   : > { %5153 = vmatpush3.msra.mxu0 %v4912_v14  ;;  %v3537_v14 = vld [vmem:[#allocation21 + $0xe0] sm:$0xff] }
 0x515   : > { %5154 = vmatprep.subr.mxu0 %v4911_v27 }
 0x516   : > { %5155 = vmatpush3.msra.mxu0 %v4911_v27  ;;  %v3536_v27 = vld [vmem:[#allocation21 + $0xd8] sm:$0xff] }
 0x517   : > { %5156 = vmatprep.subr.mxu0 %v4910_v23 }
 0x518   : > { %5157 = vmatpush3.msra.mxu0 %v4910_v23  ;;  %v3535_v23 = vld [vmem:[#allocation21 + $0xd0] sm:$0xff] }
 0x519   : > { %5158 = vmatprep.subr.mxu0 %v4909_v36 }
 0x51a   : > { %5159 = vmatpush3.msra.mxu0 %v4909_v36  ;;  %v3534_v36 = vld [vmem:[#allocation21 + $0xc8] sm:$0xff] }
 0x51b   : > { %3734 = vmatprep.subr.mxu0 %v3718_v12  ;;  %v3523_v12 = vld [vmem:[#allocation21 + $0x80] sm:$0xff] }
 0x5bd   : > { %v3161_v39 = vpop.f32.mrf.mxu0 }
 0x5be   : > { %v3175_v41 = vmul.f32 %v4888_v38, %v3161_v39  ;;  %v3704_v39 = vld [vmem:[#allocation21 + $0x168] sm:$0xff] }
 0x5bf   : > { %v3163_v42 = vpop.f32.mrf.mxu0 }
 0x5c0   : > { %v3182_v43 = vadd.f32 %v4889_v40, %v3175_v41  ;;  %v3703_v41 = vld [vmem:[#allocation21 + $0x160] sm:$0xff]  ;;  %v3531_v42 = vld [vmem:[#allocation21 + $0xb0] sm:$0xff] }
 0x5c1   : > { %v3166_v45 = vpop.f32.mrf.mxu0 }
 0x5c2   : > { %v3184_v46 = vmax.f32 %v3182_v43, 0.0  ;;  %v3176_v47 = vmul.f32 %v4888_v38, %v3166_v45  ;;  %v3533_v38 = vld [vmem:[#allocation21 + $0xc0] sm:$0xff]  ;;  %v3702_v43 = vld [vmem:[#allocation21 + $0x158] sm:$0xff]  ;;  %v3530_v45 = vld [vmem:[#allocation21 + $0xa8] sm:$0xff] }
 0x5c3   : > { %v3168_v48 = vpop.f32.mrf.mxu0 }
 0x5c4   : > { %3187 = vst.msk [vmem:[#allocation3] sm:$0xff] %vm3186_vm9, %v3184_v46  ;;  %v3183_v25 = vadd.f32 %v4889_v40, %v3176_v47  ;;  %v3532_v40 = vld [vmem:[#allocation21 + $0xb8] sm:$0xff]  ;;  %v3701_v46 = vld [vmem:[#allocation21 + $0x150] sm:$0xff]  ;;  %v3529_v47 = vld [vmem:[#allocation21 + $0xa0] sm:$0xff] }
 0x5c5   : > { %v3700_v48 = vld [vmem:[#allocation21 + $0x148] sm:$0xff] }
 0x5c6   : > { %v3185_v44 = vmax.f32 %v3183_v25, 0.0  ;;  %v3526_v25 = vld [vmem:[#allocation21 + $0x98] sm:$0xff] }
 0x5c8   : > { %3189 = vst.msk [vmem:[#allocation3 + $0x8] sm:$0xf] %vm3188_vm10, %v3185_v44  ;;  %v3699_v44 = vld [vmem:[#allocation21 + $0x140] sm:$0xff] }
 0x5cb   : > { %v3190_v52 = vld [vmem:[#allocation3] sm:$0xff] }
 0x5cf   : > { %v3207_v49 = vld [vmem:[#allocation3 + $0x1] sm:$0xff]  ;;  %v3208_v51 = vld [vmem:[#allocation3 + $0x9] sm:$0x3] }
 0x5d0   : > { %v3387_v50 = vld [vmem:[#allocation3 + $0x2] sm:$0xff]  ;;  %5094 = vmatprep.mubr.msk.f32.mxu1 %vm3186_vm9, %v3207_v49  ;;  %v3388_v18 = vld [vmem:[#allocation3 + $0xa] sm:$0x3] }
 0x5d1   : > { %5160 = vmatprep.mubr.msk.f32.mxu0 %vm3186_vm9, %v3387_v50  ;;  %5095 = vmatmul.mubr.msk.f32.vlgmr.msra.gmra.mxu1 %vm3186_vm9, %v3208_v51  ;;  %v3191_v9 = vld [vmem:[#allocation3 + $0x8] sm:$0x3] }
 0x5d2   : > { %5161 = vmatmul.mubr.msk.f32.vlgmr.msra.gmra.mxu0 %vm3186_vm9, %v3388_v18  ;;  %5098 = vmatpush3.msra.mxu1 %v3206_v37  ;;  %v3705_v37 = vld [vmem:[#allocation21 + $0x170] sm:$0xff] }
 0x5d3   : > { %5127 = vmatprep.mubr.msk.f32.mxu1 %vm3186_vm9, %v3190_v52  ;;  %5099 = vmatprep.subr.mxu1 %v3205_v32  ;;  %v4926_v52 = vld [vmem:[#allocation19] ss:$0 sm:$0xff] }
 0x5d4   : > { %3786 = vmatprep.mubr.f32.mxu0 %v5887_v0  ;;  %5100 = vmatpush3.msra.mxu1 %v3205_v32 }
 0x5d5   : > { %5101 = vmatprep.subr.mxu1 %v3204_v53  ;;  %3735 = vmatpush1.msra.mxu0 %v3717_v54  ;;  %v3521_v54 = vld [vmem:[#allocation21 + $0x70] sm:$0xff] }
 0x5d6   : > { %5102 = vmatpush3.msra.mxu1 %v3204_v53  ;;  %3736 = vmatprep.subr.mxu0 %v3716_v7  ;;  %v3519_v7 = vld [vmem:[#allocation21 + $0x60] sm:$0xff] }
 0x5d7   : > { %5103 = vmatprep.subr.mxu1 %v3203_v3  ;;  %3737 = vmatpush1.msra.mxu0 %v3715_v60  ;;  %v3517_v60 = vld [vmem:[#allocation21 + $0x50] sm:$0xff] }
 0x5d8   : > { %5104 = vmatpush3.msra.mxu1 %v3203_v3  ;;  %3738 = vmatprep.subr.mxu0 %v3714_v17  ;;  %v3515_v17 = vld [vmem:[#allocation21 + $0x40] sm:$0xff] }
 0x5d9   : > { %5105 = vmatprep.subr.mxu1 %v3202_v58  ;;  %3739 = vmatpush1.msra.mxu0 %v3713_v22  ;;  %v3513_v22 = vld [vmem:[#allocation21 + $0x30] sm:$0xff] }
 0x5da   : > { %5106 = vmatpush3.msra.mxu1 %v3202_v58  ;;  %3740 = vmatprep.subr.mxu0 %v3712_v24  ;;  %v3511_v24 = vld [vmem:[#allocation21 + $0x20] sm:$0xff] }
 0x5db   : > { %5107 = vmatprep.subr.mxu1 %v3201_v16  ;;  %3741 = vmatpush1.msra.mxu0 %v3711_v30  ;;  %v3509_v30 = vld [vmem:[#allocation21 + $0x10] sm:$0xff] }
 0x5dc   : > { %5108 = vmatpush3.msra.mxu1 %v3201_v16  ;;  %3742 = vmatprep.subr.mxu0 %v3710_v1  ;;  %v3507_v1 = vld [vmem:[#allocation21] sm:$0xff] }
 0x5dd   : > { %5109 = vmatprep.subr.mxu1 %v3200_v63  ;;  %3743 = vmatpush1.msra.mxu0 %v3709_v26  ;;  %v4090_v26 = vld [vmem:[#allocation25 + $0x118] sm:$0xff] }
 0x5de   : > { %5110 = vmatpush3.msra.mxu1 %v3200_v63  ;;  %3744 = vmatprep.subr.mxu0 %v3708_v31  ;;  %v4927_v63 = vld [vmem:[#allocation19 + $0x1] ss:$0 sm:$0xff]  ;;  %v4088_v31 = vld [vmem:[#allocation25 + $0x108] sm:$0xff] }
 0x5df   : > { %5111 = vmatprep.subr.mxu1 %v3199_v62  ;;  %3745 = vmatpush1.msra.mxu0 %v3707_v19  ;;  %v4086_v19 = vld [vmem:[#allocation25 + $0xf8] sm:$0xff] }
 0x5e0   : > { %5112 = vmatpush3.msra.mxu1 %v3199_v62  ;;  %3746 = vmatprep.subr.mxu0 %v3706_v35  ;;  %v4084_v35 = vld [vmem:[#allocation25 + $0xe8] sm:$0xff] }
 0x5e1   : > { %5113 = vmatprep.subr.mxu1 %v3198_v2  ;;  %3747 = vmatpush1.msra.mxu0 %v3705_v37  ;;  %v4082_v37 = vld [vmem:[#allocation25 + $0xd8] sm:$0xff] }
 0x5e2   : > { %5114 = vmatpush3.msra.mxu1 %v3198_v2  ;;  %3748 = vmatprep.subr.mxu0 %v3704_v39  ;;  %v4080_v39 = vld [vmem:[#allocation25 + $0xc8] sm:$0xff] }
 0x5e3   : > { %5115 = vmatprep.subr.mxu1 %v3197_v4  ;;  %3749 = vmatpush1.msra.mxu0 %v3703_v41  ;;  %v4078_v41 = vld [vmem:[#allocation25 + $0xb8] sm:$0xff] }
 0x5e4   : > { %5116 = vmatpush3.msra.mxu1 %v3197_v4  ;;  %3750 = vmatprep.subr.mxu0 %v3702_v43  ;;  %v4076_v43 = vld [vmem:[#allocation25 + $0xa8] sm:$0xff] }
 0x5e5   : > { %5117 = vmatprep.subr.mxu1 %v3196_v34  ;;  %3751 = vmatpush1.msra.mxu0 %v3701_v46 }
 0x5e6   : > { %5118 = vmatpush3.msra.mxu1 %v3196_v34  ;;  %3752 = vmatprep.subr.mxu0 %v3700_v48 }
 0x5e7   : > { %5119 = vmatprep.subr.mxu1 %v3195_v56  ;;  %3753 = vmatpush1.msra.mxu0 %v3699_v44 }
 0x5e8   : > { %5120 = vmatpush3.msra.mxu1 %v3195_v56  ;;  %4095 = vmatprep.subr.mxu0 %v5887_v0 }
 0x5e9   : > { %5121 = vmatprep.subr.mxu1 %v3194_v59 }
 0x5ea   : > { %5122 = vmatpush3.msra.mxu1 %v3194_v59 }
 0x5eb   : > { %5123 = vmatprep.subr.mxu1 %v3193_v6 }
 0x5ec   : > { %5124 = vmatpush3.msra.mxu1 %v3193_v6 }
 0x5ed   : > { %5125 = vmatprep.subr.mxu1 %v3192_v8 }
 0x5ee   : > { %5126 = vmatpush3.msra.mxu1 %v3192_v8  ;;  %v3525_v8 = vld [vmem:[#allocation21 + $0x90] sm:$0xff] }
 0x5ef   : > { %5128 = vmatmul.mubr.msk.f32.vlgmr.msra.gmra.mxu1 %vm3186_vm9, %v3191_v9  ;;  %3564 = vmatprep.subr.mxu1 %v3548_v10 }
 0x5f0   : > { %3616 = vmatprep.mubr.f32.mxu1 %v5887_v0  ;;  %3565 = vmatpush1.msra.mxu1 %v3547_v11  ;;  %v3524_v11 = vld [vmem:[#allocation21 + $0x88] sm:$0xff] }
 0x5f1   : > { %3566 = vmatprep.subr.mxu1 %v3546_v13  ;;  %v3522_v13 = vld [vmem:[#allocation21 + $0x78] sm:$0xff] }
 0x5f2   : > { %3567 = vmatpush1.msra.mxu1 %v3545_v5  ;;  %v3520_v5 = vld [vmem:[#allocation21 + $0x68] sm:$0xff] }
 0x5f3   : > { %3568 = vmatprep.subr.mxu1 %v3544_v55  ;;  %v3518_v55 = vld [vmem:[#allocation21 + $0x58] sm:$0xff] }
 0x5f4   : > { %3569 = vmatpush1.msra.mxu1 %v3543_v15  ;;  %v3516_v15 = vld [vmem:[#allocation21 + $0x48] sm:$0xff] }
 0x5f5   : > { %3570 = vmatprep.subr.mxu1 %v3542_v20  ;;  %v3514_v20 = vld [vmem:[#allocation21 + $0x38] sm:$0xff] }
 0x5f6   : > { %3571 = vmatpush1.msra.mxu1 %v3541_v57  ;;  %v3512_v57 = vld [vmem:[#allocation21 + $0x28] sm:$0xff] }
 0x5f7   : > { %3572 = vmatprep.subr.mxu1 %v3540_v28  ;;  %v3510_v28 = vld [vmem:[#allocation21 + $0x18] sm:$0xff] }
 0x5f8   : > { %3573 = vmatpush1.msra.mxu1 %v3539_v61  ;;  %v3508_v61 = vld [vmem:[#allocation21 + $0x8] sm:$0xff] }
 0x5f9   : > { %3574 = vmatprep.subr.mxu1 %v3538_v21 }
 0x5fa   : > { %3575 = vmatpush1.msra.mxu1 %v3537_v14  ;;  %v4089_v14 = vld [vmem:[#allocation25 + $0x110] sm:$0xff] }
 0x5fb   : > { %3576 = vmatprep.subr.mxu1 %v3536_v27  ;;  %v4087_v27 = vld [vmem:[#allocation25 + $0x100] sm:$0xff] }
 0x5fc   : > { %3577 = vmatpush1.msra.mxu1 %v3535_v23  ;;  %v4085_v23 = vld [vmem:[#allocation25 + $0xf0] sm:$0xff] }
 0x5fd   : > { %3578 = vmatprep.subr.mxu1 %v3534_v36  ;;  %v4083_v36 = vld [vmem:[#allocation25 + $0xe0] sm:$0xff] }
 0x5fe   : > { %3579 = vmatpush1.msra.mxu1 %v3533_v38  ;;  %v4081_v38 = vld [vmem:[#allocation25 + $0xd0] sm:$0xff] }
 0x5ff   : > { %3580 = vmatprep.subr.mxu1 %v3532_v40  ;;  %v4079_v40 = vld [vmem:[#allocation25 + $0xc0] sm:$0xff] }
 0x600   : > { %3581 = vmatpush1.msra.mxu1 %v3531_v42  ;;  %v4077_v42 = vld [vmem:[#allocation25 + $0xb0] sm:$0xff] }
 0x601   : > { %3582 = vmatprep.subr.mxu1 %v3530_v45 }
 0x602   : > { %3583 = vmatpush1.msra.mxu1 %v3529_v47  ;;  %v3795_v47 = vld [vmem:[#allocation22] ss:$2 sm:$0x3] }
 0x603   : > { %3638 = vmatprep.subr.mxu1 %v3526_v25 }
 0x691   : > { %v5096_v49 = vpop.f32.mrf.mxu1 }
 0x692   : > { %v5162_v51 = vpop.f32.mrf.mxu0 }
 0x693   : > { %v3297_v50 = vpop.f32.mrf.mxu1 }
 0x694   : > { %v3477_v16 = vpop.f32.mrf.mxu0 }
 0x6af   : > { %v5129_v18 = vpop.f32.mrf.mxu1 }
 0x6b0   : > { %v3384_v32 = vadd.f32 %v5129_v18, %v5096_v49  ;;  %v3800_v49 = vrot.slane %v3795_v47, %v6247_v29 }
 0x6b1   : > { %v3378_v53 = vpop.f32.mrf.mxu1 }
 0x6b2   : > { %v3487_v3 = vadd.f32 %v5162_v51, %v3384_v32  ;;  %v3379_v58 = vadd.f32 %v3378_v53, %v3297_v50  ;;  %v3810_v50 = vld [vmem:[#allocation22 + $0x1] ss:$2 sm:$0x3] }
 0x6b4   : > { %v3494_v62 = vmul.f32 %v4926_v52, %v3487_v3  ;;  %v3486_v2 = vadd.f32 %v3477_v16, %v3379_v58  ;;  %v3815_v3 = vrot.slane %v3810_v50, %v6247_v29  ;;  %v3995_v29 = vld [vmem:[#allocation25 + $0x78] sm:$0xff] }
 0x6b6   : > { %v3501_v4 = vadd.f32 %v4927_v63, %v3494_v62  ;;  %v3493_v34 = vmul.f32 %v4926_v52, %v3486_v2  ;;  %v3804_v52 = vrot.slane %v3795_v47, %v6250_v33  ;;  %v4939_v47 = vld [vmem:[%s6844_s15 + $0x70] sm:$0xff] }
 0x6b8   : > { %v3503_v56 = vmax.f32 %v3501_v4, 0.0  ;;  %v3500_v59 = vadd.f32 %v4927_v63, %v3493_v34  ;;  %v3819_v63 = vrot.slane %v3810_v50, %v6250_v33  ;;  %v3994_v33 = vld [vmem:[#allocation25 + $0x70] sm:$0xff]  ;;  %v4171_v50 = vld [vmem:[%s6844_s15 + $0x10] sm:$0xff] }
 0x6ba   : > { %3505 = vst.msk [vmem:[#allocation4 + $0x8] sm:$0x3] %vm1176_vm3, %v3503_v56  ;;  %v3502_v6 = vmax.f32 %v3500_v59, 0.0  ;;  %v3826_v59 = vld [vmem:[#allocation24] sm:$0xf] }
 0x6bc   : > { %3504 = vst.msk [vmem:[#allocation4] sm:$0xff] %vm1169_vm2, %v3502_v6  ;;  %v3903_v6 = vld [vmem:[#allocation24 + $0x4] sm:$0xf] }
 0x6c3   : > { %v3527_v9 = vld [vmem:[#allocation4 + $0x1] sm:$0xff] }
 0x6c4   : > { %v3697_v10 = vld [vmem:[#allocation4 + $0x2] sm:$0xff]  ;;  %4928 = vmatmul.mubr.msk.f32.vlgmr.msra.gmra.mxu1 %vm1169_vm2, %v3527_v9 }
 0x6c5   : > { %4930 = vmatmul.mubr.msk.f32.vlgmr.msra.gmra.mxu0 %vm1169_vm2, %v3697_v10  ;;  %3639 = vmatpush1.msra.mxu1 %v3525_v8  ;;  %v3506_v21 = vld [vmem:[#allocation4] sm:$0xff]  ;;  %v3993_v8 = vld [vmem:[#allocation25 + $0x68] sm:$0xff] }
 0x6c6   : > { %3690 = vmatprep.mubr.f32.mxu1 %v5887_v0  ;;  %3640 = vmatprep.subr.mxu1 %v3524_v11  ;;  %v3992_v9 = vld [vmem:[#allocation25 + $0x60] sm:$0xff]  ;;  %v3991_v10 = vld [vmem:[#allocation25 + $0x58] sm:$0xff]  ;;  %v3990_v11 = vld [vmem:[#allocation25 + $0x50] sm:$0xff] }
 0x6c7   : > { %3641 = vmatpush1.msra.mxu1 %v3523_v12  ;;  %4096 = vmatpush1.msra.mxu0 %v4090_v26  ;;  %v3989_v12 = vld [vmem:[#allocation25 + $0x48] sm:$0xff]  ;;  %v4091_v26 = vld [vmem:[#allocation25 + $0x120] sm:$0xff] }
 0x6c8   : > { %3642 = vmatprep.subr.mxu1 %v3522_v13  ;;  %4097 = vmatprep.subr.mxu0 %v5887_v0  ;;  %v3988_v13 = vld [vmem:[#allocation25 + $0x40] sm:$0xff] }
 0x6c9   : > { %3643 = vmatpush1.msra.mxu1 %v3521_v54  ;;  %4098 = vmatpush1.msra.mxu0 %v4089_v14  ;;  %v3987_v54 = vld [vmem:[#allocation25 + $0x38] sm:$0xff] }
 0x6ca   : > { %3644 = vmatprep.subr.mxu1 %v3520_v5  ;;  %4099 = vmatprep.subr.mxu0 %v5887_v0  ;;  %v3986_v5 = vld [vmem:[#allocation25 + $0x30] sm:$0xff] }
 0x6cb   : > { %3645 = vmatpush1.msra.mxu1 %v3519_v7  ;;  %4100 = vmatpush1.msra.mxu0 %v4088_v31  ;;  %v3985_v7 = vld [vmem:[#allocation25 + $0x28] sm:$0xff] }
 0x6cc   : > { %3646 = vmatprep.subr.mxu1 %v3518_v55  ;;  %4101 = vmatprep.subr.mxu0 %v5887_v0  ;;  %v3984_v55 = vld [vmem:[#allocation25 + $0x20] sm:$0xff] }
 0x6cd   : > { %3647 = vmatpush1.msra.mxu1 %v3517_v60  ;;  %4102 = vmatpush1.msra.mxu0 %v4087_v27  ;;  %v3983_v60 = vld [vmem:[#allocation25 + $0x18] sm:$0xff] }
 0x6ce   : > { %3648 = vmatprep.subr.mxu1 %v3516_v15  ;;  %4103 = vmatprep.subr.mxu0 %v5887_v0  ;;  %v3982_v15 = vld [vmem:[#allocation25 + $0x10] sm:$0xff] }
 0x6cf   : > { %3649 = vmatpush1.msra.mxu1 %v3515_v17  ;;  %4104 = vmatpush1.msra.mxu0 %v4086_v19  ;;  %v3981_v17 = vld [vmem:[#allocation25 + $0x8] sm:$0xff] }
 0x6d0   : > { %3650 = vmatprep.subr.mxu1 %v3514_v20  ;;  %4105 = vmatprep.subr.mxu0 %v5887_v0  ;;  %v3980_v20 = vld [vmem:[#allocation25] sm:$0xff] }
 0x6d1   : > { %3651 = vmatpush1.msra.mxu1 %v3513_v22  ;;  %4106 = vmatpush1.msra.mxu0 %v4085_v23  ;;  %v4075_v22 = vld [vmem:[#allocation25 + $0xa0] sm:$0xff] }
 0x6d2   : > { %3652 = vmatprep.subr.mxu1 %v3512_v57  ;;  %4107 = vmatprep.subr.mxu0 %v5887_v0  ;;  %v3999_v57 = vld [vmem:[#allocation25 + $0x98] sm:$0xff] }
 0x6d3   : > { %3653 = vmatpush1.msra.mxu1 %v3511_v24  ;;  %4108 = vmatpush1.msra.mxu0 %v4084_v35  ;;  %v4094_v24 = vld [vmem:[#allocation25 + $0x138] sm:$0xff] }
 0x6d4   : > { %3654 = vmatprep.subr.mxu1 %v3510_v28  ;;  %4109 = vmatprep.subr.mxu0 %v5887_v0  ;;  %v3998_v28 = vld [vmem:[#allocation25 + $0x90] sm:$0xff] }
 0x6d5   : > { %3655 = vmatpush1.msra.mxu1 %v3509_v30  ;;  %4110 = vmatpush1.msra.mxu0 %v4083_v36  ;;  %v4093_v30 = vld [vmem:[#allocation25 + $0x130] sm:$0xff]  ;;  %v4944_v36 = vld [vmem:[%s6844_s15 + $0x98] sm:$0xff] }
 0x6d6   : > { %3656 = vmatprep.subr.mxu1 %v3508_v61  ;;  %4111 = vmatprep.subr.mxu0 %v5887_v0  ;;  %v3997_v61 = vld [vmem:[#allocation25 + $0x88] sm:$0xff] }
 0x6d7   : > { %3657 = vmatpush1.msra.mxu1 %v3507_v1  ;;  %4112 = vmatpush1.msra.mxu0 %v4082_v37  ;;  %v4092_v1 = vld [vmem:[#allocation25 + $0x128] sm:$0xff]  ;;  %v4178_v37 = vld [vmem:[%s6844_s15 + $0x48] sm:$0xff] }
 0x6d8   : > { %4929 = vmatmul.mubr.msk.f32.vlgmr.msra.gmra.mxu1 %vm1169_vm2, %v3506_v21  ;;  %4113 = vmatprep.subr.mxu0 %v5887_v0  ;;  %v3996_v21 = vld [vmem:[#allocation25 + $0x80] sm:$0xff] }
 0x6d9   : > { %3895 = vmatprep.mubr.f32.mxu1 %v5887_v0  ;;  %4114 = vmatpush1.msra.mxu0 %v4081_v38  ;;  %v4943_v38 = vld [vmem:[%s6844_s15 + $0x90] sm:$0xff] }
 0x6da   : > { %4115 = vmatprep.subr.mxu0 %v5887_v0 }
 0x6db   : > { %4116 = vmatpush1.msra.mxu0 %v4080_v39  ;;  %v4177_v39 = vld [vmem:[%s6844_s15 + $0x40] sm:$0xff] }
 0x6dc   : > { %4117 = vmatprep.subr.mxu0 %v5887_v0 }
 0x6dd   : > { %4118 = vmatpush1.msra.mxu0 %v4079_v40  ;;  %v4942_v40 = vld [vmem:[%s6844_s15 + $0x88] sm:$0xff] }
 0x6de   : > { %4119 = vmatprep.subr.mxu0 %v5887_v0 }
 0x6df   : > { %4120 = vmatpush1.msra.mxu0 %v4078_v41  ;;  %v4176_v41 = vld [vmem:[%s6844_s15 + $0x38] sm:$0xff] }
 0x6e0   : > { %4121 = vmatprep.subr.mxu0 %v5887_v0 }
 0x6e1   : > { %4122 = vmatpush1.msra.mxu0 %v4077_v42  ;;  %v4941_v42 = vld [vmem:[%s6844_s15 + $0x80] sm:$0xff] }
 0x6e2   : > { %4123 = vmatprep.subr.mxu0 %v5887_v0 }
 0x6e3   : > { %4124 = vmatpush1.msra.mxu0 %v4076_v43  ;;  %v4175_v43 = vld [vmem:[%s6844_s15 + $0x30] sm:$0xff] }
 0x6e4   : > { %4125 = vmatprep.subr.mxu0 %v5887_v0 }
 0x6e5   : > { %4126 = vmatpush1.msra.mxu0 %v4075_v22  ;;  %v4958_v22 = vld [vmem:[#allocation27] ss:$0 sm:$0xff] }
 0x6e6   : > { %4151 = vmatprep.subr.mxu0 %v5887_v0 }
 0x6e7   : > { %4152 = vmatpush2.msra.mxu0 %v4094_v24  ;;  %v4959_v24 = vld [vmem:[#allocation27 + $0x1] ss:$0 sm:$0xff] }
 0x6e8   : > { %4153 = vmatprep.subr.mxu0 %v5887_v0 }
 0x6e9   : > { %4154 = vmatpush2.msra.mxu0 %v4093_v30 }
 0x6ea   : > { %4155 = vmatprep.subr.mxu0 %v5887_v0 }
 0x6eb   : > { %4156 = vmatpush2.msra.mxu0 %v4092_v1 }
 0x6ec   : > { %4157 = vmatprep.subr.mxu0 %v5887_v0 }
 0x6ed   : > { %4158 = vmatpush2.msra.mxu0 %v4091_v26 }
 0x6ee   : > { %5186 = vmatprep.subr.mxu0 %v5887_v0 }
 0x784   : > { %v3618_v45 = vpop.f32.mrf.mxu1 }
 0x785   : > { %v3788_v48 = vpop.f32.mrf.mxu0 }
 0x786   : > { %v3620_v46 = vpop.f32.mrf.mxu1 }
 0x787   : > { %v3790_v53 = vpop.f32.mrf.mxu0 }
 0x798   : > { %v3692_v25 = vpop.f32.mrf.mxu1 }
 0x799   : > { %v3693_v44 = vadd.f32 %v3692_v25, %v3618_v45  ;;  %v4940_v45 = vld [vmem:[%s6844_s15 + $0x78] sm:$0xff]  ;;  %v4938_v25 = vld [vmem:[%s6844_s15 + $0x68] sm:$0xff] }
 0x79a   : > { %v3694_v51 = vpop.f32.mrf.mxu1 }
 0x79b   : > { %v3793_v18 = vadd.f32 %v3788_v48, %v3693_v44  ;;  %v3695_v32 = vadd.f32 %v3694_v51, %v3620_v46  ;;  %v4174_v46 = vld [vmem:[%s6844_s15 + $0x28] sm:$0xff]  ;;  %v4173_v48 = vld [vmem:[%s6844_s15 + $0x20] sm:$0xff]  ;;  %v4172_v44 = vld [vmem:[%s6844_s15 + $0x18] sm:$0xff] }
 0x79c   : > { %v4936_v51 = vld [vmem:[%s6844_s15 + $0x58] sm:$0xff] }
 0x79d   : > { %v3807_v58 = vmul.f32 %v3800_v49, %v3793_v18  ;;  %v3794_v16 = vadd.f32 %v3790_v53, %v3695_v32  ;;  %v4937_v49 = vld [vmem:[%s6844_s15 + $0x60] sm:$0xff]  ;;  %v4170_v18 = vld [vmem:[%s6844_s15 + $0x8] sm:$0xff]  ;;  %v4935_v32 = vld [vmem:[%s6844_s15 + $0x50] sm:$0xff] }
 0x79f   : > { %v3808_v62 = vmul.f32 %v3804_v52, %v3794_v16  ;;  %v3822_v2 = vadd.f32 %v3815_v3, %v3807_v58  ;;  %v4169_v52 = vld [vmem:[%s6844_s15] sm:$0xff] }
 0x7a1   : > { %v3823_v4 = vadd.f32 %v3819_v63, %v3808_v62  ;;  %v3824_v56 = vmax.f32 %v3822_v2, 0.0  ;;  %v4956_v62 = vld [vmem:[%s6844_s15 + $0xe8] sm:$0xff] }
 0x7a3   : > { %v3825_v34 = vmax.f32 %v3823_v4, 0.0 }
 0x7a5   : > { %3861 = vmatprep.subr.mxu1 %v3825_v34 }
 0x7a6   : > { %3862 = vmatpush1.msra.mxu1 %v3824_v56 }
 0x7a7   : > { %4931 = vmatmul.mubr.msk.f32.vlgmr.msra.gmra.mxu1 %vm3827_vm11, %v3826_v59  ;;  %3937 = vmatprep.subr.mxu1 %v3825_v34  ;;  %v4955_v34 = vld [vmem:[%s6844_s15 + $0xe0] sm:$0xff]  ;;  %v4953_v59 = vld [vmem:[%s6844_s15 + $0xd0] sm:$0xff] }
 0x7a8   : > { %3938 = vmatpush1.msra.mxu1 %v3824_v56  ;;  %3971 = vmatprep.mubr.f32.mxu1 %v5887_v0  ;;  %v4954_v56 = vld [vmem:[%s6844_s15 + $0xd8] sm:$0xff] }
 0x7a9   : > { %4004 = vmatprep.subr.mxu1 %v5887_v0 }
 0x7ab   : > { %4932 = vmatmul.mubr.msk.f32.vlgmr.msra.gmra.mxu1 %vm3827_vm11, %v3903_v6  ;;  %v4952_v6 = vld [vmem:[%s6844_s15 + $0xc8] sm:$0xff] }
 0x7ac   : > { %4005 = vmatpush1.msra.mxu1 %v3995_v29  ;;  %v4951_v29 = vld [vmem:[%s6844_s15 + $0xc0] sm:$0xff] }
 0x7ad   : > { %4006 = vmatprep.subr.mxu1 %v5887_v0 }
 0x7ae   : > { %4007 = vmatpush1.msra.mxu1 %v3994_v33  ;;  %v4950_v33 = vld [vmem:[%s6844_s15 + $0xb8] sm:$0xff] }
 0x7af   : > { %4008 = vmatprep.subr.mxu1 %v5887_v0 }
 0x7b0   : > { %4009 = vmatpush1.msra.mxu1 %v3993_v8  ;;  %v4949_v8 = vld [vmem:[%s6844_s15 + $0xb0] sm:$0xff] }
 0x7b1   : > { %4010 = vmatprep.subr.mxu1 %v5887_v0 }
 0x7b2   : > { %4011 = vmatpush1.msra.mxu1 %v3992_v9  ;;  %v4948_v9 = vld [vmem:[%s6844_s15 + $0xa8] sm:$0xff] }
 0x7b3   : > { %4012 = vmatprep.subr.mxu1 %v5887_v0 }
 0x7b4   : > { %4013 = vmatpush1.msra.mxu1 %v3991_v10  ;;  %v4947_v10 = vld [vmem:[%s6844_s15 + $0xa0] sm:$0xff] }
 0x7b5   : > { %4014 = vmatprep.subr.mxu1 %v5887_v0 }
 0x7b6   : > { %4015 = vmatpush1.msra.mxu1 %v3990_v11 }
 0x7b7   : > { %4016 = vmatprep.subr.mxu1 %v5887_v0 }
 0x7b8   : > { %4017 = vmatpush1.msra.mxu1 %v3989_v12  ;;  %v4963_v12 = vld [vmem:[%s6846_s17 + $0x38] sm:$0xff] }
 0x7b9   : > { %4018 = vmatprep.subr.mxu1 %v5887_v0 }
 0x7ba   : > { %4019 = vmatpush1.msra.mxu1 %v3988_v13  ;;  %v4962_v13 = vld [vmem:[%s6846_s17 + $0x30] sm:$0xff] }
 0x7bb   : > { %4020 = vmatprep.subr.mxu1 %v5887_v0 }
 0x7bc   : > { %4021 = vmatpush1.msra.mxu1 %v3987_v54  ;;  %v4961_v54 = vld [vmem:[%s6846_s17 + $0x28] sm:$0xff] }
 0x7bd   : > { %4022 = vmatprep.subr.mxu1 %v5887_v0 }
 0x7be   : > { %4023 = vmatpush1.msra.mxu1 %v3986_v5  ;;  %v4960_v5 = vld [vmem:[%s6846_s17 + $0x20] sm:$0xff] }
 0x7bf   : > { %4024 = vmatprep.subr.mxu1 %v5887_v0 }
 0x7c0   : > { %4025 = vmatpush1.msra.mxu1 %v3985_v7 }
 0x7c1   : > { %4026 = vmatprep.subr.mxu1 %v5887_v0 }
 0x7c2   : > { %4027 = vmatpush1.msra.mxu1 %v3984_v55 }
 0x7c3   : > { %4028 = vmatprep.subr.mxu1 %v5887_v0 }
 0x7c4   : > { %4029 = vmatpush1.msra.mxu1 %v3983_v60 }
 0x7c5   : > { %4030 = vmatprep.subr.mxu1 %v5887_v0 }
 0x7c6   : > { %4031 = vmatpush1.msra.mxu1 %v3982_v15 }
 0x7c7   : > { %4032 = vmatprep.subr.mxu1 %v5887_v0 }
 0x7c8   : > { %4033 = vmatpush1.msra.mxu1 %v3981_v17 }
 0x7c9   : > { %4034 = vmatprep.subr.mxu1 %v5887_v0 }
 0x7ca   : > { %4035 = vmatpush1.msra.mxu1 %v3980_v20 }
 0x7cb   : > { %4060 = vmatprep.subr.mxu1 %v5887_v0 }
 0x7cc   : > { %4061 = vmatpush2.msra.mxu1 %v3999_v57 }
 0x7cd   : > { %4062 = vmatprep.subr.mxu1 %v5887_v0 }
 0x7ce   : > { %4063 = vmatpush2.msra.mxu1 %v3998_v28 }
 0x7cf   : > { %4064 = vmatprep.subr.mxu1 %v5887_v0 }
 0x7d0   : > { %4065 = vmatpush2.msra.mxu1 %v3997_v61 }
 0x7d1   : > { %4066 = vmatprep.subr.mxu1 %v5887_v0 }
 0x7d2   : > { %4067 = vmatpush2.msra.mxu1 %v3996_v21  ;;  %v4442_v21 = vld [vmem:[%s6846_s17 + $0x18] sm:$0xff] }
 0x7d3   : > { %5163 = vmatprep.subr.mxu1 %v5887_v0 }
 0x867   : > { %v3897_v14 = vpop.f32.mrf.mxu1 }
 0x869   : > { %v3899_v31 = vpop.f32.mrf.mxu1 }
 0x86b   : > { %v3973_v27 = vpop.f32.mrf.mxu1 }
 0x86c   : > { %v3978_v35 = vmax.f32 %v3897_v14, %v3973_v27  ;;  %v4441_v14 = vld [vmem:[%s6846_s17 + $0x10] sm:$0xff]  ;;  %v4439_v27 = vld [vmem:[%s6846_s17] sm:$0xff] }
 0x86d   : > { %v3975_v19 = vpop.f32.mrf.mxu1 }
 0x86e   : > { %v3979_v23 = vmax.f32 %v3899_v31, %v3975_v19  ;;  %v4440_v31 = vld [vmem:[%s6846_s17 + $0x8] sm:$0xff] }
 0x870   : > { %4933 = vmatprep.mubr.msk.f32.mxu1 %vm4000_vm12, %v3979_v23  ;;  %4934 = vmatprep.mubr.msk.f32.mxu0 %vm4000_vm12, %v3979_v23 }
 0x871   : > { %4069 = vmatmul.mubr.f32.vlgmr.msra.gmra.mxu1 %v3978_v35  ;;  %4160 = vmatmul.mubr.f32.vlgmr.msra.gmra.mxu0 %v3978_v35 }
 0x872   : > { %5164 = vmatpush3.msra.mxu1 %v4944_v36  ;;  %5187 = vmatpush3.msra.mxu0 %v4178_v37 }
 0x873   : > { %5165 = vmatprep.subr.mxu1 %v5887_v0  ;;  %5188 = vmatprep.subr.mxu0 %v5887_v0 }
 0x874   : > { %5166 = vmatpush3.msra.mxu1 %v4943_v38  ;;  %5189 = vmatpush3.msra.mxu0 %v4177_v39 }
 0x875   : > { %5167 = vmatprep.subr.mxu1 %v5887_v0  ;;  %5190 = vmatprep.subr.mxu0 %v5887_v0 }
 0x876   : > { %5168 = vmatpush3.msra.mxu1 %v4942_v40  ;;  %5191 = vmatpush3.msra.mxu0 %v4176_v41 }
 0x877   : > { %5169 = vmatprep.subr.mxu1 %v5887_v0  ;;  %5192 = vmatprep.subr.mxu0 %v5887_v0 }
 0x878   : > { %5170 = vmatpush3.msra.mxu1 %v4941_v42  ;;  %5193 = vmatpush3.msra.mxu0 %v4175_v43 }
 0x879   : > { %5171 = vmatprep.subr.mxu1 %v5887_v0  ;;  %5194 = vmatprep.subr.mxu0 %v5887_v0 }
 0x87a   : > { %5172 = vmatpush3.msra.mxu1 %v4940_v45  ;;  %5195 = vmatpush3.msra.mxu0 %v4174_v46 }
 0x87b   : > { %5173 = vmatprep.subr.mxu1 %v5887_v0  ;;  %5196 = vmatprep.subr.mxu0 %v5887_v0 }
 0x87c   : > { %5174 = vmatpush3.msra.mxu1 %v4939_v47  ;;  %5197 = vmatpush3.msra.mxu0 %v4173_v48 }
 0x87d   : > { %5175 = vmatprep.subr.mxu1 %v5887_v0  ;;  %5198 = vmatprep.subr.mxu0 %v5887_v0 }
 0x87e   : > { %5176 = vmatpush3.msra.mxu1 %v4938_v25  ;;  %5199 = vmatpush3.msra.mxu0 %v4172_v44 }
 0x87f   : > { %5177 = vmatprep.subr.mxu1 %v5887_v0  ;;  %5200 = vmatprep.subr.mxu0 %v5887_v0 }
 0x880   : > { %5178 = vmatpush3.msra.mxu1 %v4937_v49  ;;  %5201 = vmatpush3.msra.mxu0 %v4171_v50 }
 0x881   : > { %5179 = vmatprep.subr.mxu1 %v5887_v0  ;;  %5202 = vmatprep.subr.mxu0 %v5887_v0 }
 0x882   : > { %5180 = vmatpush3.msra.mxu1 %v4936_v51  ;;  %5203 = vmatpush3.msra.mxu0 %v4170_v18 }
 0x883   : > { %5181 = vmatprep.subr.mxu1 %v5887_v0  ;;  %5204 = vmatprep.subr.mxu0 %v5887_v0 }
 0x884   : > { %5182 = vmatpush3.msra.mxu1 %v4935_v32  ;;  %5183 = vmatprep.mubr.msk.f32.mxu1 %vm5888_vm13, %v5887_v0 }
 0x885   : > { %5205 = vmatpush3.msra.mxu0 %v4169_v52  ;;  %5206 = vmatprep.mubr.msk.f32.mxu0 %vm5888_vm13, %v5887_v0 }
 0x886   : > { %5209 = vmatprep.subr.mxu1 %v5887_v0  ;;  %5232 = vmatprep.subr.mxu0 %v5887_v0 }
 0x931   : > { %v4070_v53 = vpop.f32.mrf.mxu1  ;;  %v4161_v3 = vpop.f32.mrf.mxu0 }
 0x932   : > { %v4165_v58 = vmax.f32 %v4070_v53, %v4161_v3 }
 0x933   : > { %v4072_v16 = vpop.f32.mrf.mxu1  ;;  %v4163_v63 = vpop.f32.mrf.mxu0 }
 0x934   : > { %4167 = vst.msk [vmem:[#allocation5] sm:$0xf] %vm4166_vm14, %v4165_v58 }
 0x93b   : > { %v4179_v2 = vld [vmem:[#allocation5 + $0x1] sm:$0x3] }
 0x93c   : > { %v4168_v4 = vld [vmem:[#allocation5] sm:$0x3]  ;;  %5184 = vmatmul.mubr.msk.f32.vlgmr.msra.gmra.mxu1 %vm1169_vm2, %v4179_v2  ;;  %v4337_v11 = vld [vmem:[#allocation5 + $0x2] sm:$0x3] }
 0x93d   : > { %5207 = vmatmul.mubr.msk.f32.vlgmr.msra.gmra.mxu0 %vm1169_vm2, %v4168_v4  ;;  %5210 = vmatpush3.msra.mxu1 %v4956_v62 }
 0x93e   : > { %5229 = vmatprep.mubr.msk.f32.mxu1 %vm5888_vm13, %v5887_v0  ;;  %5211 = vmatprep.subr.mxu1 %v5887_v0 }
 0x93f   : > { %5240 = vmatprep.mubr.msk.f32.mxu0 %vm5888_vm13, %v5887_v0  ;;  %5212 = vmatpush3.msra.mxu1 %v4955_v34 }
 0x940   : > { %5213 = vmatprep.subr.mxu1 %v5887_v0  ;;  %5233 = vmatpush3.msra.mxu0 %v4963_v12 }
 0x941   : > { %5214 = vmatpush3.msra.mxu1 %v4954_v56  ;;  %5234 = vmatprep.subr.mxu0 %v5887_v0 }
 0x942   : > { %5215 = vmatprep.subr.mxu1 %v5887_v0  ;;  %5235 = vmatpush3.msra.mxu0 %v4962_v13 }
 0x943   : > { %5216 = vmatpush3.msra.mxu1 %v4953_v59  ;;  %5236 = vmatprep.subr.mxu0 %v5887_v0 }
 0x944   : > { %5217 = vmatprep.subr.mxu1 %v5887_v0  ;;  %5237 = vmatpush3.msra.mxu0 %v4961_v54 }
 0x945   : > { %5218 = vmatpush3.msra.mxu1 %v4952_v6  ;;  %5238 = vmatprep.subr.mxu0 %v5887_v0 }
 0x946   : > { %5219 = vmatprep.subr.mxu1 %v5887_v0  ;;  %5239 = vmatpush3.msra.mxu0 %v4960_v5 }
 0x947   : > { %5220 = vmatpush3.msra.mxu1 %v4951_v29  ;;  %5243 = vmatprep.subr.mxu0 %v5887_v0 }
 0x948   : > { %5221 = vmatprep.subr.mxu1 %v5887_v0 }
 0x949   : > { %5222 = vmatpush3.msra.mxu1 %v4950_v33 }
 0x94a   : > { %5223 = vmatprep.subr.mxu1 %v5887_v0 }
 0x94b   : > { %5224 = vmatpush3.msra.mxu1 %v4949_v8 }
 0x94c   : > { %5225 = vmatprep.subr.mxu1 %v5887_v0 }
 0x94d   : > { %5226 = vmatpush3.msra.mxu1 %v4948_v9 }
 0x94e   : > { %5227 = vmatprep.subr.mxu1 %v5887_v0 }
 0x94f   : > { %5228 = vmatpush3.msra.mxu1 %v4947_v10 }
 0x950   : > { %5230 = vmatmul.mubr.msk.f32.vlgmr.msra.gmra.mxu1 %vm1169_vm2, %v4337_v11 }
 0x9fc   : > { %v4260_v7 = vpop.f32.mrf.mxu1 }
 0x9fd   : > { %v4333_v55 = vpop.f32.mrf.mxu0 }
 0x9fe   : > { %v5185_v60 = vpop.f32.mrf.mxu1  ;;  %v4334_v17 = vadd.f32 %v4333_v55, %v4260_v7 }
 0x9ff   : > { %v5208_v15 = vpop.f32.mrf.mxu0 }
 0xa10   : > { %v4418_v20 = vpop.f32.mrf.mxu1 }
 0xa11   : > { %v4422_v57 = vadd.f32 %v4418_v20, %v4334_v17 }
 0xa12   : > { %v5231_v28 = vpop.f32.mrf.mxu1 }
 0xa13   : > { %v4428_v30 = vmul.f32 %v4958_v22, %v4422_v57 }
 0xa15   : > { %v4434_v61 = vadd.f32 %v4959_v24, %v4428_v30 }
 0xa17   : > { %v4435_v1 = vmax.f32 %v4434_v61, 0.0 }
 0xa19   : > { %4437 = vst.msk [vmem:[#allocation6] sm:$0x3] %vm4436_vm15, %v4435_v1 }
 0xa20   : > { %v4443_v26 = vld [vmem:[#allocation6 + $0x1] sm:$0x1]  ;;  %v4438_v19 = vld [vmem:[#allocation6] sm:$0x1] }
 0xa21   : > { %5241 = vmatmul.mubr.msk.f32.vlgmr.msra.gmra.mxu0 %vm4000_vm12, %v4443_v26 }
 0xa22   : > { %5244 = vmatpush3.msra.mxu0 %v4442_v21  ;;  %5251 = vmatprep.mubr.msk.f32.mxu0 %vm5888_vm13, %v5887_v0 }
 0xa23   : > { %5245 = vmatprep.subr.mxu0 %v5887_v0 }
 0xa24   : > { %5246 = vmatpush3.msra.mxu0 %v4441_v14 }
 0xa25   : > { %5247 = vmatprep.subr.mxu0 %v5887_v0 }
 0xa26   : > { %5248 = vmatpush3.msra.mxu0 %v4440_v31 }
 0xa27   : > { %5249 = vmatprep.subr.mxu0 %v5887_v0 }
 0xa28   : > { %5250 = vmatpush3.msra.mxu0 %v4439_v27 }
 0xa29   : > { %5252 = vmatmul.mubr.msk.f32.vlgmr.msra.gmra.mxu0 %vm4000_vm12, %v4438_v19 }
 0xae1   : > { %v4518_v23 = vpop.f32.mrf.mxu0 }
 0xae3   : > { %v5242_v35 = vpop.f32.mrf.mxu0 }
 0xae9   : > { %v4591_v36 = vpop.f32.mrf.mxu0 }
 0xaea   : > { %v4592_v37 = vadd.f32 %v4591_v36, %v4518_v23 }
 0xaeb   : > { %v5253_v38 = vpop.f32.mrf.mxu0 }
 0xaec   : > { %v4596_v39 = vsel %vm4595_vm0, %v4592_v37, -inf }
 0xaed   : > { %4597 = vmax.xlane.f32.xlu0 %v4596_v39 }
 0xb76   : > { %v4598_v40 = vpop.xlane.xlu0 %4597 }
 0xb77   : > { %v4599_v41 = vsub.f32 %v4592_v37, %v4598_v40 }
 0xb79   : > { %v4600_v42 = vmul.f32 1.442695, %v4599_v41 }
 0xb7b   : > { %5434 = vpow2.f32 %v4600_v42 }
 0xb88   : > { %v5435_v0 = vpop.eup %5434 }
 0xb89   : > { %v4602_v43 = vsel %vm4595_vm0, %v5435_v0, 0.0 }
 0xb8a   : > { %4603 = vadd.xlane.f32.xlu0 %v4602_v43 }
 0xc13   : > { %v4604_v45 = vpop.xlane.xlu0 %4603 }
 0xc14   : > { %5436 = vlog2.f32 %v4604_v45 }
 0xc21   : > { %v5437_v46 = vpop.eup %5436 }
 0xc22   : > { %v4606_v47 = vmul.f32 0.6931472, %v5437_v46 }
 0xc24   : > { %v4607_v48 = vadd.f32 %v4606_v47, %v4598_v40 }
 0xc26   : > { %v4608_v25 = vsub.f32 %v4592_v37, %v4607_v48 }
 0xc28   : > { %4609 = vst.msk [vmem:[%s744_s1] sm:$0x1] %vm4595_vm0, %v4608_v25 }
 0xc29   : > { %5789 = shalt.err (!%p5786_p2)
}
 0xc2a   : > { %s5790_s26 = scalar_lea.hbm %s4621_s25, 16  ;;  %s5794_s27 = scalar_lea.hbm %s6899_s18, 32 }
 0xc2b   : > { %p5791_p3 = scmp.ne.s32.totalorder %s4621_s25, %s5790_s26  ;;  %p5795_p5 = scmp.lt.s32.totalorder %s4621_s25, %s6899_s18 }
 0xc2c   : > { %p5796_p6 = scmp.lt.s32.totalorder %s5794_s27, %s5790_s26 }
 0xc2d   : > { %p5792_p9 = pnand %p5791_p3, %p6900_p7 }
 0xc2e   : > { %p5797_p10 = por %p5796_p6, %p5795_p5 }
 0xc2f   : > { %p5793_p4 = pneg %p5792_p9 }
 0xc31   : > { %p5798_p13 = pnand %p5797_p10, %p5793_p4 }
 0xc33   : > { %5801 = shalt.err (!%p5798_p13)
}
 0xc34   : > { %5306 = dma.vmem_to_hbm [thread:$0]  (%p6900_p7), %s4624_s24, 16, %s4621_s25, %s4611_s30  }
 0xc35 PF: > { %s6901_s29 = sld [smem:[#allocation39_spill]] }
 0xc36   : > { %s6902_s22 = sld [smem:[#allocation37_spill]] }
 0xc37   : > { %s6903_s4 = sld [smem:[#allocation42_spill]] }
 0xc3b   : > { %p5378_p8 = scmp.ge.s32.totalorder %s6901_s29, 2 }
 0xc3c   : > { %s4635_s23 = sand.u32 1, %s6902_s22  }
 0xc3d   : > { %p6904_p11 = scmp.ne.s32.totalorder %s6903_s4, 0  ;;  %s4636_s0 = scalar_lea.sflag [#allocation9], %s4635_s23 }
 0xc3f   : > { %p5349_p12 = pnand %p5378_p8, %p6904_p11 }
 0xc41   : > { %p5350_p0 = pneg %p5349_p12 }
 0xc43   : > { %5847 = dma.done.wait (%p5350_p0), %s4636_s0, 16  }
 0xc44   : > { %5849 = vsyncadd (%p5350_p0), %s4636_s0, 4294967280  ;;  %s6905_s30 = sld [smem:[#allocation40_spill]]  ;;  %s6908_s27 = smov %s5856_s28 }
 0xc45   : > { %s6906_s26 = sld [smem:[#allocation38_spill]] }
 0xc46   : > { %s6907_s29 = sld [smem:[#allocation41_spill]] }
 0xc4a   : > { %p35_p1 = scmp.ge.s32.totalorder %s6905_s30, 4  }
 0xc4b   : > { %s6909_s28 = smov %s6906_s26 }
 0xc4c   :  { %37 = sbr.rel (!%p35_p1) target bundleno = 16 (0x10), region = 198 }
 0xc51   :  { %4640 = vsyncpa [#allocation8], 1 }
 0xc52   :  { %4642 = vsyncpa [#allocation8 + $0x1], 1 }
 0xc53   :  { %4643 = vsyncpa [#allocation11], 1 }
 0xc54   :  { %4644 = vsyncpa [#allocation14], 1 }
 0xc55   :  { %4645 = vsyncpa [#allocation17], 1 }
 0xc56   :  { %4646 = vsyncpa [#allocation20], 1 }
 0xc57   :  { %4647 = vsyncpa [#allocation23], 1 }
 0xc58   :  { %4648 = vsyncpa [#allocation26], 1 }
 0xc59   :  { %4649 = vsyncpa [#allocation9], 1 }
 0xc5a   :  { %4651 = vsyncpa [#allocation9 + $0x1], 1 }

</bundles_post_ra>
